<compile_context>
chip_gen: v7x
topology: tpu7x:2x2x1
jax: 0.10.0
libtpu: 0.0.40
codegen_flags: <defaults>
</compile_context>

<pallas_src>
import numpy as np

import jax
import jax.numpy as jnp
from jax.experimental import pallas as pl
from jax.experimental.pallas import tpu as pltpu

# ----------------------------------------------------------------------------
# Problem dimensions (fixed for this script)
# ----------------------------------------------------------------------------
BATCH = 2
IMG_CH = 1
H0, W0 = 16, 16          # input spatial size
K = 5                    # conv kernel size
PAD = K - 1              # "full" padding used by the conv-transposes
H1, W1 = H0 - K + 1, W0 - K + 1      # 12, 12  after encConv1
H2, W2 = H1 - K + 1, W1 - K + 1      # 8, 8    after encConv2
C1, C2 = 16, 32          # encConv1 / encConv2 output channels
Z = 32                   # latent dim
FEATURE_DIM = C2 * H2 * W2           # 2048
STRIDE = H0              # per-image sublane stride in all stacked layouts (16)


# ----------------------------------------------------------------------------
# Fused Pallas kernel: the entire VAE forward pass, batch stacked on sublanes
# ----------------------------------------------------------------------------
def _vae_fused_kernel(xs_ref, eps_ref,
                      w1_ref, b1_ref, w2_ref, b2_ref,
                      wenc_ref, benc_ref, wdec_ref, bdec_ref,
                      w3_ref, b3_ref, w4_ref, b4_ref,
                      out_ref, mulv_ref,
                      zs_ref, p1_ref, p2_ref):
    f32 = jnp.float32
    B = eps_ref.shape[0]
    S = STRIDE                    # 16 rows per image
    R = B * S                     # stacked height of conv1 / decConv outputs
    RD = R - (S - H2)             # stacked height of conv2 / decFC outputs (R-8)
    RM = (B - 1) * S + 1          # rows needed so every n*S row exists

    # Zero the staging / halo scratch buffers (interiors are overwritten).
    zs_ref[...] = jnp.zeros_like(zs_ref)
    p1_ref[...] = jnp.zeros_like(p1_ref)
    p2_ref[...] = jnp.zeros_like(p2_ref)

    # ----------------------------- encoder -----------------------------
    # encConv1: 5 row-shifted Toeplitz matmuls over the whole stacked batch.
    a1 = jnp.dot(xs_ref[pl.ds(0, R), :], w1_ref[0], preferred_element_type=f32)
    for i in range(1, K):
        a1 += jnp.dot(xs_ref[pl.ds(i, R), :], w1_ref[i], preferred_element_type=f32)
    a1 = jnp.maximum(a1 + b1_ref[...], 0.0)            # (R, 192); rows %16>=12 unused

    # encConv2 (reads only valid a1 rows for the rows we keep).
    a2 = jnp.dot(a1[0:RD, :], w2_ref[0], preferred_element_type=f32)
    for i in range(1, K):
        a2 += jnp.dot(a1[i:i + RD, :], w2_ref[i], preferred_element_type=f32)
    a2 = jnp.maximum(a2 + b2_ref[...], 0.0)             # (RD, 256); rows %16>=8 unused

    # encFC1 + encFC2 as a row-conv over the stacked a2: only rows n*S matter.
    mulv = jnp.dot(a2[0:RM, :], wenc_ref[0], preferred_element_type=f32)
    for h in range(1, H2):
        mulv += jnp.dot(a2[h:h + RM, :], wenc_ref[h], preferred_element_type=f32)
    mulv = mulv + benc_ref[...]                         # (RM, 2Z)

    # Gather the one meaningful row per image -> merged (B, 2Z) output.
    mulv_b = jnp.concatenate([mulv[n * S:n * S + 1, :] for n in range(B)], axis=0)
    mulv_ref[...] = mulv_b

    # -------------------------- reparameterize --------------------------
    mu_b = mulv_b[:, 0:Z]
    lv_b = mulv_b[:, Z:2 * Z]
    z_b = mu_b + jnp.exp(0.5 * lv_b) * eps_ref[...]     # (B, Z)
    # Scatter z into the staging buffer at rows 8 + n*S (8-aligned starts).
    for n in range(B):
        zs_ref[pl.ds(8 + n * S, 1), :] = z_b[n:n + 1, :]

    # ------------------------------ decoder ------------------------------
    # decFC1 as a transposed row-conv: d[n*S + h] = z[n] @ wdec[h]; every other
    # row comes out exactly 0 and doubles as the inter-image H-padding.
    d = jnp.dot(zs_ref[pl.ds(8, RD), :], wdec_ref[0], preferred_element_type=f32)
    for h in range(1, H2):
        d += jnp.dot(zs_ref[pl.ds(8 - h, RD), :], wdec_ref[h], preferred_element_type=f32)
    d = jnp.maximum(d + bdec_ref[...], 0.0)             # (RD, 256)
    p1_ref[pl.ds(8, RD), :] = d                         # aligned multi-row store

    # decConv1 (ConvTranspose2d lowered to a full Toeplitz conv).
    a3 = jnp.dot(p1_ref[pl.ds(4, R), :], w3_ref[0], preferred_element_type=f32)
    for i in range(1, K):
        a3 += jnp.dot(p1_ref[pl.ds(4 + i, R), :], w3_ref[i], preferred_element_type=f32)
    a3 = jnp.maximum(a3 + b3_ref[...], 0.0)             # (R, 192); rows %16>=12 stay 0
    p2_ref[pl.ds(8, R), :] = a3                         # aligned multi-row store

    # decConv2 + exact sigmoid.
    a4 = jnp.dot(p2_ref[pl.ds(4, R), :], w4_ref[0], preferred_element_type=f32)
    for i in range(1, K):
        a4 += jnp.dot(p2_ref[pl.ds(4 + i, R), :], w4_ref[i], preferred_element_type=f32)
    a4 = a4 + b4_ref[...]
    out_ref[...] = 1.0 / (1.0 + jnp.exp(-a4))           # (R, IMG_CH*W0)


# ----------------------------------------------------------------------------
# pallas_call wrapper
# ----------------------------------------------------------------------------
def vae_forward(x, eps, kp):
    n = x.shape[0]
    R = n * STRIDE
    # NCHW -> (N*H, C*W): image rows stacked on sublanes (stride 16 per image),
    # channel-major width on lanes; 8 zero rows appended so the row-shifted
    # encConv1 reads never run off the end.
    x3 = jnp.transpose(x, (0, 2, 1, 3)).reshape(R, IMG_CH * W0)
    xs = jnp.pad(x3, ((0, 8), (0, 0)))

    # TODO(synk): for larger batches on v7x, split the batch over a
    # grid=(B//B_TILE,) with dimension_semantics=("parallel",) to use both
    # TensorCores; with BATCH=2 the sublane-stacked single call is better.
    vmem = pl.BlockSpec(memory_space=pltpu.MemorySpace.VMEM)
    out_flat, mulv = pl.pallas_call(
        _vae_fused_kernel,
        out_shape=(
            jax.ShapeDtypeStruct((R, IMG_CH * W0), jnp.float32),
            jax.ShapeDtypeStruct((n, 2 * Z), jnp.float32),
        ),
        in_specs=[vmem] * 14,
        out_specs=(vmem, vmem),
        scratch_shapes=[
            pltpu.VMEM((R, Z), jnp.float32),                 # z staging (strided rows)
            pltpu.VMEM((8 + R, C2 * W2), jnp.float32),       # decConv1 input, 8-row halo
            pltpu.VMEM((8 + R, C1 * W1), jnp.float32),       # decConv2 input, 8-row halo
        ],
    )(xs, eps,
      kp["w1t"], kp["b1r"], kp["w2t"], kp["b2r"],
      kp["wenc"], kp["benc"], kp["wdec"], kp["bdec"],
      kp["w3t"], kp["b3t"], kp["w4t"], kp["b4r"])

    out = out_flat.reshape(n, H0, IMG_CH, W0).transpose(0, 2, 1, 3)
    mu = mulv[:, :Z]
    logvar = mulv[:, Z:]
    return out, mu, logvar


# ----------------------------------------------------------------------------
# One-time weight preparation (Toeplitz expansion, transposes, flips, tiles)
# ----------------------------------------------------------------------------
def conv_toeplitz(w, w_in, pad):
    """Lower a (cross-correlation) conv to KH matrices, one per kernel row.

    w: (OC, C, KH, KW).  Returns T of shape (KH, C*w_in, OC*w_out) with
    w_out = w_in + 2*pad - KW + 1, such that for an activation stored as
    act[h, c*w_in + wcol] (W-padding folded into T, H-padding handled by the
    caller):   out[oh, oc*w_out + ow] = sum_i act[oh + i] @ T[i].
    """
    oc, c, kh, kw = w.shape
    w_out = w_in + 2 * pad - kw + 1
    wcol = np.arange(w_in)[:, None]
    ow = np.arange(w_out)[None, :]
    j = wcol + pad - ow                              # (w_in, w_out)
    valid = (j >= 0) & (j < kw)
    jc = np.clip(j, 0, kw - 1)
    g = w[:, :, :, jc] * valid[None, None, None, :, :]   # (oc, c, kh, w_in, w_out)
    t = np.transpose(g, (2, 1, 3, 0, 4)).reshape(kh, c * w_in, oc * w_out)
    return np.ascontiguousarray(t, np.float32)


def prepare_params(p, batch):
    """Pre-arrange all weights once into the layouts the fused kernel consumes."""
    f = lambda a: np.asarray(a, np.float32)
    S = STRIDE
    kp = {}
    # encConv1 / encConv2 (valid conv, no W-padding)
    kp["w1t"] = conv_toeplitz(f(p["encConv1_w"]), W0, 0)            # (5, 16, 192)
    kp["b1r"] = np.repeat(f(p["encConv1_b"]), W1)[None, :]          # (1, 192)
    kp["w2t"] = conv_toeplitz(f(p["encConv2_w"]), W1, 0)            # (5, 192, 256)
    kp["b2r"] = np.repeat(f(p["encConv2_b"]), W2)[None, :]          # (1, 256)
    # encFC1 + encFC2 merged (torch Linear weight layout is (out, in))
    wfc = np.concatenate([f(p["encFC1_w"]), f(p["encFC2_w"])], axis=0)   # (2Z, 2048)
    wfc = wfc.reshape(2 * Z, C2, H2, W2)
    kp["wenc"] = np.ascontiguousarray(
        np.transpose(wfc, (2, 1, 3, 0)).reshape(H2, C2 * W2, 2 * Z))     # (8, 256, 64)
    kp["benc"] = np.concatenate([f(p["encFC1_b"]), f(p["encFC2_b"])])[None, :]  # (1, 64)
    # decFC1
    wd = f(p["decFC1_w"]).reshape(C2, H2, W2, Z)
    kp["wdec"] = np.ascontiguousarray(
        np.transpose(wd, (1, 3, 0, 2)).reshape(H2, Z, C2 * W2))          # (8, 32, 256)
    bdec_rows = f(p["decFC1_b"]).reshape(C2, H2, W2).transpose(1, 0, 2).reshape(H2, C2 * W2)
    # Bias tiles in the stacked-batch layout: decoded rows get the bias,
    # inter-image padding rows stay exactly zero.
    bdec_tile = np.zeros((batch * S - (S - H2), C2 * W2), np.float32)    # (24, 256)
    b3_rows = np.repeat(f(p["decConv1_b"]), W1)                          # (192,)
    b3_tile = np.zeros((batch * S, C1 * W1), np.float32)                 # (32, 192)
    for n_img in range(batch):
        bdec_tile[n_img * S: n_img * S + H2] = bdec_rows
        b3_tile[n_img * S: n_img * S + H1] = b3_rows[None, :]
    kp["bdec"] = bdec_tile
    kp["b3t"] = b3_tile
    # decConv1 / decConv2: conv-transpose == full conv with flipped, swapped kernel
    w3 = f(p["decConv1_w"])[:, :, ::-1, ::-1].transpose(1, 0, 2, 3)      # (16, 32, 5, 5)
    kp["w3t"] = conv_toeplitz(w3, W2, PAD)                               # (5, 256, 192)
    w4 = f(p["decConv2_w"])[:, :, ::-1, ::-1].transpose(1, 0, 2, 3)      # (1, 16, 5, 5)
    kp["w4t"] = conv_toeplitz(w4, W1, PAD)                               # (5, 192, 16)
    kp["b4r"] = np.repeat(f(p["decConv2_b"]), W0)[None, :]               # (1, 16)
    return {k: jnp.asarray(v) for k, v in kp.items()}


# ----------------------------------------------------------------------------
# Parameter init (deterministic, synthetic; PyTorch-style layouts)
# ----------------------------------------------------------------------------
def _uniform(key, shape, fan_in):
    bound = 1.0 / float(np.sqrt(fan_in))
    return jax.random.uniform(key, shape, jnp.float32, -bound, bound)


def init_vae_params(key, img_channels, feature_dim, z_dim):
    ks = jax.random.split(key, 14)
    p = {}
    p["encConv1_w"] = _uniform(ks[0], (C1, img_channels, K, K), img_channels * K * K)
    p["encConv1_b"] = _uniform(ks[1], (C1,), img_channels * K * K)
    p["encConv2_w"] = _uniform(ks[2], (C2, C1, K, K), C1 * K * K)
    p["encConv2_b"] = _uniform(ks[3], (C2,), C1 * K * K)
    p["encFC1_w"] = _uniform(ks[4], (z_dim, feature_dim), feature_dim)
    p["encFC1_b"] = _uniform(ks[5], (z_dim,), feature_dim)
    p["encFC2_w"] = _uniform(ks[6], (z_dim, feature_dim), feature_dim)
    p["encFC2_b"] = _uniform(ks[7], (z_dim,), feature_dim)
    p["decFC1_w"] = _uniform(ks[8], (feature_dim, z_dim), z_dim)
    p["decFC1_b"] = _uniform(ks[9], (feature_dim,), z_dim)
    p["decConv1_w"] = _uniform(ks[10], (C2, C1, K, K), C2 * K * K)   # (IC, OC, KH, KW)
    p["decConv1_b"] = _uniform(ks[11], (C1,), C2 * K * K)
    p["decConv2_w"] = _uniform(ks[12], (C1, img_channels, K, K), C1 * K * K)
    p["decConv2_b"] = _uniform(ks[13], (img_channels,), C1 * K * K)
    return p


# ----------------------------------------------------------------------------
# Plain-XLA reference (same semantics as the PyTorch module) for validation
# ----------------------------------------------------------------------------
def ref_forward(params, x, eps):
    dn = ("NCHW", "OIHW", "NCHW")
    h = jax.lax.conv_general_dilated(x, params["encConv1_w"], (1, 1), "VALID",
                                     dimension_numbers=dn)
    h = jax.nn.relu(h + params["encConv1_b"].reshape(1, -1, 1, 1))
    h = jax.lax.conv_general_dilated(h, params["encConv2_w"], (1, 1), "VALID",
                                     dimension_numbers=dn)
    h = jax.nn.relu(h + params["encConv2_b"].reshape(1, -1, 1, 1))
    feat = h.reshape(x.shape[0], -1)
    mu = feat @ params["encFC1_w"].T + params["encFC1_b"]
    logvar = feat @ params["encFC2_w"].T + params["encFC2_b"]
    z = mu + jnp.exp(0.5 * logvar) * eps
    d = jax.nn.relu(z @ params["decFC1_w"].T + params["decFC1_b"])
    d = d.reshape(x.shape[0], C2, H2, W2)
    w1c = jnp.flip(params["decConv1_w"], (2, 3)).transpose(1, 0, 2, 3)
    d = jax.lax.conv_general_dilated(d, w1c, (1, 1), [(PAD, PAD), (PAD, PAD)],
                                     dimension_numbers=dn)
    d = jax.nn.relu(d + params["decConv1_b"].reshape(1, -1, 1, 1))
    w2c = jnp.flip(params["decConv2_w"], (2, 3)).transpose(1, 0, 2, 3)
    d = jax.lax.conv_general_dilated(d, w2c, (1, 1), [(PAD, PAD), (PAD, PAD)],
                                     dimension_numbers=dn)
    out = jax.nn.sigmoid(d + params["decConv2_b"].reshape(1, -1, 1, 1))
    return out, mu, logvar


# ----------------------------------------------------------------------------
# Main
# ----------------------------------------------------------------------------
if __name__ == "__main__":
    key = jax.random.PRNGKey(0)
    k_param, k_x, k_eps = jax.random.split(key, 3)

    params = init_vae_params(k_param, IMG_CH, FEATURE_DIM, Z)
    kernel_params = prepare_params(params, BATCH)   # one-time layout work, outside jit

    x = jax.random.normal(k_x, (BATCH, IMG_CH, H0, W0), jnp.float32)
    # TODO(synk): torch.randn_like inside forward is replaced by a deterministic
    # externally-supplied eps (pltpu.prng_* could provide in-kernel sampling).
    eps = jax.random.normal(k_eps, (BATCH, Z), jnp.float32)

    fwd = jax.jit(vae_forward)
    out, mu, logvar = fwd(x, eps, kernel_params)
    jax.block_until_ready((out, mu, logvar))

    assert out.shape == (BATCH, IMG_CH, H0, W0)
    assert mu.shape == (BATCH, Z) and logvar.shape == (BATCH, Z)
    assert bool(jnp.all(out >= 0.0)) and bool(jnp.all(out <= 1.0))

    # numerical check against the plain-XLA reference of the same forward pass
    r_out, r_mu, r_lv = jax.jit(ref_forward)(params, x, eps)
    err = max(float(jnp.max(jnp.abs(out - r_out))),
              float(jnp.max(jnp.abs(mu - r_mu))),
              float(jnp.max(jnp.abs(logvar - r_lv))))
    assert err < 2e-3, f"mismatch vs reference: {err}"

    print("KERNEL_OK")
</pallas_src>

<mosaic_0001>
module attributes {stable_mosaic.version = 11 : i64} {
  func.func @_vae_fused_kernel(%arg0: memref<40x16xf32, #tpu.memory_space<vmem>>, %arg1: memref<2x32xf32, #tpu.memory_space<vmem>>, %arg2: memref<5x16x192xf32, #tpu.memory_space<vmem>>, %arg3: memref<1x192xf32, #tpu.memory_space<vmem>>, %arg4: memref<5x192x256xf32, #tpu.memory_space<vmem>>, %arg5: memref<1x256xf32, #tpu.memory_space<vmem>>, %arg6: memref<8x256x64xf32, #tpu.memory_space<vmem>>, %arg7: memref<1x64xf32, #tpu.memory_space<vmem>>, %arg8: memref<8x32x256xf32, #tpu.memory_space<vmem>>, %arg9: memref<24x256xf32, #tpu.memory_space<vmem>>, %arg10: memref<5x256x192xf32, #tpu.memory_space<vmem>>, %arg11: memref<32x192xf32, #tpu.memory_space<vmem>>, %arg12: memref<5x192x16xf32, #tpu.memory_space<vmem>>, %arg13: memref<1x16xf32, #tpu.memory_space<vmem>>, %arg14: memref<32x16xf32, #tpu.memory_space<vmem>>, %arg15: memref<2x64xf32, #tpu.memory_space<vmem>>, %arg16: memref<32x32xf32, #tpu.memory_space<vmem>>, %arg17: memref<40x256xf32, #tpu.memory_space<vmem>>, %arg18: memref<40x192xf32, #tpu.memory_space<vmem>>) attributes {dimension_semantics = [], scalar_prefetch = 0 : i64, scratch_operands = 3 : i64, tpu.core_type = #tpu.core_type<tc>} {
    %cst = arith.constant 0.000000e+00 : f32
    %0 = vector.broadcast %cst : f32 to vector<32x32xf32>
    %c0 = arith.constant 0 : index
    %c0_0 = arith.constant 0 : index
    %1 = vector.load %arg16[%c0, %c0_0] : memref<32x32xf32, #tpu.memory_space<vmem>>, vector<32x32xf32>
    tpu.vector_store %arg16[%c0, %c0_0], %0 {strides = array<i32>} : memref<32x32xf32, #tpu.memory_space<vmem>>, vector<32x32xf32>,
    %cst_1 = arith.constant 0.000000e+00 : f32
    %2 = vector.broadcast %cst_1 : f32 to vector<40x256xf32>
    %c0_2 = arith.constant 0 : index
    %c0_3 = arith.constant 0 : index
    %3 = vector.load %arg17[%c0_2, %c0_3] : memref<40x256xf32, #tpu.memory_space<vmem>>, vector<40x256xf32>
    tpu.vector_store %arg17[%c0_2, %c0_3], %2 {strides = array<i32>} : memref<40x256xf32, #tpu.memory_space<vmem>>, vector<40x256xf32>,
    %cst_4 = arith.constant 0.000000e+00 : f32
    %4 = vector.broadcast %cst_4 : f32 to vector<40x192xf32>
    %c0_5 = arith.constant 0 : index
    %c0_6 = arith.constant 0 : index
    %5 = vector.load %arg18[%c0_5, %c0_6] : memref<40x192xf32, #tpu.memory_space<vmem>>, vector<40x192xf32>
    tpu.vector_store %arg18[%c0_5, %c0_6], %4 {strides = array<i32>} : memref<40x192xf32, #tpu.memory_space<vmem>>, vector<40x192xf32>,
    %c0_7 = arith.constant 0 : index
    %c0_8 = arith.constant 0 : index
    %6 = vector.load %arg0[%c0_7, %c0_8] : memref<40x16xf32, #tpu.memory_space<vmem>>, vector<32x16xf32>
    %c0_9 = arith.constant 0 : index
    %c0_10 = arith.constant 0 : index
    %c0_11 = arith.constant 0 : index
    %7 = vector.load %arg2[%c0_9, %c0_10, %c0_11] : memref<5x16x192xf32, #tpu.memory_space<vmem>>, vector<1x16x192xf32>
    %8 = vector.shape_cast %7 : vector<1x16x192xf32> to vector<16x192xf32>
    %cst_12 = arith.constant dense<0.000000e+00> : vector<32x192xf32>
    %9 = tpu.matmul %6, %8, %cst_12 {dimension_numbers = #tpu.dot_dimension_numbers<[1], [0], [0], [1], [0, 0, 1, 1], [], []>} : vector<32x16xf32>, vector<16x192xf32>, vector<32x192xf32> -> vector<32x192xf32>
    %c1 = arith.constant 1 : index
    %c0_13 = arith.constant 0 : index
    %10 = vector.load %arg0[%c1, %c0_13] : memref<40x16xf32, #tpu.memory_space<vmem>>, vector<32x16xf32>
    %c1_14 = arith.constant 1 : index
    %c0_15 = arith.constant 0 : index
    %c0_16 = arith.constant 0 : index
    %11 = vector.load %arg2[%c1_14, %c0_15, %c0_16] : memref<5x16x192xf32, #tpu.memory_space<vmem>>, vector<1x16x192xf32>
    %12 = vector.shape_cast %11 : vector<1x16x192xf32> to vector<16x192xf32>
    %cst_17 = arith.constant dense<0.000000e+00> : vector<32x192xf32>
    %13 = tpu.matmul %10, %12, %cst_17 {dimension_numbers = #tpu.dot_dimension_numbers<[1], [0], [0], [1], [0, 0, 1, 1], [], []>} : vector<32x16xf32>, vector<16x192xf32>, vector<32x192xf32> -> vector<32x192xf32>
    %14 = arith.addf %9, %13 : vector<32x192xf32>
    %c2 = arith.constant 2 : index
    %c0_18 = arith.constant 0 : index
    %15 = vector.load %arg0[%c2, %c0_18] : memref<40x16xf32, #tpu.memory_space<vmem>>, vector<32x16xf32>
    %c2_19 = arith.constant 2 : index
    %c0_20 = arith.constant 0 : index
    %c0_21 = arith.constant 0 : index
    %16 = vector.load %arg2[%c2_19, %c0_20, %c0_21] : memref<5x16x192xf32, #tpu.memory_space<vmem>>, vector<1x16x192xf32>
    %17 = vector.shape_cast %16 : vector<1x16x192xf32> to vector<16x192xf32>
    %cst_22 = arith.constant dense<0.000000e+00> : vector<32x192xf32>
    %18 = tpu.matmul %15, %17, %cst_22 {dimension_numbers = #tpu.dot_dimension_numbers<[1], [0], [0], [1], [0, 0, 1, 1], [], []>} : vector<32x16xf32>, vector<16x192xf32>, vector<32x192xf32> -> vector<32x192xf32>
    %19 = arith.addf %14, %18 : vector<32x192xf32>
    %c3 = arith.constant 3 : index
    %c0_23 = arith.constant 0 : index
    %20 = vector.load %arg0[%c3, %c0_23] : memref<40x16xf32, #tpu.memory_space<vmem>>, vector<32x16xf32>
    %c3_24 = arith.constant 3 : index
    %c0_25 = arith.constant 0 : index
    %c0_26 = arith.constant 0 : index
    %21 = vector.load %arg2[%c3_24, %c0_25, %c0_26] : memref<5x16x192xf32, #tpu.memory_space<vmem>>, vector<1x16x192xf32>
    %22 = vector.shape_cast %21 : vector<1x16x192xf32> to vector<16x192xf32>
    %cst_27 = arith.constant dense<0.000000e+00> : vector<32x192xf32>
    %23 = tpu.matmul %20, %22, %cst_27 {dimension_numbers = #tpu.dot_dimension_numbers<[1], [0], [0], [1], [0, 0, 1, 1], [], []>} : vector<32x16xf32>, vector<16x192xf32>, vector<32x192xf32> -> vector<32x192xf32>
    %24 = arith.addf %19, %23 : vector<32x192xf32>
    %c4 = arith.constant 4 : index
    %c0_28 = arith.constant 0 : index
    %25 = vector.load %arg0[%c4, %c0_28] : memref<40x16xf32, #tpu.memory_space<vmem>>, vector<32x16xf32>
    %c4_29 = arith.constant 4 : index
    %c0_30 = arith.constant 0 : index
    %c0_31 = arith.constant 0 : index
    %26 = vector.load %arg2[%c4_29, %c0_30, %c0_31] : memref<5x16x192xf32, #tpu.memory_space<vmem>>, vector<1x16x192xf32>
    %27 = vector.shape_cast %26 : vector<1x16x192xf32> to vector<16x192xf32>
    %cst_32 = arith.constant dense<0.000000e+00> : vector<32x192xf32>
    %28 = tpu.matmul %25, %27, %cst_32 {dimension_numbers = #tpu.dot_dimension_numbers<[1], [0], [0], [1], [0, 0, 1, 1], [], []>} : vector<32x16xf32>, vector<16x192xf32>, vector<32x192xf32> -> vector<32x192xf32>
    %29 = arith.addf %24, %28 : vector<32x192xf32>
    %c0_33 = arith.constant 0 : index
    %c0_34 = arith.constant 0 : index
    %30 = vector.load %arg3[%c0_33, %c0_34] : memref<1x192xf32, #tpu.memory_space<vmem>>, vector<1x192xf32>
    %31 = vector.broadcast %30 : vector<1x192xf32> to vector<32x192xf32>
    %32 = arith.addf %29, %31 : vector<32x192xf32>
    %cst_35 = arith.constant 0.000000e+00 : f32
    %33 = vector.broadcast %cst_35 : f32 to vector<32x192xf32>
    %34 = arith.maximumf %32, %33 : vector<32x192xf32>
    %35 = vector.extract_strided_slice %34 {offsets = [0, 0], sizes = [24, 192], strides = [1, 1]} : vector<32x192xf32> to vector<24x192xf32>
    %c0_36 = arith.constant 0 : index
    %c0_37 = arith.constant 0 : index
    %c0_38 = arith.constant 0 : index
    %36 = vector.load %arg4[%c0_36, %c0_37, %c0_38] : memref<5x192x256xf32, #tpu.memory_space<vmem>>, vector<1x192x256xf32>
    %37 = vector.shape_cast %36 : vector<1x192x256xf32> to vector<192x256xf32>
    %cst_39 = arith.constant dense<0.000000e+00> : vector<24x256xf32>
    %38 = tpu.matmul %35, %37, %cst_39 {dimension_numbers = #tpu.dot_dimension_numbers<[1], [0], [0], [1], [0, 0, 1, 1], [], []>} : vector<24x192xf32>, vector<192x256xf32>, vector<24x256xf32> -> vector<24x256xf32>
    %39 = vector.extract_strided_slice %34 {offsets = [1, 0], sizes = [24, 192], strides = [1, 1]} : vector<32x192xf32> to vector<24x192xf32>
    %c1_40 = arith.constant 1 : index
    %c0_41 = arith.constant 0 : index
    %c0_42 = arith.constant 0 : index
    %40 = vector.load %arg4[%c1_40, %c0_41, %c0_42] : memref<5x192x256xf32, #tpu.memory_space<vmem>>, vector<1x192x256xf32>
    %41 = vector.shape_cast %40 : vector<1x192x256xf32> to vector<192x256xf32>
    %cst_43 = arith.constant dense<0.000000e+00> : vector<24x256xf32>
    %42 = tpu.matmul %39, %41, %cst_43 {dimension_numbers = #tpu.dot_dimension_numbers<[1], [0], [0], [1], [0, 0, 1, 1], [], []>} : vector<24x192xf32>, vector<192x256xf32>, vector<24x256xf32> -> vector<24x256xf32>
    %43 = arith.addf %38, %42 : vector<24x256xf32>
    %44 = vector.extract_strided_slice %34 {offsets = [2, 0], sizes = [24, 192], strides = [1, 1]} : vector<32x192xf32> to vector<24x192xf32>
    %c2_44 = arith.constant 2 : index
    %c0_45 = arith.constant 0 : index
    %c0_46 = arith.constant 0 : index
    %45 = vector.load %arg4[%c2_44, %c0_45, %c0_46] : memref<5x192x256xf32, #tpu.memory_space<vmem>>, vector<1x192x256xf32>
    %46 = vector.shape_cast %45 : vector<1x192x256xf32> to vector<192x256xf32>
    %cst_47 = arith.constant dense<0.000000e+00> : vector<24x256xf32>
    %47 = tpu.matmul %44, %46, %cst_47 {dimension_numbers = #tpu.dot_dimension_numbers<[1], [0], [0], [1], [0, 0, 1, 1], [], []>} : vector<24x192xf32>, vector<192x256xf32>, vector<24x256xf32> -> vector<24x256xf32>
    %48 = arith.addf %43, %47 : vector<24x256xf32>
    %49 = vector.extract_strided_slice %34 {offsets = [3, 0], sizes = [24, 192], strides = [1, 1]} : vector<32x192xf32> to vector<24x192xf32>
    %c3_48 = arith.constant 3 : index
    %c0_49 = arith.constant 0 : index
    %c0_50 = arith.constant 0 : index
    %50 = vector.load %arg4[%c3_48, %c0_49, %c0_50] : memref<5x192x256xf32, #tpu.memory_space<vmem>>, vector<1x192x256xf32>
    %51 = vector.shape_cast %50 : vector<1x192x256xf32> to vector<192x256xf32>
    %cst_51 = arith.constant dense<0.000000e+00> : vector<24x256xf32>
    %52 = tpu.matmul %49, %51, %cst_51 {dimension_numbers = #tpu.dot_dimension_numbers<[1], [0], [0], [1], [0, 0, 1, 1], [], []>} : vector<24x192xf32>, vector<192x256xf32>, vector<24x256xf32> -> vector<24x256xf32>
    %53 = arith.addf %48, %52 : vector<24x256xf32>
    %54 = vector.extract_strided_slice %34 {offsets = [4, 0], sizes = [24, 192], strides = [1, 1]} : vector<32x192xf32> to vector<24x192xf32>
    %c4_52 = arith.constant 4 : index
    %c0_53 = arith.constant 0 : index
    %c0_54 = arith.constant 0 : index
    %55 = vector.load %arg4[%c4_52, %c0_53, %c0_54] : memref<5x192x256xf32, #tpu.memory_space<vmem>>, vector<1x192x256xf32>
    %56 = vector.shape_cast %55 : vector<1x192x256xf32> to vector<192x256xf32>
    %cst_55 = arith.constant dense<0.000000e+00> : vector<24x256xf32>
    %57 = tpu.matmul %54, %56, %cst_55 {dimension_numbers = #tpu.dot_dimension_numbers<[1], [0], [0], [1], [0, 0, 1, 1], [], []>} : vector<24x192xf32>, vector<192x256xf32>, vector<24x256xf32> -> vector<24x256xf32>
    %58 = arith.addf %53, %57 : vector<24x256xf32>
    %c0_56 = arith.constant 0 : index
    %c0_57 = arith.constant 0 : index
    %59 = vector.load %arg5[%c0_56, %c0_57] : memref<1x256xf32, #tpu.memory_space<vmem>>, vector<1x256xf32>
    %60 = vector.broadcast %59 : vector<1x256xf32> to vector<24x256xf32>
    %61 = arith.addf %58, %60 : vector<24x256xf32>
    %cst_58 = arith.constant 0.000000e+00 : f32
    %62 = vector.broadcast %cst_58 : f32 to vector<24x256xf32>
    %63 = arith.maximumf %61, %62 : vector<24x256xf32>
    %64 = vector.extract_strided_slice %63 {offsets = [0, 0], sizes = [17, 256], strides = [1, 1]} : vector<24x256xf32> to vector<17x256xf32>
    %c0_59 = arith.constant 0 : index
    %c0_60 = arith.constant 0 : index
    %c0_61 = arith.constant 0 : index
    %65 = vector.load %arg6[%c0_59, %c0_60, %c0_61] : memref<8x256x64xf32, #tpu.memory_space<vmem>>, vector<1x256x64xf32>
    %66 = vector.shape_cast %65 : vector<1x256x64xf32> to vector<256x64xf32>
    %cst_62 = arith.constant dense<0.000000e+00> : vector<17x64xf32>
    %67 = tpu.matmul %64, %66, %cst_62 {dimension_numbers = #tpu.dot_dimension_numbers<[1], [0], [0], [1], [0, 0, 1, 1], [], []>} : vector<17x256xf32>, vector<256x64xf32>, vector<17x64xf32> -> vector<17x64xf32>
    %68 = vector.extract_strided_slice %63 {offsets = [1, 0], sizes = [17, 256], strides = [1, 1]} : vector<24x256xf32> to vector<17x256xf32>
    %c1_63 = arith.constant 1 : index
    %c0_64 = arith.constant 0 : index
    %c0_65 = arith.constant 0 : index
    %69 = vector.load %arg6[%c1_63, %c0_64, %c0_65] : memref<8x256x64xf32, #tpu.memory_space<vmem>>, vector<1x256x64xf32>
    %70 = vector.shape_cast %69 : vector<1x256x64xf32> to vector<256x64xf32>
    %cst_66 = arith.constant dense<0.000000e+00> : vector<17x64xf32>
    %71 = tpu.matmul %68, %70, %cst_66 {dimension_numbers = #tpu.dot_dimension_numbers<[1], [0], [0], [1], [0, 0, 1, 1], [], []>} : vector<17x256xf32>, vector<256x64xf32>, vector<17x64xf32> -> vector<17x64xf32>
    %72 = arith.addf %67, %71 : vector<17x64xf32>
    %73 = vector.extract_strided_slice %63 {offsets = [2, 0], sizes = [17, 256], strides = [1, 1]} : vector<24x256xf32> to vector<17x256xf32>
    %c2_67 = arith.constant 2 : index
    %c0_68 = arith.constant 0 : index
    %c0_69 = arith.constant 0 : index
    %74 = vector.load %arg6[%c2_67, %c0_68, %c0_69] : memref<8x256x64xf32, #tpu.memory_space<vmem>>, vector<1x256x64xf32>
    %75 = vector.shape_cast %74 : vector<1x256x64xf32> to vector<256x64xf32>
    %cst_70 = arith.constant dense<0.000000e+00> : vector<17x64xf32>
    %76 = tpu.matmul %73, %75, %cst_70 {dimension_numbers = #tpu.dot_dimension_numbers<[1], [0], [0], [1], [0, 0, 1, 1], [], []>} : vector<17x256xf32>, vector<256x64xf32>, vector<17x64xf32> -> vector<17x64xf32>
    %77 = arith.addf %72, %76 : vector<17x64xf32>
    %78 = vector.extract_strided_slice %63 {offsets = [3, 0], sizes = [17, 256], strides = [1, 1]} : vector<24x256xf32> to vector<17x256xf32>
    %c3_71 = arith.constant 3 : index
    %c0_72 = arith.constant 0 : index
    %c0_73 = arith.constant 0 : index
    %79 = vector.load %arg6[%c3_71, %c0_72, %c0_73] : memref<8x256x64xf32, #tpu.memory_space<vmem>>, vector<1x256x64xf32>
    %80 = vector.shape_cast %79 : vector<1x256x64xf32> to vector<256x64xf32>
    %cst_74 = arith.constant dense<0.000000e+00> : vector<17x64xf32>
    %81 = tpu.matmul %78, %80, %cst_74 {dimension_numbers = #tpu.dot_dimension_numbers<[1], [0], [0], [1], [0, 0, 1, 1], [], []>} : vector<17x256xf32>, vector<256x64xf32>, vector<17x64xf32> -> vector<17x64xf32>
    %82 = arith.addf %77, %81 : vector<17x64xf32>
    %83 = vector.extract_strided_slice %63 {offsets = [4, 0], sizes = [17, 256], strides = [1, 1]} : vector<24x256xf32> to vector<17x256xf32>
    %c4_75 = arith.constant 4 : index
    %c0_76 = arith.constant 0 : index
    %c0_77 = arith.constant 0 : index
    %84 = vector.load %arg6[%c4_75, %c0_76, %c0_77] : memref<8x256x64xf32, #tpu.memory_space<vmem>>, vector<1x256x64xf32>
    %85 = vector.shape_cast %84 : vector<1x256x64xf32> to vector<256x64xf32>
    %cst_78 = arith.constant dense<0.000000e+00> : vector<17x64xf32>
    %86 = tpu.matmul %83, %85, %cst_78 {dimension_numbers = #tpu.dot_dimension_numbers<[1], [0], [0], [1], [0, 0, 1, 1], [], []>} : vector<17x256xf32>, vector<256x64xf32>, vector<17x64xf32> -> vector<17x64xf32>
    %87 = arith.addf %82, %86 : vector<17x64xf32>
    %88 = vector.extract_strided_slice %63 {offsets = [5, 0], sizes = [17, 256], strides = [1, 1]} : vector<24x256xf32> to vector<17x256xf32>
    %c5 = arith.constant 5 : index
    %c0_79 = arith.constant 0 : index
    %c0_80 = arith.constant 0 : index
    %89 = vector.load %arg6[%c5, %c0_79, %c0_80] : memref<8x256x64xf32, #tpu.memory_space<vmem>>, vector<1x256x64xf32>
    %90 = vector.shape_cast %89 : vector<1x256x64xf32> to vector<256x64xf32>
    %cst_81 = arith.constant dense<0.000000e+00> : vector<17x64xf32>
    %91 = tpu.matmul %88, %90, %cst_81 {dimension_numbers = #tpu.dot_dimension_numbers<[1], [0], [0], [1], [0, 0, 1, 1], [], []>} : vector<17x256xf32>, vector<256x64xf32>, vector<17x64xf32> -> vector<17x64xf32>
    %92 = arith.addf %87, %91 : vector<17x64xf32>
    %93 = vector.extract_strided_slice %63 {offsets = [6, 0], sizes = [17, 256], strides = [1, 1]} : vector<24x256xf32> to vector<17x256xf32>
    %c6 = arith.constant 6 : index
    %c0_82 = arith.constant 0 : index
    %c0_83 = arith.constant 0 : index
    %94 = vector.load %arg6[%c6, %c0_82, %c0_83] : memref<8x256x64xf32, #tpu.memory_space<vmem>>, vector<1x256x64xf32>
    %95 = vector.shape_cast %94 : vector<1x256x64xf32> to vector<256x64xf32>
    %cst_84 = arith.constant dense<0.000000e+00> : vector<17x64xf32>
    %96 = tpu.matmul %93, %95, %cst_84 {dimension_numbers = #tpu.dot_dimension_numbers<[1], [0], [0], [1], [0, 0, 1, 1], [], []>} : vector<17x256xf32>, vector<256x64xf32>, vector<17x64xf32> -> vector<17x64xf32>
    %97 = arith.addf %92, %96 : vector<17x64xf32>
    %98 = vector.extract_strided_slice %63 {offsets = [7, 0], sizes = [17, 256], strides = [1, 1]} : vector<24x256xf32> to vector<17x256xf32>
    %c7 = arith.constant 7 : index
    %c0_85 = arith.constant 0 : index
    %c0_86 = arith.constant 0 : index
    %99 = vector.load %arg6[%c7, %c0_85, %c0_86] : memref<8x256x64xf32, #tpu.memory_space<vmem>>, vector<1x256x64xf32>
    %100 = vector.shape_cast %99 : vector<1x256x64xf32> to vector<256x64xf32>
    %cst_87 = arith.constant dense<0.000000e+00> : vector<17x64xf32>
    %101 = tpu.matmul %98, %100, %cst_87 {dimension_numbers = #tpu.dot_dimension_numbers<[1], [0], [0], [1], [0, 0, 1, 1], [], []>} : vector<17x256xf32>, vector<256x64xf32>, vector<17x64xf32> -> vector<17x64xf32>
    %102 = arith.addf %97, %101 : vector<17x64xf32>
    %c0_88 = arith.constant 0 : index
    %c0_89 = arith.constant 0 : index
    %103 = vector.load %arg7[%c0_88, %c0_89] : memref<1x64xf32, #tpu.memory_space<vmem>>, vector<1x64xf32>
    %104 = vector.broadcast %103 : vector<1x64xf32> to vector<17x64xf32>
    %105 = arith.addf %102, %104 : vector<17x64xf32>
    %106 = vector.extract_strided_slice %105 {offsets = [0, 0], sizes = [1, 64], strides = [1, 1]} : vector<17x64xf32> to vector<1x64xf32>
    %107 = vector.extract_strided_slice %105 {offsets = [16, 0], sizes = [1, 64], strides = [1, 1]} : vector<17x64xf32> to vector<1x64xf32>
    %108 = tpu.concatenate %106, %107 in 0 : vector<1x64xf32>, vector<1x64xf32> -> vector<2x64xf32>
    %c0_90 = arith.constant 0 : index
    %c0_91 = arith.constant 0 : index
    %109 = vector.load %arg15[%c0_90, %c0_91] : memref<2x64xf32, #tpu.memory_space<vmem>>, vector<2x64xf32>
    tpu.vector_store %arg15[%c0_90, %c0_91], %108 {strides = array<i32>} : memref<2x64xf32, #tpu.memory_space<vmem>>, vector<2x64xf32>,
    %110 = vector.extract_strided_slice %108 {offsets = [0, 0], sizes = [2, 32], strides = [1, 1]} : vector<2x64xf32> to vector<2x32xf32>
    %111 = vector.extract_strided_slice %108 {offsets = [0, 32], sizes = [2, 32], strides = [1, 1]} : vector<2x64xf32> to vector<2x32xf32>
    %cst_92 = arith.constant 5.000000e-01 : f32
    %112 = vector.broadcast %cst_92 : f32 to vector<2x32xf32>
    %113 = arith.mulf %112, %111 : vector<2x32xf32>
    %114 = math.exp %113 : vector<2x32xf32>
    %c0_93 = arith.constant 0 : index
    %c0_94 = arith.constant 0 : index
    %115 = vector.load %arg1[%c0_93, %c0_94] : memref<2x32xf32, #tpu.memory_space<vmem>>, vector<2x32xf32>
    %116 = arith.mulf %114, %115 : vector<2x32xf32>
    %117 = arith.addf %110, %116 : vector<2x32xf32>
    %118 = vector.extract_strided_slice %117 {offsets = [0, 0], sizes = [1, 32], strides = [1, 1]} : vector<2x32xf32> to vector<1x32xf32>
    %c8 = arith.constant 8 : index
    %c0_95 = arith.constant 0 : index
    %119 = vector.load %arg16[%c8, %c0_95] : memref<32x32xf32, #tpu.memory_space<vmem>>, vector<1x32xf32>
    tpu.vector_store %arg16[%c8, %c0_95], %118 {strides = array<i32>} : memref<32x32xf32, #tpu.memory_space<vmem>>, vector<1x32xf32>,
    %120 = vector.extract_strided_slice %117 {offsets = [1, 0], sizes = [1, 32], strides = [1, 1]} : vector<2x32xf32> to vector<1x32xf32>
    %c24 = arith.constant 24 : index
    %c0_96 = arith.constant 0 : index
    %121 = vector.load %arg16[%c24, %c0_96] : memref<32x32xf32, #tpu.memory_space<vmem>>, vector<1x32xf32>
    tpu.vector_store %arg16[%c24, %c0_96], %120 {strides = array<i32>} : memref<32x32xf32, #tpu.memory_space<vmem>>, vector<1x32xf32>,
    %c8_97 = arith.constant 8 : index
    %c0_98 = arith.constant 0 : index
    %122 = vector.load %arg16[%c8_97, %c0_98] : memref<32x32xf32, #tpu.memory_space<vmem>>, vector<24x32xf32>
    %c0_99 = arith.constant 0 : index
    %c0_100 = arith.constant 0 : index
    %c0_101 = arith.constant 0 : index
    %123 = vector.load %arg8[%c0_99, %c0_100, %c0_101] : memref<8x32x256xf32, #tpu.memory_space<vmem>>, vector<1x32x256xf32>
    %124 = vector.shape_cast %123 : vector<1x32x256xf32> to vector<32x256xf32>
    %cst_102 = arith.constant dense<0.000000e+00> : vector<24x256xf32>
    %125 = tpu.matmul %122, %124, %cst_102 {dimension_numbers = #tpu.dot_dimension_numbers<[1], [0], [0], [1], [0, 0, 1, 1], [], []>} : vector<24x32xf32>, vector<32x256xf32>, vector<24x256xf32> -> vector<24x256xf32>
    %c7_103 = arith.constant 7 : index
    %c0_104 = arith.constant 0 : index
    %126 = vector.load %arg16[%c7_103, %c0_104] : memref<32x32xf32, #tpu.memory_space<vmem>>, vector<24x32xf32>
    %c1_105 = arith.constant 1 : index
    %c0_106 = arith.constant 0 : index
    %c0_107 = arith.constant 0 : index
    %127 = vector.load %arg8[%c1_105, %c0_106, %c0_107] : memref<8x32x256xf32, #tpu.memory_space<vmem>>, vector<1x32x256xf32>
    %128 = vector.shape_cast %127 : vector<1x32x256xf32> to vector<32x256xf32>
    %cst_108 = arith.constant dense<0.000000e+00> : vector<24x256xf32>
    %129 = tpu.matmul %126, %128, %cst_108 {dimension_numbers = #tpu.dot_dimension_numbers<[1], [0], [0], [1], [0, 0, 1, 1], [], []>} : vector<24x32xf32>, vector<32x256xf32>, vector<24x256xf32> -> vector<24x256xf32>
    %130 = arith.addf %125, %129 : vector<24x256xf32>
    %c6_109 = arith.constant 6 : index
    %c0_110 = arith.constant 0 : index
    %131 = vector.load %arg16[%c6_109, %c0_110] : memref<32x32xf32, #tpu.memory_space<vmem>>, vector<24x32xf32>
    %c2_111 = arith.constant 2 : index
    %c0_112 = arith.constant 0 : index
    %c0_113 = arith.constant 0 : index
    %132 = vector.load %arg8[%c2_111, %c0_112, %c0_113] : memref<8x32x256xf32, #tpu.memory_space<vmem>>, vector<1x32x256xf32>
    %133 = vector.shape_cast %132 : vector<1x32x256xf32> to vector<32x256xf32>
    %cst_114 = arith.constant dense<0.000000e+00> : vector<24x256xf32>
    %134 = tpu.matmul %131, %133, %cst_114 {dimension_numbers = #tpu.dot_dimension_numbers<[1], [0], [0], [1], [0, 0, 1, 1], [], []>} : vector<24x32xf32>, vector<32x256xf32>, vector<24x256xf32> -> vector<24x256xf32>
    %135 = arith.addf %130, %134 : vector<24x256xf32>
    %c5_115 = arith.constant 5 : index
    %c0_116 = arith.constant 0 : index
    %136 = vector.load %arg16[%c5_115, %c0_116] : memref<32x32xf32, #tpu.memory_space<vmem>>, vector<24x32xf32>
    %c3_117 = arith.constant 3 : index
    %c0_118 = arith.constant 0 : index
    %c0_119 = arith.constant 0 : index
    %137 = vector.load %arg8[%c3_117, %c0_118, %c0_119] : memref<8x32x256xf32, #tpu.memory_space<vmem>>, vector<1x32x256xf32>
    %138 = vector.shape_cast %137 : vector<1x32x256xf32> to vector<32x256xf32>
    %cst_120 = arith.constant dense<0.000000e+00> : vector<24x256xf32>
    %139 = tpu.matmul %136, %138, %cst_120 {dimension_numbers = #tpu.dot_dimension_numbers<[1], [0], [0], [1], [0, 0, 1, 1], [], []>} : vector<24x32xf32>, vector<32x256xf32>, vector<24x256xf32> -> vector<24x256xf32>
    %140 = arith.addf %135, %139 : vector<24x256xf32>
    %c4_121 = arith.constant 4 : index
    %c0_122 = arith.constant 0 : index
    %141 = vector.load %arg16[%c4_121, %c0_122] : memref<32x32xf32, #tpu.memory_space<vmem>>, vector<24x32xf32>
    %c4_123 = arith.constant 4 : index
    %c0_124 = arith.constant 0 : index
    %c0_125 = arith.constant 0 : index
    %142 = vector.load %arg8[%c4_123, %c0_124, %c0_125] : memref<8x32x256xf32, #tpu.memory_space<vmem>>, vector<1x32x256xf32>
    %143 = vector.shape_cast %142 : vector<1x32x256xf32> to vector<32x256xf32>
    %cst_126 = arith.constant dense<0.000000e+00> : vector<24x256xf32>
    %144 = tpu.matmul %141, %143, %cst_126 {dimension_numbers = #tpu.dot_dimension_numbers<[1], [0], [0], [1], [0, 0, 1, 1], [], []>} : vector<24x32xf32>, vector<32x256xf32>, vector<24x256xf32> -> vector<24x256xf32>
    %145 = arith.addf %140, %144 : vector<24x256xf32>
    %c3_127 = arith.constant 3 : index
    %c0_128 = arith.constant 0 : index
    %146 = vector.load %arg16[%c3_127, %c0_128] : memref<32x32xf32, #tpu.memory_space<vmem>>, vector<24x32xf32>
    %c5_129 = arith.constant 5 : index
    %c0_130 = arith.constant 0 : index
    %c0_131 = arith.constant 0 : index
    %147 = vector.load %arg8[%c5_129, %c0_130, %c0_131] : memref<8x32x256xf32, #tpu.memory_space<vmem>>, vector<1x32x256xf32>
    %148 = vector.shape_cast %147 : vector<1x32x256xf32> to vector<32x256xf32>
    %cst_132 = arith.constant dense<0.000000e+00> : vector<24x256xf32>
    %149 = tpu.matmul %146, %148, %cst_132 {dimension_numbers = #tpu.dot_dimension_numbers<[1], [0], [0], [1], [0, 0, 1, 1], [], []>} : vector<24x32xf32>, vector<32x256xf32>, vector<24x256xf32> -> vector<24x256xf32>
    %150 = arith.addf %145, %149 : vector<24x256xf32>
    %c2_133 = arith.constant 2 : index
    %c0_134 = arith.constant 0 : index
    %151 = vector.load %arg16[%c2_133, %c0_134] : memref<32x32xf32, #tpu.memory_space<vmem>>, vector<24x32xf32>
    %c6_135 = arith.constant 6 : index
    %c0_136 = arith.constant 0 : index
    %c0_137 = arith.constant 0 : index
    %152 = vector.load %arg8[%c6_135, %c0_136, %c0_137] : memref<8x32x256xf32, #tpu.memory_space<vmem>>, vector<1x32x256xf32>
    %153 = vector.shape_cast %152 : vector<1x32x256xf32> to vector<32x256xf32>
    %cst_138 = arith.constant dense<0.000000e+00> : vector<24x256xf32>
    %154 = tpu.matmul %151, %153, %cst_138 {dimension_numbers = #tpu.dot_dimension_numbers<[1], [0], [0], [1], [0, 0, 1, 1], [], []>} : vector<24x32xf32>, vector<32x256xf32>, vector<24x256xf32> -> vector<24x256xf32>
    %155 = arith.addf %150, %154 : vector<24x256xf32>
    %c1_139 = arith.constant 1 : index
    %c0_140 = arith.constant 0 : index
    %156 = vector.load %arg16[%c1_139, %c0_140] : memref<32x32xf32, #tpu.memory_space<vmem>>, vector<24x32xf32>
    %c7_141 = arith.constant 7 : index
    %c0_142 = arith.constant 0 : index
    %c0_143 = arith.constant 0 : index
    %157 = vector.load %arg8[%c7_141, %c0_142, %c0_143] : memref<8x32x256xf32, #tpu.memory_space<vmem>>, vector<1x32x256xf32>
    %158 = vector.shape_cast %157 : vector<1x32x256xf32> to vector<32x256xf32>
    %cst_144 = arith.constant dense<0.000000e+00> : vector<24x256xf32>
    %159 = tpu.matmul %156, %158, %cst_144 {dimension_numbers = #tpu.dot_dimension_numbers<[1], [0], [0], [1], [0, 0, 1, 1], [], []>} : vector<24x32xf32>, vector<32x256xf32>, vector<24x256xf32> -> vector<24x256xf32>
    %160 = arith.addf %155, %159 : vector<24x256xf32>
    %c0_145 = arith.constant 0 : index
    %c0_146 = arith.constant 0 : index
    %161 = vector.load %arg9[%c0_145, %c0_146] : memref<24x256xf32, #tpu.memory_space<vmem>>, vector<24x256xf32>
    %162 = arith.addf %160, %161 : vector<24x256xf32>
    %cst_147 = arith.constant 0.000000e+00 : f32
    %163 = vector.broadcast %cst_147 : f32 to vector<24x256xf32>
    %164 = arith.maximumf %162, %163 : vector<24x256xf32>
    %c8_148 = arith.constant 8 : index
    %c0_149 = arith.constant 0 : index
    %165 = vector.load %arg17[%c8_148, %c0_149] : memref<40x256xf32, #tpu.memory_space<vmem>>, vector<24x256xf32>
    tpu.vector_store %arg17[%c8_148, %c0_149], %164 {strides = array<i32>} : memref<40x256xf32, #tpu.memory_space<vmem>>, vector<24x256xf32>,
    %c4_150 = arith.constant 4 : index
    %c0_151 = arith.constant 0 : index
    %166 = vector.load %arg17[%c4_150, %c0_151] : memref<40x256xf32, #tpu.memory_space<vmem>>, vector<32x256xf32>
    %c0_152 = arith.constant 0 : index
    %c0_153 = arith.constant 0 : index
    %c0_154 = arith.constant 0 : index
    %167 = vector.load %arg10[%c0_152, %c0_153, %c0_154] : memref<5x256x192xf32, #tpu.memory_space<vmem>>, vector<1x256x192xf32>
    %168 = vector.shape_cast %167 : vector<1x256x192xf32> to vector<256x192xf32>
    %cst_155 = arith.constant dense<0.000000e+00> : vector<32x192xf32>
    %169 = tpu.matmul %166, %168, %cst_155 {dimension_numbers = #tpu.dot_dimension_numbers<[1], [0], [0], [1], [0, 0, 1, 1], [], []>} : vector<32x256xf32>, vector<256x192xf32>, vector<32x192xf32> -> vector<32x192xf32>
    %c5_156 = arith.constant 5 : index
    %c0_157 = arith.constant 0 : index
    %170 = vector.load %arg17[%c5_156, %c0_157] : memref<40x256xf32, #tpu.memory_space<vmem>>, vector<32x256xf32>
    %c1_158 = arith.constant 1 : index
    %c0_159 = arith.constant 0 : index
    %c0_160 = arith.constant 0 : index
    %171 = vector.load %arg10[%c1_158, %c0_159, %c0_160] : memref<5x256x192xf32, #tpu.memory_space<vmem>>, vector<1x256x192xf32>
    %172 = vector.shape_cast %171 : vector<1x256x192xf32> to vector<256x192xf32>
    %cst_161 = arith.constant dense<0.000000e+00> : vector<32x192xf32>
    %173 = tpu.matmul %170, %172, %cst_161 {dimension_numbers = #tpu.dot_dimension_numbers<[1], [0], [0], [1], [0, 0, 1, 1], [], []>} : vector<32x256xf32>, vector<256x192xf32>, vector<32x192xf32> -> vector<32x192xf32>
    %174 = arith.addf %169, %173 : vector<32x192xf32>
    %c6_162 = arith.constant 6 : index
    %c0_163 = arith.constant 0 : index
    %175 = vector.load %arg17[%c6_162, %c0_163] : memref<40x256xf32, #tpu.memory_space<vmem>>, vector<32x256xf32>
    %c2_164 = arith.constant 2 : index
    %c0_165 = arith.constant 0 : index
    %c0_166 = arith.constant 0 : index
    %176 = vector.load %arg10[%c2_164, %c0_165, %c0_166] : memref<5x256x192xf32, #tpu.memory_space<vmem>>, vector<1x256x192xf32>
    %177 = vector.shape_cast %176 : vector<1x256x192xf32> to vector<256x192xf32>
    %cst_167 = arith.constant dense<0.000000e+00> : vector<32x192xf32>
    %178 = tpu.matmul %175, %177, %cst_167 {dimension_numbers = #tpu.dot_dimension_numbers<[1], [0], [0], [1], [0, 0, 1, 1], [], []>} : vector<32x256xf32>, vector<256x192xf32>, vector<32x192xf32> -> vector<32x192xf32>
    %179 = arith.addf %174, %178 : vector<32x192xf32>
    %c7_168 = arith.constant 7 : index
    %c0_169 = arith.constant 0 : index
    %180 = vector.load %arg17[%c7_168, %c0_169] : memref<40x256xf32, #tpu.memory_space<vmem>>, vector<32x256xf32>
    %c3_170 = arith.constant 3 : index
    %c0_171 = arith.constant 0 : index
    %c0_172 = arith.constant 0 : index
    %181 = vector.load %arg10[%c3_170, %c0_171, %c0_172] : memref<5x256x192xf32, #tpu.memory_space<vmem>>, vector<1x256x192xf32>
    %182 = vector.shape_cast %181 : vector<1x256x192xf32> to vector<256x192xf32>
    %cst_173 = arith.constant dense<0.000000e+00> : vector<32x192xf32>
    %183 = tpu.matmul %180, %182, %cst_173 {dimension_numbers = #tpu.dot_dimension_numbers<[1], [0], [0], [1], [0, 0, 1, 1], [], []>} : vector<32x256xf32>, vector<256x192xf32>, vector<32x192xf32> -> vector<32x192xf32>
    %184 = arith.addf %179, %183 : vector<32x192xf32>
    %c8_174 = arith.constant 8 : index
    %c0_175 = arith.constant 0 : index
    %185 = vector.load %arg17[%c8_174, %c0_175] : memref<40x256xf32, #tpu.memory_space<vmem>>, vector<32x256xf32>
    %c4_176 = arith.constant 4 : index
    %c0_177 = arith.constant 0 : index
    %c0_178 = arith.constant 0 : index
    %186 = vector.load %arg10[%c4_176, %c0_177, %c0_178] : memref<5x256x192xf32, #tpu.memory_space<vmem>>, vector<1x256x192xf32>
    %187 = vector.shape_cast %186 : vector<1x256x192xf32> to vector<256x192xf32>
    %cst_179 = arith.constant dense<0.000000e+00> : vector<32x192xf32>
    %188 = tpu.matmul %185, %187, %cst_179 {dimension_numbers = #tpu.dot_dimension_numbers<[1], [0], [0], [1], [0, 0, 1, 1], [], []>} : vector<32x256xf32>, vector<256x192xf32>, vector<32x192xf32> -> vector<32x192xf32>
    %189 = arith.addf %184, %188 : vector<32x192xf32>
    %c0_180 = arith.constant 0 : index
    %c0_181 = arith.constant 0 : index
    %190 = vector.load %arg11[%c0_180, %c0_181] : memref<32x192xf32, #tpu.memory_space<vmem>>, vector<32x192xf32>
    %191 = arith.addf %189, %190 : vector<32x192xf32>
    %cst_182 = arith.constant 0.000000e+00 : f32
    %192 = vector.broadcast %cst_182 : f32 to vector<32x192xf32>
    %193 = arith.maximumf %191, %192 : vector<32x192xf32>
    %c8_183 = arith.constant 8 : index
    %c0_184 = arith.constant 0 : index
    %194 = vector.load %arg18[%c8_183, %c0_184] : memref<40x192xf32, #tpu.memory_space<vmem>>, vector<32x192xf32>
    tpu.vector_store %arg18[%c8_183, %c0_184], %193 {strides = array<i32>} : memref<40x192xf32, #tpu.memory_space<vmem>>, vector<32x192xf32>,
    %c4_185 = arith.constant 4 : index
    %c0_186 = arith.constant 0 : index
    %195 = vector.load %arg18[%c4_185, %c0_186] : memref<40x192xf32, #tpu.memory_space<vmem>>, vector<32x192xf32>
    %c0_187 = arith.constant 0 : index
    %c0_188 = arith.constant 0 : index
    %c0_189 = arith.constant 0 : index
    %196 = vector.load %arg12[%c0_187, %c0_188, %c0_189] : memref<5x192x16xf32, #tpu.memory_space<vmem>>, vector<1x192x16xf32>
    %197 = vector.shape_cast %196 : vector<1x192x16xf32> to vector<192x16xf32>
    %cst_190 = arith.constant dense<0.000000e+00> : vector<32x16xf32>
    %198 = tpu.matmul %195, %197, %cst_190 {dimension_numbers = #tpu.dot_dimension_numbers<[1], [0], [0], [1], [0, 0, 1, 1], [], []>} : vector<32x192xf32>, vector<192x16xf32>, vector<32x16xf32> -> vector<32x16xf32>
    %c5_191 = arith.constant 5 : index
    %c0_192 = arith.constant 0 : index
    %199 = vector.load %arg18[%c5_191, %c0_192] : memref<40x192xf32, #tpu.memory_space<vmem>>, vector<32x192xf32>
    %c1_193 = arith.constant 1 : index
    %c0_194 = arith.constant 0 : index
    %c0_195 = arith.constant 0 : index
    %200 = vector.load %arg12[%c1_193, %c0_194, %c0_195] : memref<5x192x16xf32, #tpu.memory_space<vmem>>, vector<1x192x16xf32>
    %201 = vector.shape_cast %200 : vector<1x192x16xf32> to vector<192x16xf32>
    %cst_196 = arith.constant dense<0.000000e+00> : vector<32x16xf32>
    %202 = tpu.matmul %199, %201, %cst_196 {dimension_numbers = #tpu.dot_dimension_numbers<[1], [0], [0], [1], [0, 0, 1, 1], [], []>} : vector<32x192xf32>, vector<192x16xf32>, vector<32x16xf32> -> vector<32x16xf32>
    %203 = arith.addf %198, %202 : vector<32x16xf32>
    %c6_197 = arith.constant 6 : index
    %c0_198 = arith.constant 0 : index
    %204 = vector.load %arg18[%c6_197, %c0_198] : memref<40x192xf32, #tpu.memory_space<vmem>>, vector<32x192xf32>
    %c2_199 = arith.constant 2 : index
    %c0_200 = arith.constant 0 : index
    %c0_201 = arith.constant 0 : index
    %205 = vector.load %arg12[%c2_199, %c0_200, %c0_201] : memref<5x192x16xf32, #tpu.memory_space<vmem>>, vector<1x192x16xf32>
    %206 = vector.shape_cast %205 : vector<1x192x16xf32> to vector<192x16xf32>
    %cst_202 = arith.constant dense<0.000000e+00> : vector<32x16xf32>
    %207 = tpu.matmul %204, %206, %cst_202 {dimension_numbers = #tpu.dot_dimension_numbers<[1], [0], [0], [1], [0, 0, 1, 1], [], []>} : vector<32x192xf32>, vector<192x16xf32>, vector<32x16xf32> -> vector<32x16xf32>
    %208 = arith.addf %203, %207 : vector<32x16xf32>
    %c7_203 = arith.constant 7 : index
    %c0_204 = arith.constant 0 : index
    %209 = vector.load %arg18[%c7_203, %c0_204] : memref<40x192xf32, #tpu.memory_space<vmem>>, vector<32x192xf32>
    %c3_205 = arith.constant 3 : index
    %c0_206 = arith.constant 0 : index
    %c0_207 = arith.constant 0 : index
    %210 = vector.load %arg12[%c3_205, %c0_206, %c0_207] : memref<5x192x16xf32, #tpu.memory_space<vmem>>, vector<1x192x16xf32>
    %211 = vector.shape_cast %210 : vector<1x192x16xf32> to vector<192x16xf32>
    %cst_208 = arith.constant dense<0.000000e+00> : vector<32x16xf32>
    %212 = tpu.matmul %209, %211, %cst_208 {dimension_numbers = #tpu.dot_dimension_numbers<[1], [0], [0], [1], [0, 0, 1, 1], [], []>} : vector<32x192xf32>, vector<192x16xf32>, vector<32x16xf32> -> vector<32x16xf32>
    %213 = arith.addf %208, %212 : vector<32x16xf32>
    %c8_209 = arith.constant 8 : index
    %c0_210 = arith.constant 0 : index
    %214 = vector.load %arg18[%c8_209, %c0_210] : memref<40x192xf32, #tpu.memory_space<vmem>>, vector<32x192xf32>
    %c4_211 = arith.constant 4 : index
    %c0_212 = arith.constant 0 : index
    %c0_213 = arith.constant 0 : index
    %215 = vector.load %arg12[%c4_211, %c0_212, %c0_213] : memref<5x192x16xf32, #tpu.memory_space<vmem>>, vector<1x192x16xf32>
    %216 = vector.shape_cast %215 : vector<1x192x16xf32> to vector<192x16xf32>
    %cst_214 = arith.constant dense<0.000000e+00> : vector<32x16xf32>
    %217 = tpu.matmul %214, %216, %cst_214 {dimension_numbers = #tpu.dot_dimension_numbers<[1], [0], [0], [1], [0, 0, 1, 1], [], []>} : vector<32x192xf32>, vector<192x16xf32>, vector<32x16xf32> -> vector<32x16xf32>
    %218 = arith.addf %213, %217 : vector<32x16xf32>
    %c0_215 = arith.constant 0 : index
    %c0_216 = arith.constant 0 : index
    %219 = vector.load %arg13[%c0_215, %c0_216] : memref<1x16xf32, #tpu.memory_space<vmem>>, vector<1x16xf32>
    %220 = vector.broadcast %219 : vector<1x16xf32> to vector<32x16xf32>
    %221 = arith.addf %218, %220 : vector<32x16xf32>
    %cst_217 = arith.constant 0.000000e+00 : f32
    %222 = vector.broadcast %cst_217 : f32 to vector<32x16xf32>
    %223 = arith.subf %222, %221 : vector<32x16xf32>
    %224 = math.exp %223 : vector<32x16xf32>
    %cst_218 = arith.constant 1.000000e+00 : f32
    %225 = vector.broadcast %cst_218 : f32 to vector<32x16xf32>
    %226 = arith.addf %225, %224 : vector<32x16xf32>
    %cst_219 = arith.constant 1.000000e+00 : f32
    %227 = vector.broadcast %cst_219 : f32 to vector<32x16xf32>
    %228 = arith.divf %227, %226 : vector<32x16xf32>
    %c0_220 = arith.constant 0 : index
    %c0_221 = arith.constant 0 : index
    %229 = vector.load %arg14[%c0_220, %c0_221] : memref<32x16xf32, #tpu.memory_space<vmem>>, vector<32x16xf32>
    tpu.vector_store %arg14[%c0_220, %c0_221], %228 {strides = array<i32>} : memref<32x16xf32, #tpu.memory_space<vmem>>, vector<32x16xf32>,
    return
  }
}

</mosaic_0001>

<bundles_post_ra>
// kernel: vae_forward.1
= control target key start
LH: loop header
LB: loop body
LE: loop exit
PB: predicated region body
PF: predicated region fallthrough
CT: control target
= control target key end

     0   :  { %v7728_v5 = vmov 0.0   ;;  %vm93_vm0 = vcmask 130048   ;;  %s11781_s0 = inlined_call_operand.vmem [shape: f32[40,16], index: 0, kind: input, shape index: {}]   ;;  %s11782_s1 = inlined_call_operand.vmem [shape: f32[2,32], index: 1, kind: input, shape index: {}]   ;;  %s11783_s2 = inlined_call_operand.vmem [shape: f32[5,16,192], index: 2, kind: input, shape index: {}]   ;;  %s11784_s3 = inlined_call_operand.vmem [shape: f32[1,192], index: 3, kind: input, shape index: {}]   ;;  %s11785_s4 = inlined_call_operand.vmem [shape: f32[5,192,256], index: 4, kind: input, shape index: {}]   ;;  %s11786_s5 = inlined_call_operand.vmem [shape: f32[1,256], index: 5, kind: input, shape index: {}]   ;;  %s11787_s6 = inlined_call_operand.vmem [shape: f32[8,256,64], index: 6, kind: input, shape index: {}]   ;;  %s11788_s7 = inlined_call_operand.vmem [shape: f32[1,64], index: 7, kind: input, shape index: {}]   ;;  %s11789_s8 = inlined_call_operand.vmem [shape: f32[8,32,256], index: 8, kind: input, shape index: {}]   ;;  %s11790_s9 = inlined_call_operand.vmem [shape: f32[24,256], index: 9, kind: input, shape index: {}]   ;;  %s11791_s10 = inlined_call_operand.vmem [shape: f32[5,256,192], index: 10, kind: input, shape index: {}]   ;;  %s11792_s11 = inlined_call_operand.vmem [shape: f32[32,192], index: 11, kind: input, shape index: {}]   ;;  %s11793_s12 = inlined_call_operand.vmem [shape: f32[5,192,16], index: 12, kind: input, shape index: {}]   ;;  %s11794_s13 = inlined_call_operand.vmem [shape: f32[1,16], index: 13, kind: input, shape index: {}]   ;;  %s11795_s14 = inlined_call_operand.hbm [shape: f32[32,16], index: 14, kind: output, shape index: {0}]   ;;  %s11796_s15 = inlined_call_operand.vmem [shape: f32[2,64], index: 15, kind: output, shape index: {1}]  }
   0x1   :  { %v5212_v0 = vld [vmem:[%s11783_s2 + $0x28] sm:$0xff]  ;;  %v5214_v1 = vld [vmem:[%s11783_s2 + $0x38] sm:$0xff]  ;;  %v5211_v2 = vld [vmem:[%s11783_s2 + $0x20] sm:$0xff]  ;;  %170 = vmatprep.mubr.f32.mxu0 %v7728_v5  ;;  %55 = vst [vmem:[#allocation3] sm:$0xff] %v7728_v5 }
   0x2   :  { %v6460_v3 = vpack.c.bf16 %v5214_v1, %v5212_v0  ;;  %v5213_v4 = vld [vmem:[%s11783_s2 + $0x30] sm:$0xff]  ;;  %56 = vst [vmem:[#allocation3 + $0x8] sm:$0xff] %v7728_v5  ;;  %63 = vst [vmem:[#allocation3 + $0x40] sm:$0xff] %v7728_v5  ;;  %v81_v6 = vld [vmem:[%s11783_s2 + $0x8] sm:$0xff] }
   0x3   :  { %64 = vst [vmem:[#allocation3 + $0x48] sm:$0xff] %v7728_v5  ;;  %65 = vst [vmem:[#allocation4] sm:$0xff] %v7728_v5  ;;  %v6462_v7 = vpack.c.bf16 %v5213_v4, %v5211_v2  ;;  %v83_v8 = vld [vmem:[%s11783_s2 + $0x18] sm:$0xff]  ;;  %v80_v9 = vld [vmem:[%s11783_s2] sm:$0xff] }
   0x4   :  { %v82_v10 = vld [vmem:[%s11783_s2 + $0x10] sm:$0xff]  ;;  %6461 = vmatprep.subr.bf16.mxu0 %v6460_v3  ;;  %v6464_v11 = vpack.c.bf16 %v83_v8, %v81_v6  ;;  %v84_v12 = vld [vmem:[%s11781_s0 + $0x1] sm:$0xff]  ;;  %v5226_v15 = vld [vmem:[%s11783_s2 + $0x58] sm:$0xff] }
   0x5   :  { %6463 = vmatpush1.bf16.msra.mxu0 %v6462_v7  ;;  %v6466_v13 = vpack.c.bf16 %v82_v10, %v80_v9  ;;  %v5224_v14 = vld [vmem:[%s11783_s2 + $0x48] sm:$0xff]  ;;  %v86_v18 = vld [vmem:[%s11781_s0 + $0x11] sm:$0xff]  ;;  %v5247_v22 = vld [vmem:[%s11785_s4 + $0x180] sm:$0xff] }
   0x6   :  { %6465 = vmatprep.subr.bf16.mxu0 %v6464_v11  ;;  %v6468_v16 = vpack.c.bf16 %v5226_v15, %v5224_v14  ;;  %v85_v17 = vld [vmem:[%s11781_s0 + $0x9] sm:$0xff]  ;;  %v5250_v20 = vld [vmem:[%s11785_s4 + $0x198] sm:$0xff]  ;;  %v5251_v27 = vld [vmem:[%s11785_s4 + $0x1a0] sm:$0xff] }
   0x7   :  { %v5248_v19 = vld [vmem:[%s11785_s4 + $0x188] sm:$0xff]  ;;  %v5249_v23 = vld [vmem:[%s11785_s4 + $0x190] sm:$0xff]  ;;  %v5254_v26 = vld [vmem:[%s11785_s4 + $0x1b8] sm:$0xff] }
   0x8   :  { %5215 = vmatmul.mubr.msk.f32.vlgmr.msra.gmra.mrb[0].mxu0 %vm93_vm0, %v84_v12  ;;  %v6480_v21 = vpack.c.bf16 %v5250_v20, %v5248_v19  ;;  %v5252_v24 = vld [vmem:[%s11785_s4 + $0x1a8] sm:$0xff]  ;;  %v6482_v25 = vpack.c.bf16 %v5249_v23, %v5247_v22  ;;  %v5253_v28 = vld [vmem:[%s11785_s4 + $0x1b0] sm:$0xff]  ;;  %v87_v29 = vld [vmem:[%s11781_s0 + $0x19] sm:$0xff] }
   0x9   :  { %6467 = vmatpush1.bf16.msra.mxu0 %v6466_v13  ;;  %176 = vmatprep.mubr.f32.mxu0 %v7728_v5  ;;  %v6484_v30 = vpack.c.bf16 %v5254_v26, %v5252_v24  ;;  %v5256_v31 = vld [vmem:[%s11785_s4 + $0x1c8] sm:$0xff]  ;;  %v5258_v32 = vld [vmem:[%s11785_s4 + $0x1d8] sm:$0xff]  ;;  %v5223_v33 = vld [vmem:[%s11783_s2 + $0x40] sm:$0xff]  ;;  %v6486_v36 = vpack.c.bf16 %v5253_v28, %v5251_v27 }
   0xa   :  { %6469 = vmatprep.subr.bf16.mxu0 %v6468_v16  ;;  %6481 = vmatprep.subr.bf16.mxu1 %v6480_v21  ;;  %v5225_v34 = vld [vmem:[%s11783_s2 + $0x50] sm:$0xff]  ;;  %v5232_v35 = vld [vmem:[%s11783_s2 + $0x68] sm:$0xff]  ;;  %v5234_v37 = vld [vmem:[%s11783_s2 + $0x78] sm:$0xff]  ;;  %v6488_v38 = vpack.c.bf16 %v5258_v32, %v5256_v31 }
   0xb   :  { %6483 = vmatpush1.bf16.msra.mxu1 %v6482_v25  ;;  %v5255_v39 = vld [vmem:[%s11785_s4 + $0x1c0] sm:$0xff]  ;;  %v5257_v40 = vld [vmem:[%s11785_s4 + $0x1d0] sm:$0xff]  ;;  %v5260_v41 = vld [vmem:[%s11785_s4 + $0x1e8] sm:$0xff]  ;;  %v6470_v44 = vpack.c.bf16 %v5225_v34, %v5223_v33  ;;  %v6472_v45 = vpack.c.bf16 %v5234_v37, %v5232_v35 }
   0xc   :  { %5216 = vmatmul.mubr.msk.f32.gmra.mrb[2].mxu0 %vm93_vm0, %v85_v17  ;;  %6485 = vmatprep.subr.bf16.mxu1 %v6484_v30  ;;  %v5262_v42 = vld [vmem:[%s11785_s4 + $0x1f8] sm:$0xff]  ;;  %v76_v43 = vld [vmem:[%s11781_s0] sm:$0xff]  ;;  %v6490_v46 = vpack.c.bf16 %v5257_v40, %v5255_v39  ;;  %v5261_v49 = vld [vmem:[%s11785_s4 + $0x1f0] sm:$0xff] }
   0xd   :  { %182 = vmatprep.mubr.f32.mxu0 %v7728_v5  ;;  %v6492_v47 = vpack.c.bf16 %v5262_v42, %v5260_v41  ;;  %v5259_v48 = vld [vmem:[%s11785_s4 + $0x1e0] sm:$0xff]  ;;  %v5264_v50 = vld [vmem:[%s11785_s4 + $0x208] sm:$0xff]  ;;  %v5266_v51 = vld [vmem:[%s11785_s4 + $0x218] sm:$0xff] }
   0xe   :  { %v77_v52 = vld [vmem:[%s11781_s0 + $0x8] sm:$0xff]  ;;  %v6494_v53 = vpack.c.bf16 %v5261_v49, %v5259_v48 }
   0xf   :  { %6487 = vmatpush1.bf16.msra.mxu1 %v6486_v36 }
  0x10   :  { %5217 = vmatmul.mubr.msk.f32.gmra.mrb[4].mxu0 %vm93_vm0, %v86_v18  ;;  %6489 = vmatprep.subr.bf16.mxu1 %v6488_v38 }
  0x11   :  { %188 = vmatprep.mubr.f32.mxu0 %v7728_v5 }
  0x13   :  { %6491 = vmatpush1.bf16.msra.mxu1 %v6490_v46 }
  0x14   :  { %5218 = vmatmul.mubr.msk.f32.gmra.mrb[6].mxu0 %vm93_vm0, %v87_v29 }
  0x15   :  { %271 = vmatprep.mubr.f32.mxu0 %v7728_v5 }
  0x18   :  { %5219 = vmatmul.mubr.msk.f32.vlgmr.msra.gmra.mrb[0].mxu0 %vm93_vm0, %v76_v43 }
  0x19   :  { %6471 = vmatpush1.bf16.msra.mxu0 %v6470_v44  ;;  %277 = vmatprep.mubr.f32.mxu0 %v7728_v5 }
  0x1a   :  { %6473 = vmatprep.subr.bf16.mxu0 %v6472_v45 }
  0x1b   :  { %21 = vsyncpa [#allocation6], 0  ;;  %6493 = vmatprep.subr.bf16.mxu1 %v6492_v47  ;;  %v6496_v54 = vpack.c.bf16 %v5266_v51, %v5264_v50  ;;  %v5263_v55 = vld [vmem:[%s11785_s4 + $0x200] sm:$0xff]  ;;  %v5265_v56 = vld [vmem:[%s11785_s4 + $0x210] sm:$0xff]  ;;  %vm66_vm1 = vcmask 523264   ;;  %vm783_vm2 = vcmask 1046528  }
  0x1c   :  { %5220 = vmatmul.mubr.msk.f32.gmra.mrb[2].mxu0 %vm93_vm0, %v77_v52  ;;  %v5268_v57 = vld [vmem:[%s11785_s4 + $0x228] sm:$0xff]  ;;  %v5270_v58 = vld [vmem:[%s11785_s4 + $0x238] sm:$0xff]  ;;  %v78_v59 = vld [vmem:[%s11781_s0 + $0x10] sm:$0xff]  ;;  %6495 = vmatpush1.bf16.msra.mxu1 %v6494_v53  ;;  %v6498_v60 = vpack.c.bf16 %v5265_v56, %v5263_v55  ;;  %67 = vst.msk [vmem:[#allocation4 + $0x8] sm:$0xff] %vm66_vm1, %v7728_v5  ;;  %vm1028_vm3 = vcmask 1045504   ;;  %vm1190_vm4 = vcmask 1044480  }
  0x1d   :  { %283 = vmatprep.mubr.f32.mxu0 %v7728_v5  ;;  %6497 = vmatprep.subr.bf16.mxu1 %v6496_v54  ;;  %v6500_v61 = vpack.c.bf16 %v5270_v58, %v5268_v57  ;;  %v5267_v62 = vld [vmem:[%s11785_s4 + $0x220] sm:$0xff]  ;;  %v5269_v63 = vld [vmem:[%s11785_s4 + $0x230] sm:$0xff]  ;;  %v5272_v0 = vld [vmem:[%s11785_s4 + $0x248] sm:$0xff]  ;;  %69 = vst.msk [vmem:[#allocation4 + $0x18] sm:$0xff] %vm66_vm1, %v7728_v5  ;;  %vm1352_vm5 = vcmask 1043456   ;;  %vm2288_vm6 = vcmask 1041408  }
  0x1e   :  { %v5274_v1 = vld [vmem:[%s11785_s4 + $0x258] sm:$0xff]  ;;  %v5231_v3 = vld [vmem:[%s11783_s2 + $0x60] sm:$0xff]  ;;  %v5233_v4 = vld [vmem:[%s11783_s2 + $0x70] sm:$0xff]  ;;  %v6502_v7 = vpack.c.bf16 %v5269_v63, %v5267_v62  ;;  %71 = vst.msk [vmem:[#allocation4 + $0x28] sm:$0xff] %vm66_vm1, %v7728_v5  ;;  %v652_v63 = vlaneseq  ;;  %vm2157_vm7 = vcmask 1042432   ;;  %vm2419_vm8 = vcmask 1040384  }
  0x1f   :  { %v79_v2 = vld [vmem:[%s11781_s0 + $0x18] sm:$0xff]  ;;  %v5240_v6 = vld [vmem:[%s11783_s2 + $0x88] sm:$0xff]  ;;  %v6504_v9 = vpack.c.bf16 %v5274_v1, %v5272_v0  ;;  %v5271_v10 = vld [vmem:[%s11785_s4 + $0x240] sm:$0xff]  ;;  %v6474_v15 = vpack.c.bf16 %v5233_v4, %v5231_v3  ;;  %73 = vst.msk [vmem:[#allocation4 + $0x38] sm:$0xff] %vm66_vm1, %v7728_v5  ;;  %s7729_s21 = smov 32   ;;  %vm2530_vm9 = vcmask 517120  }
  0x20   :  { %5221 = vmatmul.mubr.msk.f32.gmra.mrb[4].mxu0 %vm93_vm0, %v78_v59  ;;  %6499 = vmatpush1.bf16.msra.mxu1 %v6498_v60  ;;  %v5242_v8 = vld [vmem:[%s11783_s2 + $0x98] sm:$0xff]  ;;  %v5273_v11 = vld [vmem:[%s11785_s4 + $0x250] sm:$0xff]  ;;  %v5276_v12 = vld [vmem:[%s11785_s4 + $0x268] sm:$0xff]  ;;  %75 = vst.msk [vmem:[#allocation4 + $0x48] sm:$0xff] %vm66_vm1, %v7728_v5  ;;  %v8140_v0 = vshrl.u32 %v652_v63, 7  ;;  %vm50_vm10 = vcmask 261120  }
  0x21   :  { %289 = vmatprep.mubr.f32.mxu0 %v7728_v5  ;;  %6501 = vmatprep.subr.bf16.mxu1 %v6500_v61  ;;  %v5278_v13 = vld [vmem:[%s11785_s4 + $0x278] sm:$0xff]  ;;  %v296_v14 = vld [vmem:[%s11781_s0 + $0x2] sm:$0xff]  ;;  %v6476_v16 = vpack.c.bf16 %v5242_v8, %v5240_v6  ;;  %v6506_v17 = vpack.c.bf16 %v5273_v11, %v5271_v10  ;;  %v5277_v20 = vld [vmem:[%s11785_s4 + $0x270] sm:$0xff]  ;;  %vm2546_vm11 = vcmask 253952   ;;  %vm2548_vm12 = vcmask 254977  }
  0x22   :  { %v6508_v18 = vpack.c.bf16 %v5278_v13, %v5276_v12  ;;  %v5275_v19 = vld [vmem:[%s11785_s4 + $0x260] sm:$0xff]  ;;  %v5280_v21 = vld [vmem:[%s11785_s4 + $0x288] sm:$0xff]  ;;  %v5282_v22 = vld [vmem:[%s11785_s4 + $0x298] sm:$0xff]  ;;  %v654_v1 = vsub.s32 0, %v8140_v0  ;;  %v658_v3 = vsub.s32 1, %v8140_v0 }
  0x23   :  { %v297_v23 = vld [vmem:[%s11781_s0 + $0xa] sm:$0xff]  ;;  %v6510_v24 = vpack.c.bf16 %v5277_v20, %v5275_v19  ;;  %v6512_v25 = vpack.c.bf16 %v5282_v22, %v5280_v21  ;;  %v5279_v26 = vld [vmem:[%s11785_s4 + $0x280] sm:$0xff]  ;;  %v298_v28 = vld [vmem:[%s11781_s0 + $0x12] sm:$0xff] }
  0x24   :  { %5222 = vmatmul.mubr.msk.f32.gmra.mrb[6].mxu0 %vm93_vm0, %v79_v2  ;;  %6503 = vmatpush1.bf16.msra.mxu1 %v6502_v7  ;;  %v5281_v27 = vld [vmem:[%s11785_s4 + $0x290] sm:$0xff]  ;;  %v299_v30 = vld [vmem:[%s11781_s0 + $0x1a] sm:$0xff]  ;;  %v414_v33 = vld [vmem:[%s11781_s0 + $0x3] sm:$0xff] }
  0x25   :  { %381 = vmatprep.mubr.f32.mxu0 %v7728_v5  ;;  %6505 = vmatprep.subr.bf16.mxu1 %v6504_v9  ;;  %v6514_v29 = vpack.c.bf16 %v5281_v27, %v5279_v26  ;;  %v5239_v31 = vld [vmem:[%s11783_s2 + $0x80] sm:$0xff]  ;;  %v5241_v32 = vld [vmem:[%s11783_s2 + $0x90] sm:$0xff]  ;;  %v5284_v42 = vld [vmem:[%s11785_s4 + $0x2a8] sm:$0xff] }
  0x26   :  { %v6478_v34 = vpack.c.bf16 %v5241_v32, %v5239_v31  ;;  %v415_v35 = vld [vmem:[%s11781_s0 + $0xb] sm:$0xff]  ;;  %v416_v36 = vld [vmem:[%s11781_s0 + $0x13] sm:$0xff]  ;;  %v417_v37 = vld [vmem:[%s11781_s0 + $0x1b] sm:$0xff] }
  0x27   :  { %v532_v38 = vld [vmem:[%s11781_s0 + $0x4] sm:$0xff]  ;;  %v533_v39 = vld [vmem:[%s11781_s0 + $0xc] sm:$0xff]  ;;  %v534_v40 = vld [vmem:[%s11781_s0 + $0x14] sm:$0xff] }
  0x28   :  { %5227 = vmatmul.mubr.msk.f32.vlgmr.msra.gmra.mrb[0].mxu0 %vm93_vm0, %v296_v14  ;;  %6507 = vmatpush1.bf16.msra.mxu1 %v6506_v17  ;;  %v535_v41 = vld [vmem:[%s11781_s0 + $0x1c] sm:$0xff]  ;;  %v5285_v46 = vld [vmem:[%s11785_s4 + $0x2b0] sm:$0xff]  ;;  %v5288_v48 = vld [vmem:[%s11785_s4 + $0x2c8] sm:$0xff] }
  0x29   :  { %6475 = vmatpush1.bf16.msra.mxu0 %v6474_v15  ;;  %387 = vmatprep.mubr.f32.mxu0 %v7728_v5  ;;  %v5286_v43 = vld [vmem:[%s11785_s4 + $0x2b8] sm:$0xff]  ;;  %v5283_v45 = vld [vmem:[%s11785_s4 + $0x2a0] sm:$0xff]  ;;  %v5289_v52 = vld [vmem:[%s11785_s4 + $0x2d0] sm:$0xff] }
  0x2a   :  { %6477 = vmatprep.subr.bf16.mxu0 %v6476_v16  ;;  %6509 = vmatprep.subr.bf16.mxu1 %v6508_v18  ;;  %v6516_v44 = vpack.c.bf16 %v5286_v43, %v5284_v42  ;;  %v6518_v47 = vpack.c.bf16 %v5285_v46, %v5283_v45  ;;  %v5290_v49 = vld [vmem:[%s11785_s4 + $0x2d8] sm:$0xff]  ;;  %v5287_v51 = vld [vmem:[%s11785_s4 + $0x2c0] sm:$0xff]  ;;  %v5292_v54 = vld [vmem:[%s11785_s4 + $0x2e8] sm:$0xff] }
  0x2b   :  { %v6520_v50 = vpack.c.bf16 %v5290_v49, %v5288_v48  ;;  %v6522_v53 = vpack.c.bf16 %v5289_v52, %v5287_v51  ;;  %v5294_v55 = vld [vmem:[%s11785_s4 + $0x2f8] sm:$0xff]  ;;  %v5291_v57 = vld [vmem:[%s11785_s4 + $0x2e0] sm:$0xff]  ;;  %v5293_v58 = vld [vmem:[%s11785_s4 + $0x2f0] sm:$0xff] }
  0x2c   :  { %5228 = vmatmul.mubr.msk.f32.gmra.mrb[2].mxu0 %vm93_vm0, %v297_v23  ;;  %6511 = vmatpush1.bf16.msra.mxu1 %v6510_v24  ;;  %v6524_v56 = vpack.c.bf16 %v5294_v55, %v5292_v54  ;;  %v6526_v59 = vpack.c.bf16 %v5293_v58, %v5291_v57  ;;  %v679_v60 = vld [vmem:[%s11785_s4 + $0x8] sm:$0xff]  ;;  %v681_v61 = vld [vmem:[%s11785_s4 + $0x18] sm:$0xff]  ;;  %v650_v2 = vld [vmem:[%s11784_s3] sm:$0x3] }
  0x2d   :  { %393 = vmatprep.mubr.f32.mxu0 %v7728_v5  ;;  %6513 = vmatprep.subr.bf16.mxu1 %v6512_v25  ;;  %v6528_v62 = vpack.c.bf16 %v681_v61, %v679_v60  ;;  %v655_v4 = vrot.slane %v650_v2, %v654_v1  ;;  %v659_v6 = vrot.slane %v650_v2, %v658_v3  ;;  %v678_v11 = vld [vmem:[%s11785_s4] sm:$0xff]  ;;  %v680_v12 = vld [vmem:[%s11785_s4 + $0x10] sm:$0xff]  ;;  %v8162_v13 = vld [vmem:[%s11785_s4 + $0x28] sm:$0xff] }
  0x2e   :  { %v8169_v16 = vld [vmem:[%s11785_s4 + $0x38] sm:$0xff]  ;;  %v8174_v17 = vld [vmem:[%s11785_s4 + $0x20] sm:$0xff]  ;;  %v8179_v18 = vld [vmem:[%s11785_s4 + $0x30] sm:$0xff]  ;;  %v6530_v22 = vpack.c.bf16 %v680_v12, %v678_v11 }
  0x2f   :  { %v6532_v25 = vpack.c.bf16 %v8169_v16, %v8162_v13  ;;  %v6534_v26 = vpack.c.bf16 %v8179_v18, %v8174_v17  ;;  %v687_v43 = vld [vmem:[%s11785_s4 + $0x48] sm:$0xff]  ;;  %v686_v55 = vld [vmem:[%s11785_s4 + $0x40] sm:$0xff]  ;;  %v693_v63 = vld [vmem:[%s11785_s4 + $0x78] sm:$0xff] }
  0x30   :  { %5229 = vmatmul.mubr.msk.f32.gmra.mrb[4].mxu0 %vm93_vm0, %v298_v28  ;;  %6515 = vmatpush1.bf16.msra.mxu1 %v6514_v29  ;;  %v9087_v0 = vld [vmem:[%s11787_s6 + $0x98] sm:$0xff] }
  0x31   :  { %399 = vmatprep.mubr.f32.mxu0 %v7728_v5  ;;  %6517 = vmatprep.subr.bf16.mxu1 %v6516_v44  ;;  %v689_v44 = vld [vmem:[%s11785_s4 + $0x58] sm:$0xff] }
  0x32   :  { %v6536_v61 = vpack.c.bf16 %v689_v44, %v687_v43 }
  0x34   :  { %5230 = vmatmul.mubr.msk.f32.gmra.mrb[6].mxu0 %vm93_vm0, %v299_v30  ;;  %6519 = vmatpush1.bf16.msra.mxu1 %v6518_v47 }
  0x35   :  { %499 = vmatprep.mubr.f32.mxu0 %v7728_v5  ;;  %6521 = vmatprep.subr.bf16.mxu1 %v6520_v50 }
  0x38   :  { %5235 = vmatmul.mubr.msk.f32.vlgmr.msra.gmra.mrb[0].mxu0 %vm93_vm0, %v414_v33  ;;  %6523 = vmatpush1.bf16.msra.mxu1 %v6522_v53 }
  0x39   :  { %6479 = vmatpush1.bf16.msra.mxu0 %v6478_v34  ;;  %505 = vmatprep.mubr.f32.mxu0 %v7728_v5 }
  0x3a   :  { %6525 = vmatprep.subr.bf16.mxu1 %v6524_v56  ;;  %v688_v56 = vld [vmem:[%s11785_s4 + $0x50] sm:$0xff] }
  0x3b   :  { %v6538_v11 = vpack.c.bf16 %v688_v56, %v686_v55 }
  0x3c   :  { %5236 = vmatmul.mubr.msk.f32.gmra.mrb[2].mxu0 %vm93_vm0, %v415_v35  ;;  %6527 = vmatpush1.bf16.msra.mxu1 %v6526_v59 }
  0x3d   :  { %511 = vmatprep.mubr.f32.mxu0 %v7728_v5  ;;  %6529 = vmatprep.subr.bf16.mxu1 %v6528_v62  ;;  %v691_v62 = vld [vmem:[%s11785_s4 + $0x68] sm:$0xff] }
  0x40   :  { %5237 = vmatmul.mubr.msk.f32.gmra.mrb[4].mxu0 %vm93_vm0, %v416_v36 }
  0x41   :  { %517 = vmatprep.mubr.f32.mxu0 %v7728_v5 }
  0x44   :  { %5238 = vmatmul.mubr.msk.f32.gmra.mrb[6].mxu0 %vm93_vm0, %v417_v37 }
  0x45   :  { %617 = vmatprep.mubr.f32.mxu0 %v7728_v5 }
  0x48   :  { %5243 = vmatmul.mubr.msk.f32.vlgmr.msra.gmra.mrb[0].mxu0 %vm93_vm0, %v532_v38 }
  0x49   :  { %623 = vmatprep.mubr.f32.mxu0 %v7728_v5 }
  0x4c   :  { %5244 = vmatmul.mubr.msk.f32.gmra.mrb[2].mxu0 %vm93_vm0, %v533_v39 }
  0x4d   :  { %629 = vmatprep.mubr.f32.mxu0 %v7728_v5 }
  0x50   :  { %5245 = vmatmul.mubr.msk.f32.gmra.mrb[4].mxu0 %vm93_vm0, %v534_v40 }
  0x51   :  { %635 = vmatprep.mubr.f32.mxu0 %v7728_v5 }
  0x54   :  { %5246 = vmatmul.mubr.msk.f32.gmra.mrb[6].mxu0 %vm93_vm0, %v535_v41 }
 0x11b   :  { %v619_v7 = vpop.f32.mrb[0].mxu0 }
 0x11c   :  { %v662_v5 = vadd.f32 %v655_v4, %v619_v7  ;;  %v621_v8 = vpop.f32.mrb[1].mxu0 }
 0x11d   :  { %v663_v9 = vadd.f32 %v659_v6, %v621_v8 }
 0x11e   :  { %v8151_v10 = vmax.f32 %v662_v5, 0.0 }
 0x11f   :  { %v8164_v14 = vmax.f32 %v663_v9, 0.0  ;;  %v625_v15 = vpop.f32.mrb[2].mxu0 }
 0x120   :  { %v664_v19 = vadd.f32 %v655_v4, %v625_v15  ;;  %v627_v20 = vpop.f32.mrb[3].mxu0  ;;  %v784_v24 = vrot.slane %v8151_v10, 1  ;;  %v1029_v31 = vrot.slane %v8151_v10, 2  ;;  %v1191_v58 = vrot.slane %v8151_v10, 3 }
 0x121   :  { %v665_v21 = vadd.f32 %v659_v6, %v627_v20  ;;  %v787_v29 = vrot.slane %v8164_v14, 1  ;;  %v1032_v30 = vrot.slane %v8164_v14, 2  ;;  %v1194_v36 = vrot.slane %v8164_v14, 3 }
 0x122   :  { %v8181_v23 = vmax.f32 %v664_v19, 0.0  ;;  %v6540_v15 = vpack.c.bf16 %v693_v63, %v691_v62  ;;  %v698_v63 = vld [vmem:[%s11785_s4 + $0xa0] sm:$0xff] }
 0x123   :  { %v8188_v27 = vmax.f32 %v665_v21, 0.0  ;;  %v631_v28 = vpop.f32.mrb[4].mxu0 }
 0x124   :  { %v666_v32 = vadd.f32 %v655_v4, %v631_v28  ;;  %v633_v33 = vpop.f32.mrb[5].mxu0  ;;  %v785_v34 = vrot.slane %v8181_v23, 1  ;;  %v1030_v35 = vrot.slane %v8181_v23, 2  ;;  %v1192_v46 = vrot.slane %v8181_v23, 3 }
 0x125   :  { %v667_v37 = vadd.f32 %v659_v6, %v633_v33  ;;  %v788_v38 = vrot.slane %v8188_v27, 1  ;;  %v1033_v39 = vrot.slane %v8188_v27, 2  ;;  %v1195_v40 = vrot.slane %v8188_v27, 3 }
 0x126   :  { %v8199_v41 = vmax.f32 %v666_v32, 0.0  ;;  %v786_v42 = vsel %vm783_vm2, %v784_v24, %v785_v34  ;;  %v8209_v45 = vsel %vm1028_vm3, %v1029_v31, %v1030_v35  ;;  %v8244_v5 = vsel %vm1190_vm4, %v1191_v58, %v1192_v46  ;;  %v701_v58 = vld [vmem:[%s11785_s4 + $0xb8] sm:$0xff] }
 0x127   :  { %v8212_v47 = vmax.f32 %v667_v37, 0.0  ;;  %v637_v48 = vpop.f32.mrb[6].mxu0  ;;  %v789_v49 = vsel %vm783_vm2, %v787_v29, %v788_v38  ;;  %v8216_v50 = vsel %vm1028_vm3, %v1032_v30, %v1033_v39  ;;  %v8219_v51 = vsel %vm1190_vm4, %v1194_v36, %v1195_v40  ;;  %v690_v30 = vld [vmem:[%s11785_s4 + $0x60] sm:$0xff] }
 0x128   :  { %v668_v52 = vadd.f32 %v655_v4, %v637_v48  ;;  %v639_v53 = vpop.f32.mrb[7].mxu0  ;;  %5295 = vmatprep.mubr.msk.f32.mxu1 %vm66_vm1, %v789_v49  ;;  %v790_v54 = vrot.slane %v8199_v41, 1  ;;  %v1035_v57 = vrot.slane %v8199_v41, 2  ;;  %v1197_v20 = vrot.slane %v8199_v41, 3 }
 0x129   :  { %v669_v59 = vadd.f32 %v659_v6, %v639_v53  ;;  %872 = vmatmul.mubr.f32.vlgmr.msra.gmra.mrb[0].mxu1 %v786_v42  ;;  %v792_v60 = vrot.slane %v8212_v47, 1  ;;  %v1037_v2 = vrot.slane %v8212_v47, 2  ;;  %v1199_v17 = vrot.slane %v8212_v47, 3  ;;  %v694_v53 = vld [vmem:[%s11785_s4 + $0x80] sm:$0xff] }
 0x12a   :  { %v676_v4 = vmax.f32 %v668_v52, 0.0  ;;  %6531 = vmatpush1.bf16.msra.mxu1 %v6530_v22  ;;  %v791_v7 = vsel %vm783_vm2, %v785_v34, %v790_v54  ;;  %v8241_v6 = vsel %vm1028_vm3, %v1030_v35, %v1035_v57  ;;  %v8271_v32 = vsel %vm1190_vm4, %v1192_v46, %v1197_v20  ;;  %v695_v34 = vld [vmem:[%s11785_s4 + $0x88] sm:$0xff]  ;;  %v697_v35 = vld [vmem:[%s11785_s4 + $0x98] sm:$0xff] }
 0x12b   :  { %v677_v8 = vmax.f32 %v669_v59, 0.0  ;;  %v793_v9 = vsel %vm783_vm2, %v788_v38, %v792_v60  ;;  %6533 = vmatprep.subr.bf16.mxu1 %v6532_v25  ;;  %v8248_v12 = vsel %vm1028_vm3, %v1033_v39, %v1037_v2  ;;  %v8258_v25 = vsel %vm1190_vm4, %v1195_v40, %v1199_v17 }
 0x12c   :  { %5296 = vmatprep.mubr.msk.f32.mxu1 %vm66_vm1, %v793_v9  ;;  %v794_v13 = vrot.slane %v676_v4, 1  ;;  %v1039_v16 = vrot.slane %v676_v4, 2  ;;  %v1201_v28 = vrot.slane %v676_v4, 3  ;;  %v1356_v33 = vrot.slane %v8164_v14, 4 }
 0x12d   :  { %878 = vmatmul.mubr.f32.gmra.mrb[2].mxu1 %v791_v7  ;;  %v796_v18 = vrot.slane %v677_v8, 1  ;;  %v1041_v19 = vrot.slane %v677_v8, 2  ;;  %v1203_v21 = vrot.slane %v677_v8, 3  ;;  %v1357_v38 = vrot.slane %v8188_v27, 4  ;;  %v705_v7 = vld [vmem:[%s11785_s4 + $0xd8] sm:$0xff] }
 0x12e   :  { %6535 = vmatpush1.bf16.msra.mxu1 %v6534_v26  ;;  %v795_v22 = vsel %vm783_vm2, %v790_v54, %v794_v13  ;;  %v8255_v24 = vsel %vm1028_vm3, %v1035_v57, %v1039_v16  ;;  %v692_v26 = vld [vmem:[%s11785_s4 + $0x70] sm:$0xff]  ;;  %v8285_v37 = vsel %vm1190_vm4, %v1197_v20, %v1201_v28  ;;  %v1353_v39 = vrot.slane %v8151_v10, 4  ;;  %v699_v57 = vld [vmem:[%s11785_s4 + $0xa8] sm:$0xff]  ;;  %v709_v16 = vld [vmem:[%s11785_s4 + $0xf8] sm:$0xff] }
 0x12f   :  { %v797_v29 = vsel %vm783_vm2, %v792_v60, %v796_v18  ;;  %6537 = vmatprep.subr.bf16.mxu1 %v6536_v61  ;;  %v8268_v31 = vsel %vm1028_vm3, %v1037_v2, %v1041_v19  ;;  %v8282_v36 = vsel %vm1190_vm4, %v1199_v17, %v1203_v21  ;;  %v1354_v40 = vrot.slane %v8181_v23, 4  ;;  %v696_v54 = vld [vmem:[%s11785_s4 + $0x90] sm:$0xff]  ;;  %v706_v19 = vld [vmem:[%s11785_s4 + $0xe0] sm:$0xff]  ;;  %v711_v21 = vld [vmem:[%s11785_s4 + $0x108] sm:$0xff] }
 0x130   :  { %5297 = vmatprep.mubr.msk.f32.mxu1 %vm66_vm1, %v797_v29  ;;  %v1361_v42 = vrot.slane %v8212_v47, 4  ;;  %v1359_v43 = vrot.slane %v8199_v41, 4  ;;  %v1365_v44 = vrot.slane %v677_v8, 4  ;;  %v6542_v46 = vpack.c.bf16 %v692_v26, %v690_v30  ;;  %v700_v2 = vld [vmem:[%s11785_s4 + $0xb0] sm:$0xff]  ;;  %v710_v30 = vld [vmem:[%s11785_s4 + $0x100] sm:$0xff] }
 0x131   :  { %884 = vmatmul.mubr.f32.gmra.mrb[4].mxu1 %v795_v22  ;;  %v8295_v48 = vsel %vm1352_vm5, %v1356_v33, %v1357_v38  ;;  %v1363_v49 = vrot.slane %v676_v4, 4  ;;  %v6544_v52 = vpack.c.bf16 %v697_v35, %v695_v34  ;;  %v8304_v55 = vsel %vm1352_vm5, %v1353_v39, %v1354_v40  ;;  %v703_v4 = vld [vmem:[%s11785_s4 + $0xc8] sm:$0xff]  ;;  %v704_v13 = vld [vmem:[%s11785_s4 + $0xd0] sm:$0xff]  ;;  %v713_v22 = vld [vmem:[%s11785_s4 + $0x118] sm:$0xff] }
 0x132   :  { %6539 = vmatpush1.bf16.msra.mxu1 %v6538_v11  ;;  %5298 = vmatprep.mubr.msk.f32.mxu1 %vm66_vm1, %v8164_v14  ;;  %v8307_v14 = vsel %vm1352_vm5, %v1357_v38, %v1361_v42  ;;  %v8310_v56 = vsel %vm1352_vm5, %v1354_v40, %v1359_v43  ;;  %v8319_v59 = vsel %vm1352_vm5, %v1361_v42, %v1365_v44  ;;  %v702_v11 = vld [vmem:[%s11785_s4 + $0xc0] sm:$0xff]  ;;  %v708_v20 = vld [vmem:[%s11785_s4 + $0xf0] sm:$0xff]  ;;  %v715_v33 = vld [vmem:[%s11785_s4 + $0x128] sm:$0xff] }
 0x133   :  { %6541 = vmatprep.subr.bf16.mxu1 %v6540_v15  ;;  %v8322_v60 = vsel %vm1352_vm5, %v1359_v43, %v1363_v49  ;;  %v6546_v61 = vpack.c.bf16 %v696_v54, %v694_v53  ;;  %v6548_v62 = vpack.c.bf16 %v701_v58, %v699_v57  ;;  %v6550_v8 = vpack.c.bf16 %v700_v2, %v698_v63  ;;  %v707_v15 = vld [vmem:[%s11785_s4 + $0xe8] sm:$0xff]  ;;  %v712_v26 = vld [vmem:[%s11785_s4 + $0x110] sm:$0xff]  ;;  %v717_v34 = vld [vmem:[%s11785_s4 + $0x138] sm:$0xff] }
 0x134   :  { %v6552_v9 = vpack.c.bf16 %v705_v7, %v703_v4  ;;  %v6554_v17 = vpack.c.bf16 %v704_v13, %v702_v11  ;;  %v6556_v18 = vpack.c.bf16 %v709_v16, %v707_v15  ;;  %v6558_v28 = vpack.c.bf16 %v708_v20, %v706_v19  ;;  %v714_v39 = vld [vmem:[%s11785_s4 + $0x120] sm:$0xff]  ;;  %v716_v40 = vld [vmem:[%s11785_s4 + $0x130] sm:$0xff]  ;;  %v719_v42 = vld [vmem:[%s11785_s4 + $0x148] sm:$0xff] }
 0x135   :  { %v6560_v29 = vpack.c.bf16 %v713_v22, %v711_v21  ;;  %v6562_v35 = vpack.c.bf16 %v712_v26, %v710_v30  ;;  %v6564_v38 = vpack.c.bf16 %v717_v34, %v715_v33  ;;  %v721_v43 = vld [vmem:[%s11785_s4 + $0x158] sm:$0xff]  ;;  %v6566_v44 = vpack.c.bf16 %v716_v40, %v714_v39  ;;  %v718_v49 = vld [vmem:[%s11785_s4 + $0x140] sm:$0xff]  ;;  %v723_v53 = vld [vmem:[%s11785_s4 + $0x168] sm:$0xff] }
 0x136   :  { %6543 = vmatpush1.bf16.msra.mxu1 %v6542_v46  ;;  %v6568_v46 = vpack.c.bf16 %v721_v43, %v719_v42  ;;  %v725_v54 = vld [vmem:[%s11785_s4 + $0x178] sm:$0xff]  ;;  %v5302_v63 = vld [vmem:[%s11785_s4 + $0x308] sm:$0xff]  ;;  %v5313_v33 = vld [vmem:[%s11785_s4 + $0x360] sm:$0xff] }
 0x137   :  { %6545 = vmatprep.subr.bf16.mxu1 %v6544_v52  ;;  %v720_v52 = vld [vmem:[%s11785_s4 + $0x150] sm:$0xff]  ;;  %v6572_v58 = vpack.c.bf16 %v725_v54, %v723_v53  ;;  %v5304_v2 = vld [vmem:[%s11785_s4 + $0x318] sm:$0xff]  ;;  %v5306_v11 = vld [vmem:[%s11785_s4 + $0x328] sm:$0xff] }
 0x138   :  { %v6570_v57 = vpack.c.bf16 %v720_v52, %v718_v49  ;;  %v6576_v7 = vpack.c.bf16 %v5304_v2, %v5302_v63  ;;  %v5308_v13 = vld [vmem:[%s11785_s4 + $0x338] sm:$0xff]  ;;  %v5310_v19 = vld [vmem:[%s11785_s4 + $0x348] sm:$0xff]  ;;  %v5315_v34 = vld [vmem:[%s11785_s4 + $0x370] sm:$0xff] }
 0x139   :  { %v6580_v16 = vpack.c.bf16 %v5308_v13, %v5306_v11  ;;  %v5312_v20 = vld [vmem:[%s11785_s4 + $0x358] sm:$0xff]  ;;  %v5314_v30 = vld [vmem:[%s11785_s4 + $0x368] sm:$0xff]  ;;  %v5317_v39 = vld [vmem:[%s11785_s4 + $0x380] sm:$0xff] }
 0x13a   :  { %6547 = vmatpush1.bf16.msra.mxu1 %v6546_v61  ;;  %v722_v61 = vld [vmem:[%s11785_s4 + $0x160] sm:$0xff]  ;;  %v6584_v22 = vpack.c.bf16 %v5312_v20, %v5310_v19  ;;  %v5319_v40 = vld [vmem:[%s11785_s4 + $0x390] sm:$0xff]  ;;  %v5322_v42 = vld [vmem:[%s11785_s4 + $0x3a8] sm:$0xff] }
 0x13b   :  { %6549 = vmatprep.subr.bf16.mxu1 %v6548_v62  ;;  %v724_v62 = vld [vmem:[%s11785_s4 + $0x170] sm:$0xff]  ;;  %v5326_v49 = vld [vmem:[%s11785_s4 + $0x3c8] sm:$0xff]  ;;  %v5328_v52 = vld [vmem:[%s11785_s4 + $0x3d8] sm:$0xff] }
 0x13c   :  { %v6574_v4 = vpack.c.bf16 %v724_v62, %v722_v61  ;;  %v6600_v54 = vpack.c.bf16 %v5328_v52, %v5326_v49  ;;  %v5330_v61 = vld [vmem:[%s11785_s4 + $0x3e8] sm:$0xff]  ;;  %v5332_v62 = vld [vmem:[%s11785_s4 + $0x3f8] sm:$0xff]  ;;  %v5470_v11 = vld [vmem:[%s11787_s6 + $0x180] sm:$0xff] }
 0x13d   :  { %v6604_v2 = vpack.c.bf16 %v5332_v62, %v5330_v61  ;;  %v5471_v13 = vld [vmem:[%s11787_s6 + $0x188] sm:$0xff]  ;;  %v5476_v49 = vld [vmem:[%s11787_s6 + $0x1b0] sm:$0xff]  ;;  %v5477_v52 = vld [vmem:[%s11787_s6 + $0x1b8] sm:$0xff] }
 0x13e   :  { %6551 = vmatpush1.bf16.msra.mxu1 %v6550_v8  ;;  %v5301_v8 = vld [vmem:[%s11785_s4 + $0x300] sm:$0xff]  ;;  %v6720_v19 = vpack.c.bf16 %v5471_v13, %v5470_v11  ;;  %v5455_v20 = vld [vmem:[%s11787_s6 + $0x108] sm:$0xff] }
 0x13f   :  { %6553 = vmatprep.subr.bf16.mxu1 %v6552_v9  ;;  %v5303_v9 = vld [vmem:[%s11785_s4 + $0x310] sm:$0xff]  ;;  %v5341_v62 = vld [vmem:[%s11785_s4 + $0x440] sm:$0xff] }
 0x140   :  { %v6578_v15 = vpack.c.bf16 %v5303_v9, %v5301_v8  ;;  %v5334_v8 = vld [vmem:[%s11785_s4 + $0x408] sm:$0xff]  ;;  %v5336_v9 = vld [vmem:[%s11785_s4 + $0x418] sm:$0xff]  ;;  %6721 = vmatprep.subr.bf16.mxu0 %v6720_v19  ;;  %v5347_v19 = vld [vmem:[%s11785_s4 + $0x470] sm:$0xff] }
 0x142   :  { %6555 = vmatpush1.bf16.msra.mxu1 %v6554_v17  ;;  %v5305_v17 = vld [vmem:[%s11785_s4 + $0x320] sm:$0xff] }
 0x143   :  { %6557 = vmatprep.subr.bf16.mxu1 %v6556_v18  ;;  %v5307_v18 = vld [vmem:[%s11785_s4 + $0x330] sm:$0xff] }
 0x144   :  { %v6582_v21 = vpack.c.bf16 %v5307_v18, %v5305_v17  ;;  %v5333_v17 = vld [vmem:[%s11785_s4 + $0x400] sm:$0xff]  ;;  %v5335_v18 = vld [vmem:[%s11785_s4 + $0x410] sm:$0xff] }
 0x146   :  { %6559 = vmatpush1.bf16.msra.mxu1 %v6558_v28  ;;  %v5309_v28 = vld [vmem:[%s11785_s4 + $0x340] sm:$0xff] }
 0x147   :  { %6561 = vmatprep.subr.bf16.mxu1 %v6560_v29  ;;  %v5311_v29 = vld [vmem:[%s11785_s4 + $0x350] sm:$0xff] }
 0x14a   :  { %6563 = vmatpush1.bf16.msra.mxu1 %v6562_v35  ;;  %v5318_v35 = vld [vmem:[%s11785_s4 + $0x388] sm:$0xff] }
 0x14b   :  { %6565 = vmatprep.subr.bf16.mxu1 %v6564_v38 }
 0x14e   :  { %6567 = vmatpush1.bf16.msra.mxu1 %v6566_v44  ;;  %v5321_v44 = vld [vmem:[%s11785_s4 + $0x3a0] sm:$0xff] }
 0x14f   :  { %6569 = vmatprep.subr.bf16.mxu1 %v6568_v46  ;;  %v5323_v46 = vld [vmem:[%s11785_s4 + $0x3b0] sm:$0xff] }
 0x150   :  { %v6598_v53 = vpack.c.bf16 %v5323_v46, %v5321_v44  ;;  %v5344_v44 = vld [vmem:[%s11785_s4 + $0x458] sm:$0xff] }
 0x152   :  { %6571 = vmatpush1.bf16.msra.mxu1 %v6570_v57  ;;  %v5325_v57 = vld [vmem:[%s11785_s4 + $0x3c0] sm:$0xff] }
 0x153   :  { %6573 = vmatprep.subr.bf16.mxu1 %v6572_v58  ;;  %v5327_v58 = vld [vmem:[%s11785_s4 + $0x3d0] sm:$0xff] }
 0x154   :  { %v6602_v63 = vpack.c.bf16 %v5327_v58, %v5325_v57  ;;  %v5460_v57 = vld [vmem:[%s11787_s6 + $0x130] sm:$0xff]  ;;  %v5461_v58 = vld [vmem:[%s11787_s6 + $0x138] sm:$0xff] }
 0x156   :  { %6575 = vmatpush1.bf16.msra.mxu1 %v6574_v4  ;;  %v5329_v4 = vld [vmem:[%s11785_s4 + $0x3e0] sm:$0xff] }
 0x157   :  { %6577 = vmatprep.subr.bf16.mxu1 %v6576_v7  ;;  %v5331_v7 = vld [vmem:[%s11785_s4 + $0x3f0] sm:$0xff] }
 0x159   :  { %961 = vmatmul.mubr.f32.vlgmr.msra.gmra.mrb[0].mxu1 %v8151_v10  ;;  %v5316_v10 = vld [vmem:[%s11785_s4 + $0x378] sm:$0xff] }
 0x15a   :  { %5299 = vmatprep.mubr.msk.f32.mxu1 %vm66_vm1, %v8188_v27  ;;  %6579 = vmatpush1.bf16.msra.mxu1 %v6578_v15  ;;  %v6586_v27 = vpack.c.bf16 %v5311_v29, %v5309_v28  ;;  %v6588_v26 = vpack.c.bf16 %v5316_v10, %v5314_v30  ;;  %v5454_v15 = vld [vmem:[%s11787_s6 + $0x100] sm:$0xff]  ;;  %v5340_v28 = vld [vmem:[%s11785_s4 + $0x438] sm:$0xff]  ;;  %v5472_v30 = vld [vmem:[%s11787_s6 + $0x190] sm:$0xff] }
 0x15b   :  { %6581 = vmatprep.subr.bf16.mxu1 %v6580_v16  ;;  %v6606_v16 = vpack.c.bf16 %v5331_v7, %v5329_v4  ;;  %v6722_v29 = vpack.c.bf16 %v5455_v20, %v5454_v15  ;;  %v5473_v10 = vld [vmem:[%s11787_s6 + $0x198] sm:$0xff]  ;;  %v5346_v4 = vld [vmem:[%s11785_s4 + $0x468] sm:$0xff]  ;;  %v5462_v15 = vld [vmem:[%s11787_s6 + $0x140] sm:$0xff] }
 0x15c   :  { %v5348_v7 = vld [vmem:[%s11785_s4 + $0x478] sm:$0xff]  ;;  %v5353_v20 = vld [vmem:[%s11785_s4 + $0x488] sm:$0xff] }
 0x15d   :  { %967 = vmatmul.mubr.f32.gmra.mrb[2].mxu1 %v8181_v23  ;;  %v5320_v23 = vld [vmem:[%s11785_s4 + $0x398] sm:$0xff]  ;;  %6723 = vmatpush3.bf16.msra.mxu0 %v6722_v29 }
 0x15e   :  { %5300 = vmatprep.mubr.msk.f32.mxu1 %vm66_vm1, %v8212_v47  ;;  %6583 = vmatpush1.bf16.msra.mxu1 %v6582_v21  ;;  %v6590_v47 = vpack.c.bf16 %v5315_v34, %v5313_v33  ;;  %v6592_v38 = vpack.c.bf16 %v5320_v23, %v5318_v35  ;;  %v6608_v21 = vpack.c.bf16 %v5336_v9, %v5334_v8  ;;  %v5337_v23 = vld [vmem:[%s11785_s4 + $0x420] sm:$0xff]  ;;  %v5479_v8 = vld [vmem:[%s11787_s6 + $0x1c8] sm:$0xff] }
 0x15f   :  { %6585 = vmatprep.subr.bf16.mxu1 %v6584_v22  ;;  %v5338_v22 = vld [vmem:[%s11785_s4 + $0x428] sm:$0xff]  ;;  %v6724_v33 = vpack.c.bf16 %v5473_v10, %v5472_v30  ;;  %v6610_v35 = vpack.c.bf16 %v5335_v18, %v5333_v17  ;;  %v6734_v9 = vpack.c.bf16 %v5461_v58, %v5460_v57  ;;  %v6620_v17 = vpack.c.bf16 %v5348_v7, %v5346_v4  ;;  %v5345_v18 = vld [vmem:[%s11785_s4 + $0x460] sm:$0xff]  ;;  %v5354_v10 = vld [vmem:[%s11785_s4 + $0x490] sm:$0xff] }
 0x160   :  { %v5352_v30 = vld [vmem:[%s11785_s4 + $0x480] sm:$0xff]  ;;  %v5373_v57 = vld [vmem:[%s11785_s4 + $0x528] sm:$0xff] }
 0x161   :  { %973 = vmatmul.mubr.f32.gmra.mrb[4].mxu1 %v8199_v41  ;;  %v5324_v41 = vld [vmem:[%s11785_s4 + $0x3b8] sm:$0xff]  ;;  %6725 = vmatprep.subr.bf16.mxu0 %v6724_v33  ;;  %v6626_v33 = vpack.c.bf16 %v5354_v10, %v5352_v30  ;;  %v5389_v30 = vld [vmem:[%s11785_s4 + $0x5a8] sm:$0xff] }
 0x162   :  { %6587 = vmatpush1.bf16.msra.mxu1 %v6586_v27  ;;  %5349 = vmatprep.mubr.msk.f32.mxu1 %vm66_vm1, %v8216_v50  ;;  %v6594_v50 = vpack.c.bf16 %v5319_v40, %v5317_v39  ;;  %v6596_v43 = vpack.c.bf16 %v5324_v41, %v5322_v42  ;;  %v5456_v27 = vld [vmem:[%s11787_s6 + $0x110] sm:$0xff]  ;;  %v6612_v39 = vpack.c.bf16 %v5340_v28, %v5338_v22  ;;  %v5458_v41 = vld [vmem:[%s11787_s6 + $0x120] sm:$0xff]  ;;  %v5391_v10 = vld [vmem:[%s11785_s4 + $0x5b8] sm:$0xff] }
 0x163   :  { %6589 = vmatprep.subr.bf16.mxu1 %v6588_v26  ;;  %v5457_v26 = vld [vmem:[%s11787_s6 + $0x118] sm:$0xff]  ;;  %v5339_v40 = vld [vmem:[%s11785_s4 + $0x430] sm:$0xff]  ;;  %v6622_v28 = vpack.c.bf16 %v5347_v19, %v5345_v18  ;;  %v5385_v19 = vld [vmem:[%s11785_s4 + $0x588] sm:$0xff] }
 0x164   :  { %v6726_v34 = vpack.c.bf16 %v5457_v26, %v5456_v27  ;;  %v5357_v27 = vld [vmem:[%s11785_s4 + $0x4a8] sm:$0xff]  ;;  %v5359_v26 = vld [vmem:[%s11785_s4 + $0x4b8] sm:$0xff]  ;;  %v5382_v18 = vld [vmem:[%s11785_s4 + $0x570] sm:$0xff] }
 0x166   :  { %6591 = vmatpush1.bf16.msra.mxu1 %v6590_v47  ;;  %v5474_v47 = vld [vmem:[%s11787_s6 + $0x1a0] sm:$0xff]  ;;  %6727 = vmatpush3.bf16.msra.mxu0 %v6726_v34  ;;  %v6628_v34 = vpack.c.bf16 %v5359_v26, %v5357_v27  ;;  %v6660_v26 = vpack.c.bf16 %v5391_v10, %v5389_v30 }
 0x167   :  { %6593 = vmatprep.subr.bf16.mxu1 %v6592_v38  ;;  %v5475_v38 = vld [vmem:[%s11787_s6 + $0x1a8] sm:$0xff] }
 0x168   :  { %v6728_v42 = vpack.c.bf16 %v5475_v38, %v5474_v47  ;;  %v5361_v47 = vld [vmem:[%s11785_s4 + $0x4c8] sm:$0xff]  ;;  %v5363_v38 = vld [vmem:[%s11785_s4 + $0x4d8] sm:$0xff] }
 0x16a   :  { %6595 = vmatpush1.bf16.msra.mxu1 %v6594_v50  ;;  %v5459_v50 = vld [vmem:[%s11787_s6 + $0x128] sm:$0xff]  ;;  %6729 = vmatprep.subr.bf16.mxu0 %v6728_v42  ;;  %v5360_v42 = vld [vmem:[%s11785_s4 + $0x4c0] sm:$0xff] }
 0x16b   :  { %6597 = vmatprep.subr.bf16.mxu1 %v6596_v43  ;;  %v5342_v43 = vld [vmem:[%s11785_s4 + $0x448] sm:$0xff]  ;;  %v6730_v46 = vpack.c.bf16 %v5459_v50, %v5458_v41  ;;  %v5362_v41 = vld [vmem:[%s11785_s4 + $0x4d0] sm:$0xff] }
 0x16c   :  { %v6616_v61 = vpack.c.bf16 %v5344_v44, %v5342_v43  ;;  %v5365_v50 = vld [vmem:[%s11785_s4 + $0x4e8] sm:$0xff]  ;;  %v5364_v44 = vld [vmem:[%s11785_s4 + $0x4e0] sm:$0xff] }
 0x16d   :  { %6731 = vmatpush3.bf16.msra.mxu0 %v6730_v46  ;;  %v5366_v46 = vld [vmem:[%s11785_s4 + $0x4f0] sm:$0xff] }
 0x16e   :  { %6599 = vmatpush1.bf16.msra.mxu1 %v6598_v53  ;;  %v6614_v53 = vpack.c.bf16 %v5339_v40, %v5337_v23  ;;  %v5358_v23 = vld [vmem:[%s11785_s4 + $0x4b0] sm:$0xff]  ;;  %v6632_v40 = vpack.c.bf16 %v5363_v38, %v5361_v47 }
 0x16f   :  { %6601 = vmatprep.subr.bf16.mxu1 %v6600_v54  ;;  %v6732_v54 = vpack.c.bf16 %v5477_v52, %v5476_v49  ;;  %v5369_v49 = vld [vmem:[%s11785_s4 + $0x508] sm:$0xff] }
 0x171   :  { %6733 = vmatprep.subr.bf16.mxu0 %v6732_v54  ;;  %v5370_v54 = vld [vmem:[%s11785_s4 + $0x510] sm:$0xff] }
 0x172   :  { %6603 = vmatpush1.bf16.msra.mxu1 %v6602_v63  ;;  %v5343_v63 = vld [vmem:[%s11785_s4 + $0x450] sm:$0xff]  ;;  %6735 = vmatpush3.bf16.msra.mxu0 %v6734_v9 }
 0x173   :  { %6605 = vmatprep.subr.bf16.mxu1 %v6604_v2  ;;  %v5478_v2 = vld [vmem:[%s11787_s6 + $0x1c0] sm:$0xff]  ;;  %v6618_v11 = vpack.c.bf16 %v5343_v63, %v5341_v62  ;;  %v5374_v62 = vld [vmem:[%s11785_s4 + $0x530] sm:$0xff]  ;;  %v5377_v63 = vld [vmem:[%s11785_s4 + $0x548] sm:$0xff] }
 0x174   :  { %v6736_v13 = vpack.c.bf16 %v5479_v8, %v5478_v2  ;;  %v5379_v2 = vld [vmem:[%s11785_s4 + $0x558] sm:$0xff]  ;;  %v5376_v8 = vld [vmem:[%s11785_s4 + $0x540] sm:$0xff]  ;;  %v5378_v9 = vld [vmem:[%s11785_s4 + $0x550] sm:$0xff] }
 0x175   :  { %v6648_v7 = vpack.c.bf16 %v5379_v2, %v5377_v63 }
 0x176   :  { %6607 = vmatpush1.bf16.msra.mxu1 %v6606_v16  ;;  %v5463_v16 = vld [vmem:[%s11787_s6 + $0x148] sm:$0xff]  ;;  %6737 = vmatprep.subr.bf16.mxu0 %v6736_v13  ;;  %v5383_v13 = vld [vmem:[%s11785_s4 + $0x578] sm:$0xff] }
 0x177   :  { %6609 = vmatprep.subr.bf16.mxu1 %v6608_v21  ;;  %v5355_v21 = vld [vmem:[%s11785_s4 + $0x498] sm:$0xff]  ;;  %v6738_v22 = vpack.c.bf16 %v5463_v16, %v5462_v15  ;;  %v6650_v15 = vpack.c.bf16 %v5378_v9, %v5376_v8  ;;  %v5416_v8 = vld [vmem:[%s11785_s4 + $0x668] sm:$0xff] }
 0x178   :  { %v6624_v29 = vpack.c.bf16 %v5355_v21, %v5353_v20  ;;  %v5387_v20 = vld [vmem:[%s11785_s4 + $0x598] sm:$0xff] }
 0x179   :  { %6739 = vmatpush3.bf16.msra.mxu0 %v6738_v22  ;;  %v6656_v22 = vpack.c.bf16 %v5387_v20, %v5385_v19  ;;  %v5424_v19 = vld [vmem:[%s11785_s4 + $0x6a8] sm:$0xff] }
 0x17a   :  { %6611 = vmatpush1.bf16.msra.mxu1 %v6610_v35  ;;  %v5356_v35 = vld [vmem:[%s11785_s4 + $0x4a0] sm:$0xff] }
 0x17b   :  { %6613 = vmatprep.subr.bf16.mxu1 %v6612_v39  ;;  %v6630_v39 = vpack.c.bf16 %v5358_v23, %v5356_v35  ;;  %v5393_v35 = vld [vmem:[%s11785_s4 + $0x5c8] sm:$0xff]  ;;  %v5395_v23 = vld [vmem:[%s11785_s4 + $0x5d8] sm:$0xff] }
 0x17c   :  { %v6664_v38 = vpack.c.bf16 %v5395_v23, %v5393_v35 }
 0x17e   :  { %6615 = vmatpush1.bf16.msra.mxu1 %v6614_v53  ;;  %v5368_v53 = vld [vmem:[%s11785_s4 + $0x500] sm:$0xff] }
 0x17f   :  { %6617 = vmatprep.subr.bf16.mxu1 %v6616_v61  ;;  %v5372_v61 = vld [vmem:[%s11785_s4 + $0x520] sm:$0xff] }
 0x180   :  { %v6646_v4 = vpack.c.bf16 %v5374_v62, %v5372_v61  ;;  %v5412_v61 = vld [vmem:[%s11785_s4 + $0x648] sm:$0xff]  ;;  %v5414_v62 = vld [vmem:[%s11785_s4 + $0x658] sm:$0xff] }
 0x181   :  { %v6680_v2 = vpack.c.bf16 %v5414_v62, %v5412_v61 }
 0x182   :  { %6619 = vmatpush1.bf16.msra.mxu1 %v6618_v11  ;;  %v5381_v11 = vld [vmem:[%s11785_s4 + $0x568] sm:$0xff] }
 0x183   :  { %6621 = vmatprep.subr.bf16.mxu1 %v6620_v17  ;;  %v6652_v16 = vpack.c.bf16 %v5383_v13, %v5381_v11  ;;  %v5380_v17 = vld [vmem:[%s11785_s4 + $0x560] sm:$0xff]  ;;  %v5417_v13 = vld [vmem:[%s11785_s4 + $0x670] sm:$0xff] }
 0x184   :  { %v6654_v21 = vpack.c.bf16 %v5382_v18, %v5380_v17  ;;  %v5415_v11 = vld [vmem:[%s11785_s4 + $0x660] sm:$0xff]  ;;  %v5421_v18 = vld [vmem:[%s11785_s4 + $0x690] sm:$0xff] }
 0x185   :  { %v5419_v17 = vld [vmem:[%s11785_s4 + $0x680] sm:$0xff] }
 0x186   :  { %6623 = vmatpush1.bf16.msra.mxu1 %v6622_v28  ;;  %v5384_v28 = vld [vmem:[%s11785_s4 + $0x580] sm:$0xff] }
 0x187   :  { %6625 = vmatprep.subr.bf16.mxu1 %v6624_v29  ;;  %v5386_v29 = vld [vmem:[%s11785_s4 + $0x590] sm:$0xff] }
 0x188   :  { %v6658_v27 = vpack.c.bf16 %v5386_v29, %v5384_v28  ;;  %v5428_v28 = vld [vmem:[%s11785_s4 + $0x6c8] sm:$0xff]  ;;  %v5430_v29 = vld [vmem:[%s11785_s4 + $0x6d8] sm:$0xff] }
 0x189   :  { %1117 = vmatmul.mubr.f32.vlgmr.msra.gmra.mrb[0].mxu1 %v8209_v45  ;;  %v5367_v45 = vld [vmem:[%s11785_s4 + $0x4f8] sm:$0xff]  ;;  %v6696_v10 = vpack.c.bf16 %v5430_v29, %v5428_v28  ;;  %v5620_v28 = vld [vmem:[%s11787_s6 + $0x630] sm:$0xff] }
 0x18a   :  { %5350 = vmatprep.mubr.msk.f32.mxu1 %vm66_vm1, %v8248_v12  ;;  %6627 = vmatpush1.bf16.msra.mxu1 %v6626_v33  ;;  %v6634_v12 = vpack.c.bf16 %v5362_v41, %v5360_v42  ;;  %v6636_v43 = vpack.c.bf16 %v5367_v45, %v5365_v50  ;;  %v5388_v33 = vld [vmem:[%s11785_s4 + $0x5a0] sm:$0xff]  ;;  %v5397_v42 = vld [vmem:[%s11785_s4 + $0x5e8] sm:$0xff]  ;;  %v5399_v41 = vld [vmem:[%s11785_s4 + $0x5f8] sm:$0xff] }
 0x18b   :  { %6629 = vmatprep.subr.bf16.mxu1 %v6628_v34  ;;  %v5390_v34 = vld [vmem:[%s11785_s4 + $0x5b0] sm:$0xff]  ;;  %v6668_v45 = vpack.c.bf16 %v5399_v41, %v5397_v42  ;;  %v5621_v29 = vld [vmem:[%s11787_s6 + $0x638] sm:$0xff] }
 0x18c   :  { %v6662_v47 = vpack.c.bf16 %v5390_v34, %v5388_v33  ;;  %v5432_v33 = vld [vmem:[%s11785_s4 + $0x6e8] sm:$0xff]  ;;  %v5434_v34 = vld [vmem:[%s11785_s4 + $0x6f8] sm:$0xff] }
 0x18d   :  { %1123 = vmatmul.mubr.f32.gmra.mrb[2].mxu1 %v8241_v6  ;;  %v5371_v6 = vld [vmem:[%s11785_s4 + $0x518] sm:$0xff]  ;;  %v6700_v23 = vpack.c.bf16 %v5434_v34, %v5432_v33 }
 0x18e   :  { %5351 = vmatprep.mubr.msk.f32.mxu1 %vm66_vm1, %v8268_v31  ;;  %6631 = vmatpush1.bf16.msra.mxu1 %v6630_v39  ;;  %v6638_v31 = vpack.c.bf16 %v5366_v46, %v5364_v44  ;;  %v6640_v52 = vpack.c.bf16 %v5371_v6, %v5369_v49  ;;  %v5392_v39 = vld [vmem:[%s11785_s4 + $0x5c0] sm:$0xff]  ;;  %v5404_v44 = vld [vmem:[%s11785_s4 + $0x608] sm:$0xff]  ;;  %v5406_v46 = vld [vmem:[%s11785_s4 + $0x618] sm:$0xff] }
 0x18f   :  { %6633 = vmatprep.subr.bf16.mxu1 %v6632_v40  ;;  %v5394_v40 = vld [vmem:[%s11785_s4 + $0x5d0] sm:$0xff]  ;;  %v6672_v6 = vpack.c.bf16 %v5406_v46, %v5404_v44  ;;  %v5481_v34 = vld [vmem:[%s11787_s6 + $0x1d8] sm:$0xff] }
 0x190   :  { %v6666_v50 = vpack.c.bf16 %v5394_v40, %v5392_v39  ;;  %v5436_v39 = vld [vmem:[%s11785_s4 + $0x708] sm:$0xff]  ;;  %v5438_v40 = vld [vmem:[%s11785_s4 + $0x718] sm:$0xff] }
 0x191   :  { %1129 = vmatmul.mubr.f32.gmra.mrb[4].mxu1 %v8255_v24  ;;  %v5375_v24 = vld [vmem:[%s11785_s4 + $0x538] sm:$0xff]  ;;  %v6704_v41 = vpack.c.bf16 %v5438_v40, %v5436_v39 }
 0x192   :  { %6635 = vmatpush1.bf16.msra.mxu1 %v6634_v12  ;;  %5400 = vmatprep.mubr.msk.f32.mxu1 %vm66_vm1, %v8219_v51  ;;  %v6642_v51 = vpack.c.bf16 %v5370_v54, %v5368_v53  ;;  %v6644_v58 = vpack.c.bf16 %v5375_v24, %v5373_v57  ;;  %v5396_v12 = vld [vmem:[%s11785_s4 + $0x5e0] sm:$0xff]  ;;  %v5408_v53 = vld [vmem:[%s11785_s4 + $0x628] sm:$0xff]  ;;  %v5410_v54 = vld [vmem:[%s11785_s4 + $0x638] sm:$0xff] }
 0x193   :  { %6637 = vmatprep.subr.bf16.mxu1 %v6636_v43  ;;  %v5398_v43 = vld [vmem:[%s11785_s4 + $0x5f0] sm:$0xff]  ;;  %v6676_v24 = vpack.c.bf16 %v5410_v54, %v5408_v53  ;;  %v5641_v39 = vld [vmem:[%s11787_s6 + $0x6d8] sm:$0xff] }
 0x194   :  { %v6670_v49 = vpack.c.bf16 %v5398_v43, %v5396_v12  ;;  %v5440_v12 = vld [vmem:[%s11785_s4 + $0x728] sm:$0xff]  ;;  %v5442_v43 = vld [vmem:[%s11785_s4 + $0x738] sm:$0xff] }
 0x195   :  { %v6708_v46 = vpack.c.bf16 %v5442_v43, %v5440_v12  ;;  %v5482_v12 = vld [vmem:[%s11787_s6 + $0x1e0] sm:$0xff]  ;;  %v5483_v43 = vld [vmem:[%s11787_s6 + $0x1e8] sm:$0xff] }
 0x196   :  { %6639 = vmatpush1.bf16.msra.mxu1 %v6638_v31  ;;  %v5403_v31 = vld [vmem:[%s11785_s4 + $0x600] sm:$0xff] }
 0x197   :  { %6641 = vmatprep.subr.bf16.mxu1 %v6640_v52  ;;  %v5405_v52 = vld [vmem:[%s11785_s4 + $0x610] sm:$0xff] }
 0x198   :  { %v6674_v57 = vpack.c.bf16 %v5405_v52, %v5403_v31  ;;  %v5444_v31 = vld [vmem:[%s11785_s4 + $0x748] sm:$0xff]  ;;  %v5446_v52 = vld [vmem:[%s11785_s4 + $0x758] sm:$0xff] }
 0x199   :  { %v6712_v54 = vpack.c.bf16 %v5446_v52, %v5444_v31  ;;  %v5643_v31 = vld [vmem:[%s11787_s6 + $0x6e8] sm:$0xff] }
 0x19a   :  { %6643 = vmatpush1.bf16.msra.mxu1 %v6642_v51  ;;  %v5407_v51 = vld [vmem:[%s11785_s4 + $0x620] sm:$0xff] }
 0x19b   :  { %6645 = vmatprep.subr.bf16.mxu1 %v6644_v58  ;;  %v5409_v58 = vld [vmem:[%s11785_s4 + $0x630] sm:$0xff] }
 0x19c   :  { %v6678_v63 = vpack.c.bf16 %v5409_v58, %v5407_v51  ;;  %v5448_v51 = vld [vmem:[%s11785_s4 + $0x768] sm:$0xff]  ;;  %v5450_v58 = vld [vmem:[%s11785_s4 + $0x778] sm:$0xff] }
 0x19d   :  { %v6716_v62 = vpack.c.bf16 %v5450_v58, %v5448_v51  ;;  %v5484_v51 = vld [vmem:[%s11787_s6 + $0x1f0] sm:$0xff]  ;;  %v5485_v58 = vld [vmem:[%s11787_s6 + $0x1f8] sm:$0xff] }
 0x19e   :  { %6647 = vmatpush1.bf16.msra.mxu1 %v6646_v4  ;;  %v5411_v4 = vld [vmem:[%s11785_s4 + $0x640] sm:$0xff] }
 0x19f   :  { %6649 = vmatprep.subr.bf16.mxu1 %v6648_v7  ;;  %v5413_v7 = vld [vmem:[%s11785_s4 + $0x650] sm:$0xff] }
 0x1a2   :  { %6651 = vmatpush1.bf16.msra.mxu1 %v6650_v15  ;;  %v5420_v15 = vld [vmem:[%s11785_s4 + $0x688] sm:$0xff] }
 0x1a3   :  { %6653 = vmatprep.subr.bf16.mxu1 %v6652_v16 }
 0x1a6   :  { %6655 = vmatpush1.bf16.msra.mxu1 %v6654_v21  ;;  %v5423_v21 = vld [vmem:[%s11785_s4 + $0x6a0] sm:$0xff] }
 0x1a7   :  { %6657 = vmatprep.subr.bf16.mxu1 %v6656_v22  ;;  %v5425_v22 = vld [vmem:[%s11785_s4 + $0x6b0] sm:$0xff] }
 0x1a8   :  { %v6694_v30 = vpack.c.bf16 %v5425_v22, %v5423_v21  ;;  %v5636_v21 = vld [vmem:[%s11787_s6 + $0x6b0] sm:$0xff] }
 0x1aa   :  { %6659 = vmatpush1.bf16.msra.mxu1 %v6658_v27  ;;  %v5427_v27 = vld [vmem:[%s11785_s4 + $0x6c0] sm:$0xff] }
 0x1ab   :  { %6661 = vmatprep.subr.bf16.mxu1 %v6660_v26  ;;  %v5429_v26 = vld [vmem:[%s11785_s4 + $0x6d0] sm:$0xff] }
 0x1ac   :  { %v6698_v35 = vpack.c.bf16 %v5429_v26, %v5427_v27  ;;  %v5622_v27 = vld [vmem:[%s11787_s6 + $0x640] sm:$0xff]  ;;  %v5623_v26 = vld [vmem:[%s11787_s6 + $0x648] sm:$0xff] }
 0x1ad   :  { %v6930_v33 = vpack.c.bf16 %v5623_v26, %v5622_v27 }
 0x1ae   :  { %6663 = vmatpush1.bf16.msra.mxu1 %v6662_v47  ;;  %v5431_v47 = vld [vmem:[%s11785_s4 + $0x6e0] sm:$0xff] }
 0x1af   :  { %6665 = vmatprep.subr.bf16.mxu1 %v6664_v38  ;;  %v5433_v38 = vld [vmem:[%s11785_s4 + $0x6f0] sm:$0xff] }
 0x1b0   :  { %v6702_v42 = vpack.c.bf16 %v5433_v38, %v5431_v47  ;;  %v5465_v47 = vld [vmem:[%s11787_s6 + $0x158] sm:$0xff]  ;;  %v5640_v38 = vld [vmem:[%s11787_s6 + $0x6d0] sm:$0xff] }
 0x1b2   :  { %6667 = vmatpush1.bf16.msra.mxu1 %v6666_v50  ;;  %v5435_v50 = vld [vmem:[%s11785_s4 + $0x700] sm:$0xff] }
 0x1b3   :  { %6669 = vmatprep.subr.bf16.mxu1 %v6668_v45  ;;  %v5437_v45 = vld [vmem:[%s11785_s4 + $0x710] sm:$0xff] }
 0x1b4   :  { %v6706_v44 = vpack.c.bf16 %v5437_v45, %v5435_v50  ;;  %v5625_v50 = vld [vmem:[%s11787_s6 + $0x658] sm:$0xff] }
 0x1b6   :  { %6671 = vmatpush1.bf16.msra.mxu1 %v6670_v49  ;;  %v5439_v49 = vld [vmem:[%s11785_s4 + $0x720] sm:$0xff] }
 0x1b7   :  { %6673 = vmatprep.subr.bf16.mxu1 %v6672_v6  ;;  %v5441_v6 = vld [vmem:[%s11785_s4 + $0x730] sm:$0xff] }
 0x1b8   :  { %v6710_v53 = vpack.c.bf16 %v5441_v6, %v5439_v49  ;;  %v5467_v49 = vld [vmem:[%s11787_s6 + $0x168] sm:$0xff]  ;;  %v5642_v6 = vld [vmem:[%s11787_s6 + $0x6e0] sm:$0xff] }
 0x1b9   :  { %1279 = vmatmul.mubr.f32.vlgmr.msra.gmra.mrb[0].mxu1 %v8244_v5  ;;  %v5418_v5 = vld [vmem:[%s11785_s4 + $0x678] sm:$0xff] }
 0x1ba   :  { %5401 = vmatprep.mubr.msk.f32.mxu1 %vm66_vm1, %v8258_v25  ;;  %6675 = vmatpush1.bf16.msra.mxu1 %v6674_v57  ;;  %v6682_v25 = vpack.c.bf16 %v5413_v7, %v5411_v4  ;;  %v6684_v9 = vpack.c.bf16 %v5418_v5, %v5416_v8  ;;  %v5443_v57 = vld [vmem:[%s11785_s4 + $0x740] sm:$0xff]  ;;  %v5631_v7 = vld [vmem:[%s11787_s6 + $0x688] sm:$0xff] }
 0x1bb   :  { %6677 = vmatprep.subr.bf16.mxu1 %v6676_v24  ;;  %v5445_v24 = vld [vmem:[%s11785_s4 + $0x750] sm:$0xff]  ;;  %v5630_v4 = vld [vmem:[%s11787_s6 + $0x680] sm:$0xff] }
 0x1bc   :  { %v6714_v61 = vpack.c.bf16 %v5445_v24, %v5443_v57  ;;  %v6912_v5 = vpack.c.bf16 %v5631_v7, %v5630_v4  ;;  %v5627_v57 = vld [vmem:[%s11787_s6 + $0x668] sm:$0xff]  ;;  %v5645_v4 = vld [vmem:[%s11787_s6 + $0x6f8] sm:$0xff] }
 0x1bd   :  { %1285 = vmatmul.mubr.f32.gmra.mrb[2].mxu1 %v8271_v32  ;;  %v5422_v32 = vld [vmem:[%s11785_s4 + $0x698] sm:$0xff] }
 0x1be   :  { %5402 = vmatprep.mubr.msk.f32.mxu1 %vm66_vm1, %v8282_v36  ;;  %6679 = vmatpush1.bf16.msra.mxu1 %v6678_v63  ;;  %v6686_v36 = vpack.c.bf16 %v5417_v13, %v5415_v11  ;;  %v6688_v16 = vpack.c.bf16 %v5422_v32, %v5420_v15  ;;  %v5447_v63 = vld [vmem:[%s11785_s4 + $0x760] sm:$0xff]  ;;  %v5632_v11 = vld [vmem:[%s11787_s6 + $0x690] sm:$0xff]  ;;  %v5633_v13 = vld [vmem:[%s11787_s6 + $0x698] sm:$0xff] }
 0x1bf   :  { %6681 = vmatprep.subr.bf16.mxu1 %v6680_v2  ;;  %v5449_v2 = vld [vmem:[%s11785_s4 + $0x770] sm:$0xff]  ;;  %v6916_v32 = vpack.c.bf16 %v5633_v13, %v5632_v11  ;;  %v1506_v13 = vld [vmem:[%s11787_s6 + $0x88] sm:$0xff] }
 0x1c0   :  { %v6718_v8 = vpack.c.bf16 %v5449_v2, %v5447_v63  ;;  %v5469_v63 = vld [vmem:[%s11787_s6 + $0x178] sm:$0xff]  ;;  %v5644_v2 = vld [vmem:[%s11787_s6 + $0x6f0] sm:$0xff] }
 0x1c1   :  { %1291 = vmatmul.mubr.f32.gmra.mrb[4].mxu1 %v8285_v37  ;;  %v5426_v37 = vld [vmem:[%s11785_s4 + $0x6b8] sm:$0xff] }
 0x1c2   :  { %6683 = vmatpush1.bf16.msra.mxu1 %v6682_v25  ;;  %5451 = vmatprep.mubr.msk.f32.mxu1 %vm66_vm1, %v8295_v48  ;;  %v6690_v48 = vpack.c.bf16 %v5421_v18, %v5419_v17  ;;  %v6692_v20 = vpack.c.bf16 %v5426_v37, %v5424_v19  ;;  %v5614_v25 = vld [vmem:[%s11787_s6 + $0x600] sm:$0xff]  ;;  %v5635_v18 = vld [vmem:[%s11787_s6 + $0x6a8] sm:$0xff] }
 0x1c3   :  { %6685 = vmatprep.subr.bf16.mxu1 %v6684_v9  ;;  %v5615_v9 = vld [vmem:[%s11787_s6 + $0x608] sm:$0xff]  ;;  %v5634_v17 = vld [vmem:[%s11787_s6 + $0x6a0] sm:$0xff] }
 0x1c4   :  { %v6914_v15 = vpack.c.bf16 %v5615_v9, %v5614_v25  ;;  %v6920_v37 = vpack.c.bf16 %v5635_v18, %v5634_v17  ;;  %v5629_v25 = vld [vmem:[%s11787_s6 + $0x678] sm:$0xff]  ;;  %v1505_v9 = vld [vmem:[%s11787_s6 + $0x80] sm:$0xff] }
 0x1c6   :  { %6687 = vmatpush1.bf16.msra.mxu1 %v6686_v36  ;;  %v5616_v36 = vld [vmem:[%s11787_s6 + $0x610] sm:$0xff] }
 0x1c7   :  { %6689 = vmatprep.subr.bf16.mxu1 %v6688_v16  ;;  %v5617_v16 = vld [vmem:[%s11787_s6 + $0x618] sm:$0xff] }
 0x1c8   :  { %v6918_v19 = vpack.c.bf16 %v5617_v16, %v5616_v36 }
 0x1ca   :  { %6691 = vmatpush1.bf16.msra.mxu1 %v6690_v48  ;;  %v5618_v48 = vld [vmem:[%s11787_s6 + $0x620] sm:$0xff] }
 0x1cb   :  { %6693 = vmatprep.subr.bf16.mxu1 %v6692_v20  ;;  %v5619_v20 = vld [vmem:[%s11787_s6 + $0x628] sm:$0xff] }
 0x1ce   :  { %6695 = vmatpush1.bf16.msra.mxu1 %v6694_v30  ;;  %v5638_v30 = vld [vmem:[%s11787_s6 + $0x6c0] sm:$0xff] }
 0x1cf   :  { %6697 = vmatprep.subr.bf16.mxu1 %v6696_v10 }
 0x1d2   :  { %6699 = vmatpush1.bf16.msra.mxu1 %v6698_v35  ;;  %v5464_v35 = vld [vmem:[%s11787_s6 + $0x150] sm:$0xff] }
 0x1d3   :  { %6701 = vmatprep.subr.bf16.mxu1 %v6700_v23  ;;  %v6742_v40 = vpack.c.bf16 %v5465_v47, %v5464_v35 }
 0x1d6   :  { %6703 = vmatpush1.bf16.msra.mxu1 %v6702_v42  ;;  %v6932_v42 = vpack.c.bf16 %v5641_v39, %v5640_v38 }
 0x1d7   :  { %6705 = vmatprep.subr.bf16.mxu1 %v6704_v41  ;;  %v5624_v41 = vld [vmem:[%s11787_s6 + $0x650] sm:$0xff] }
 0x1d8   :  { %v6934_v45 = vpack.c.bf16 %v5625_v50, %v5624_v41 }
 0x1da   :  { %6707 = vmatpush1.bf16.msra.mxu1 %v6706_v44  ;;  %v5466_v44 = vld [vmem:[%s11787_s6 + $0x160] sm:$0xff] }
 0x1db   :  { %6709 = vmatprep.subr.bf16.mxu1 %v6708_v46  ;;  %v6744_v46 = vpack.c.bf16 %v5483_v43, %v5482_v12  ;;  %v6746_v52 = vpack.c.bf16 %v5467_v49, %v5466_v44 }
 0x1de   :  { %6711 = vmatpush1.bf16.msra.mxu1 %v6710_v53  ;;  %v6936_v53 = vpack.c.bf16 %v5643_v31, %v5642_v6 }
 0x1df   :  { %6713 = vmatprep.subr.bf16.mxu1 %v6712_v54  ;;  %v5626_v54 = vld [vmem:[%s11787_s6 + $0x660] sm:$0xff] }
 0x1e0   :  { %v6938_v24 = vpack.c.bf16 %v5627_v57, %v5626_v54 }
 0x1e2   :  { %6715 = vmatpush1.bf16.msra.mxu1 %v6714_v61  ;;  %v5468_v61 = vld [vmem:[%s11787_s6 + $0x170] sm:$0xff] }
 0x1e3   :  { %6717 = vmatprep.subr.bf16.mxu1 %v6716_v62  ;;  %v6748_v62 = vpack.c.bf16 %v5485_v58, %v5484_v51  ;;  %v6750_v7 = vpack.c.bf16 %v5469_v63, %v5468_v61 }
 0x1e6   :  { %6719 = vmatpush1.bf16.msra.mxu1 %v6718_v8  ;;  %v6940_v8 = vpack.c.bf16 %v5645_v4, %v5644_v2 }
 0x1e7   :  { %6913 = vmatprep.subr.bf16.mxu1 %v6912_v5  ;;  %v5628_v5 = vld [vmem:[%s11787_s6 + $0x670] sm:$0xff] }
 0x1e8   :  { %v6942_v11 = vpack.c.bf16 %v5629_v25, %v5628_v5 }
 0x1e9   :  { %1441 = vmatmul.mubr.f32.vlgmr.msra.gmra.mrb[0].mxu1 %v8304_v55  ;;  %v5637_v55 = vld [vmem:[%s11787_s6 + $0x6b8] sm:$0xff] }
 0x1ea   :  { %5452 = vmatprep.mubr.msk.f32.mxu1 %vm66_vm1, %v8307_v14  ;;  %6915 = vmatpush3.bf16.msra.mxu1 %v6914_v15  ;;  %v6922_v14 = vpack.c.bf16 %v5619_v20, %v5618_v48  ;;  %v6924_v22 = vpack.c.bf16 %v5637_v55, %v5636_v21  ;;  %v6752_v15 = vpack.c.bf16 %v1506_v13, %v1505_v9  ;;  %v1490_v48 = vld [vmem:[%s11787_s6 + $0x8] sm:$0xff]  ;;  %v9082_v20 = vld [vmem:[%s11787_s6 + $0x90] sm:$0xff]  ;;  %v9097_v21 = vld [vmem:[%s11787_s6 + $0x18] sm:$0xff] }
 0x1eb   :  { %6917 = vmatprep.subr.bf16.mxu1 %v6916_v32  ;;  %v1465_v32 = vld [vmem:[%s11786_s5] sm:$0x3] }
 0x1ec   :  { %v1470_v36 = vrot.slane %v1465_v32, %v654_v1  ;;  %v1474_v16 = vrot.slane %v1465_v32, %v658_v3  ;;  %v9092_v3 = vld [vmem:[%s11787_s6 + $0x10] sm:$0xff]  ;;  %v1494_v32 = vld [vmem:[%s11787_s6 + $0x28] sm:$0xff] }
 0x1ed   :  { %1447 = vmatmul.mubr.f32.gmra.mrb[2].mxu1 %v8310_v56  ;;  %v5639_v56 = vld [vmem:[%s11787_s6 + $0x6c8] sm:$0xff]  ;;  %v6758_v27 = vpack.c.bf16 %v9097_v21, %v9092_v3  ;;  %v1495_v21 = vld [vmem:[%s11787_s6 + $0x30] sm:$0xff] }
 0x1ee   :  { %5453 = vmatprep.mubr.msk.f32.mxu1 %vm66_vm1, %v8319_v59  ;;  %6919 = vmatpush3.bf16.msra.mxu1 %v6918_v19  ;;  %v6926_v59 = vpack.c.bf16 %v5621_v29, %v5620_v28  ;;  %v6928_v10 = vpack.c.bf16 %v5639_v56, %v5638_v30 }
 0x1ef   :  { %6921 = vmatprep.subr.bf16.mxu1 %v6920_v37  ;;  %v1489_v37 = vld [vmem:[%s11787_s6] sm:$0xff] }
 0x1f1   :  { %1453 = vmatmul.mubr.f32.gmra.mrb[4].mxu1 %v8322_v60  ;;  %v5480_v60 = vld [vmem:[%s11787_s6 + $0x1d0] sm:$0xff] }
 0x1f2   :  { %6923 = vmatpush3.bf16.msra.mxu1 %v6922_v14  ;;  %v6740_v23 = vpack.c.bf16 %v5481_v34, %v5480_v60  ;;  %v9104_v14 = vld [vmem:[%s11787_s6 + $0xa0] sm:$0xff] }
 0x1f3   :  { %6925 = vmatprep.subr.bf16.mxu1 %v6924_v22  ;;  %v9109_v22 = vld [vmem:[%s11787_s6 + $0xa8] sm:$0xff] }
 0x1f4   :  { %6741 = vmatprep.subr.bf16.mxu0 %v6740_v23  ;;  %v6760_v34 = vpack.c.bf16 %v9109_v22, %v9104_v14  ;;  %v1513_v14 = vld [vmem:[%s11787_s6 + $0xc0] sm:$0xff]  ;;  %v1514_v22 = vld [vmem:[%s11787_s6 + $0xc8] sm:$0xff] }
 0x1f5   :  { %6743 = vmatpush3.bf16.msra.mxu0 %v6742_v40 }
 0x1f6   :  { %6927 = vmatpush3.bf16.msra.mxu1 %v6926_v59  ;;  %6745 = vmatprep.subr.bf16.mxu0 %v6744_v46  ;;  %v6754_v59 = vpack.c.bf16 %v1490_v48, %v1489_v37  ;;  %v1511_v48 = vld [vmem:[%s11787_s6 + $0xb0] sm:$0xff] }
 0x1f7   :  { %6929 = vmatprep.subr.bf16.mxu1 %v6928_v10  ;;  %v6756_v10 = vpack.c.bf16 %v9087_v0, %v9082_v20  ;;  %v1512_v20 = vld [vmem:[%s11787_s6 + $0xb8] sm:$0xff] }
 0x1f8   :  { %v6764_v3 = vpack.c.bf16 %v1512_v20, %v1511_v48 }
 0x1f9   :  { %6747 = vmatpush3.bf16.msra.mxu0 %v6746_v52 }
 0x1fa   :  { %6931 = vmatpush3.bf16.msra.mxu1 %v6930_v33  ;;  %6749 = vmatprep.subr.bf16.mxu0 %v6748_v62 }
 0x1fb   :  { %6933 = vmatprep.subr.bf16.mxu1 %v6932_v42 }
 0x1fd   :  { %6751 = vmatpush3.bf16.msra.mxu0 %v6750_v7 }
 0x1fe   :  { %6935 = vmatpush3.bf16.msra.mxu1 %v6934_v45  ;;  %6753 = vmatprep.subr.bf16.mxu0 %v6752_v15  ;;  %v1493_v15 = vld [vmem:[%s11787_s6 + $0x20] sm:$0xff] }
 0x1ff   :  { %6937 = vmatprep.subr.bf16.mxu1 %v6936_v53 }
 0x202   :  { %6939 = vmatpush3.bf16.msra.mxu1 %v6938_v24 }
 0x203   :  { %6941 = vmatprep.subr.bf16.mxu1 %v6940_v8 }
 0x206   :  { %6943 = vmatpush3.bf16.msra.mxu1 %v6942_v11 }
 0x2bc   :  { %v1442_v17 = vpop.f32.mrb[0].mxu1 }
 0x2bd   :  { %v1477_v18 = vadd.f32 %v1470_v36, %v1442_v17  ;;  %v1444_v19 = vpop.f32.mrb[1].mxu1 }
 0x2be   :  { %v1478_v1 = vadd.f32 %v1474_v16, %v1444_v19 }
 0x2bf   :  { %v9099_v55 = vmax.f32 %v1477_v18, 0.0 }
 0x2c0   :  { %v9111_v28 = vmax.f32 %v1478_v1, 0.0  ;;  %v1448_v29 = vpop.f32.mrb[2].mxu1 }
 0x2c1   :  { %v1479_v30 = vadd.f32 %v1470_v36, %v1448_v29  ;;  %v1450_v56 = vpop.f32.mrb[3].mxu1  ;;  %v1560_v33 = vrot.slane %v9099_v55, 1  ;;  %v2289_v60 = vrot.slane %v9099_v55, 6  ;;  %v1767_v38 = vrot.slane %v9099_v55, 2 }
 0x2c2   :  { %v1480_v26 = vadd.f32 %v1474_v16, %v1450_v56  ;;  %v1563_v23 = vrot.slane %v9111_v28, 1  ;;  %v2292_v47 = vrot.slane %v9111_v28, 6  ;;  %v1770_v42 = vrot.slane %v9111_v28, 2 }
 0x2c3   :  { %v9121_v35 = vmax.f32 %v1479_v30, 0.0  ;;  %v1900_v41 = vrot.slane %v9111_v28, 3  ;;  %v1897_v50 = vrot.slane %v9099_v55, 3  ;;  %v2030_v29 = vrot.slane %v9111_v28, 4 }
 0x2c4   :  { %v9126_v39 = vmax.f32 %v1480_v26, 0.0  ;;  %v1454_v40 = vpop.f32.mrb[4].mxu1  ;;  %v6762_v56 = vpack.c.bf16 %v1494_v32, %v1493_v15  ;;  %v1499_v32 = vld [vmem:[%s11787_s6 + $0x50] sm:$0xff] }
 0x2c5   :  { %v1481_v45 = vadd.f32 %v1470_v36, %v1454_v40  ;;  %v1456_v12 = vpop.f32.mrb[5].mxu1  ;;  %v1561_v43 = vrot.slane %v9121_v35, 1  ;;  %v2290_v44 = vrot.slane %v9121_v35, 6  ;;  %v1768_v46 = vrot.slane %v9121_v35, 2 }
 0x2c6   :  { %v1482_v49 = vadd.f32 %v1474_v16, %v1456_v12  ;;  %v1564_v6 = vrot.slane %v9126_v39, 1  ;;  %v2293_v31 = vrot.slane %v9126_v39, 6  ;;  %v1771_v52 = vrot.slane %v9126_v39, 2 }
 0x2c7   :  { %v9137_v53 = vmax.f32 %v1481_v45, 0.0  ;;  %v1562_v54 = vsel %vm783_vm2, %v1560_v33, %v1561_v43  ;;  %v2291_v57 = vsel %vm2288_vm6, %v2289_v60, %v2290_v44  ;;  %v9142_v24 = vsel %vm1028_vm3, %v1767_v38, %v1768_v46 }
 0x2c8   :  { %v9144_v51 = vmax.f32 %v1482_v49, 0.0  ;;  %v1565_v58 = vsel %vm783_vm2, %v1563_v23, %v1564_v6  ;;  %v2294_v61 = vsel %vm2288_vm6, %v2292_v47, %v2293_v31  ;;  %v9149_v62 = vsel %vm1028_vm3, %v1770_v42, %v1771_v52 }
 0x2c9   :  { %1640 = vmatprep.mubr.f32.mxu0 %v1565_v58  ;;  %2369 = vmatprep.mubr.f32.mxu1 %v2294_v61  ;;  %v1566_v63 = vrot.slane %v9137_v53, 1  ;;  %v2295_v2 = vrot.slane %v9137_v53, 6  ;;  %v1773_v4 = vrot.slane %v9137_v53, 2  ;;  %v1901_v7 = vrot.slane %v9126_v39, 3  ;;  %v1516_v61 = vld [vmem:[%s11787_s6 + $0xd8] sm:$0xff] }
 0x2ca   :  { %1641 = vmatmul.mubr.f32.vlgmr.msra.gmra.mrb[8].mxu0 %v1562_v54  ;;  %2370 = vmatmul.mubr.f32.vlgmr.msra.gmra.mrb[6].mxu1 %v2291_v57  ;;  %v1568_v8 = vrot.slane %v9144_v51, 1  ;;  %v2297_v5 = vrot.slane %v9144_v51, 6  ;;  %v1775_v25 = vrot.slane %v9144_v51, 2  ;;  %v1898_v9 = vrot.slane %v9121_v35, 3  ;;  %v1498_v54 = vld [vmem:[%s11787_s6 + $0x48] sm:$0xff] }
 0x2cb   :  { %6755 = vmatpush3.bf16.msra.mxu0 %v6754_v59  ;;  %v1567_v11 = vsel %vm783_vm2, %v1561_v43, %v1566_v63  ;;  %v2296_v13 = vsel %vm2288_vm6, %v2290_v44, %v2295_v2  ;;  %v9170_v36 = vsel %vm1028_vm3, %v1768_v46, %v1773_v4  ;;  %v9173_v16 = vsel %vm1190_vm4, %v1900_v41, %v1901_v7 }
 0x2cc   :  { %v1569_v17 = vsel %vm783_vm2, %v1564_v6, %v1568_v8  ;;  %6757 = vmatprep.subr.bf16.mxu0 %v6756_v10  ;;  %v2298_v18 = vsel %vm2288_vm6, %v2293_v31, %v2297_v5  ;;  %v9180_v19 = vsel %vm1028_vm3, %v1771_v52, %v1775_v25  ;;  %v9183_v37 = vsel %vm1190_vm4, %v1897_v50, %v1898_v9  ;;  %v1497_v52 = vld [vmem:[%s11787_s6 + $0x40] sm:$0xff] }
 0x2cd   :  { %1645 = vmatprep.mubr.f32.mxu0 %v1569_v17  ;;  %2374 = vmatprep.mubr.f32.mxu1 %v2298_v18  ;;  %v1905_v1 = vrot.slane %v9144_v51, 3  ;;  %v1903_v0 = vrot.slane %v9137_v53, 3  ;;  %v2031_v30 = vrot.slane %v9126_v39, 4  ;;  %v2027_v59 = vrot.slane %v9099_v55, 4  ;;  %v1500_v17 = vld [vmem:[%s11787_s6 + $0x58] sm:$0xff] }
 0x2ce   :  { %1646 = vmatmul.mubr.f32.gmra.mrb[10].mxu0 %v1567_v11  ;;  %2375 = vmatmul.mubr.f32.gmra.mrb[8].mxu1 %v2296_v13  ;;  %v2028_v10 = vrot.slane %v9121_v35, 4  ;;  %v2035_v26 = vrot.slane %v9144_v51, 4  ;;  %v2033_v47 = vrot.slane %v9137_v53, 4  ;;  %v2161_v42 = vrot.slane %v9111_v28, 5 }
 0x2cf   :  { %6759 = vmatpush3.bf16.msra.mxu0 %v6758_v27  ;;  %1649 = vmatprep.mubr.f32.mxu0 %v1568_v8  ;;  %v9204_v33 = vsel %vm1190_vm4, %v1901_v7, %v1905_v1  ;;  %v9209_v60 = vsel %vm1190_vm4, %v1898_v9, %v1903_v0  ;;  %v9212_v23 = vsel %vm1352_vm5, %v2030_v29, %v2031_v30  ;;  %v1496_v27 = vld [vmem:[%s11787_s6 + $0x38] sm:$0xff]  ;;  %v2162_v41 = vrot.slane %v9126_v39, 5  ;;  %v9283_v7 = vld [vmem:[#allocation3] sm:$0xff] }
 0x2d0   :  { %2378 = vmatprep.mubr.f32.mxu1 %v2297_v5  ;;  %6761 = vmatprep.subr.bf16.mxu0 %v6760_v34  ;;  %v9225_v38 = vsel %vm1352_vm5, %v2027_v59, %v2028_v10  ;;  %v9230_v40 = vsel %vm1352_vm5, %v2031_v30, %v2035_v26  ;;  %v9241_v34 = vsel %vm1352_vm5, %v2028_v10, %v2033_v47  ;;  %v2158_v50 = vrot.slane %v9099_v55, 5  ;;  %v1517_v29 = vld [vmem:[%s11787_s6 + $0xe0] sm:$0xff]  ;;  %v1518_v30 = vld [vmem:[%s11787_s6 + $0xe8] sm:$0xff] }
 0x2d1   :  { %v2159_v45 = vrot.slane %v9121_v35, 5  ;;  %v2166_v12 = vrot.slane %v9144_v51, 5  ;;  %v2164_v43 = vrot.slane %v9137_v53, 5  ;;  %v6766_v44 = vpack.c.bf16 %v1496_v27, %v1495_v21  ;;  %v1501_v10 = vld [vmem:[%s11787_s6 + $0x60] sm:$0xff]  ;;  %v1519_v21 = vld [vmem:[%s11787_s6 + $0xf0] sm:$0xff]  ;;  %v1520_v27 = vld [vmem:[%s11787_s6 + $0xf8] sm:$0xff] }
 0x2d2   :  { %1650 = vmatmul.mubr.f32.gmra.mrb[12].mxu0 %v1566_v63  ;;  %2379 = vmatmul.mubr.f32.gmra.mrb[10].mxu1 %v2295_v2  ;;  %v9251_v46 = vsel %vm2157_vm7, %v2161_v42, %v2162_v41  ;;  %v2423_v49 = vrot.slane %v9111_v28, 7  ;;  %v2424_v6 = vrot.slane %v9126_v39, 7  ;;  %v6768_v31 = vpack.c.bf16 %v1514_v22, %v1513_v14  ;;  %v1503_v42 = vld [vmem:[%s11787_s6 + $0x70] sm:$0xff]  ;;  %52 = vst.msk [vmem:[#allocation2 + $0x8] sm:$0xff] %vm50_vm10, %v9283_v7 }
 0x2d3   :  { %6763 = vmatpush3.bf16.msra.mxu0 %v6762_v56  ;;  %1719 = vmatprep.mubr.f32.mxu0 %v9111_v28  ;;  %v9262_v57 = vsel %vm2157_vm7, %v2158_v50, %v2159_v45  ;;  %v9267_v58 = vsel %vm2157_vm7, %v2162_v41, %v2166_v12  ;;  %v1515_v28 = vld [vmem:[%s11787_s6 + $0xd0] sm:$0xff]  ;;  %v9278_v63 = vsel %vm2157_vm7, %v2159_v45, %v2164_v43  ;;  %v2420_v8 = vrot.slane %v9099_v55, 7  ;;  %v1504_v41 = vld [vmem:[%s11787_s6 + $0x78] sm:$0xff]  ;;  %v5502_v50 = vld [vmem:[%s11787_s6 + $0x280] sm:$0xff] }
 0x2d4   :  { %6765 = vmatprep.subr.bf16.mxu0 %v6764_v3  ;;  %v9281_v2 = vsel %vm2419_vm8, %v2423_v49, %v2424_v6  ;;  %2646 = vmatprep.mubr.f32.mxu1 %v9283_v7  ;;  %v2421_v5 = vrot.slane %v9121_v35, 7  ;;  %v2428_v9 = vrot.slane %v9144_v51, 7  ;;  %v2426_v11 = vrot.slane %v9137_v53, 7  ;;  %v1502_v3 = vld [vmem:[%s11787_s6 + $0x68] sm:$0xff]  ;;  %54 = vst.msk [vmem:[#allocation2 + $0x18] sm:$0xff] %vm50_vm10, %v9283_v7  ;;  %51 = vst.msk [vmem:[#allocation2] sm:$0xff] %vm50_vm10, %v9283_v7 }
 0x2d5   :  { %v6770_v13 = vpack.c.bf16 %v1498_v54, %v1497_v52  ;;  %v6772_v15 = vpack.c.bf16 %v1516_v61, %v1515_v28  ;;  %v6774_v56 = vpack.c.bf16 %v1500_v17, %v1499_v32  ;;  %v6776_v59 = vpack.c.bf16 %v1518_v30, %v1517_v29  ;;  %v5503_v45 = vld [vmem:[%s11787_s6 + $0x288] sm:$0xff]  ;;  %v5504_v52 = vld [vmem:[%s11787_s6 + $0x290] sm:$0xff]  ;;  %v5505_v54 = vld [vmem:[%s11787_s6 + $0x298] sm:$0xff]  ;;  %53 = vst.msk [vmem:[#allocation2 + $0x10] sm:$0xff] %vm50_vm10, %v9283_v7 }
 0x2d6   :  { %v9297_v18 = vsel %vm2419_vm8, %v2420_v8, %v2421_v5  ;;  %v9302_v48 = vsel %vm2419_vm8, %v2424_v6, %v2428_v9  ;;  %v9307_v20 = vsel %vm2419_vm8, %v2421_v5, %v2426_v11  ;;  %v6778_v14 = vpack.c.bf16 %v1502_v3, %v1501_v10  ;;  %v5486_v6 = vld [vmem:[%s11787_s6 + $0x200] sm:$0xff]  ;;  %v5488_v8 = vld [vmem:[%s11787_s6 + $0x210] sm:$0xff]  ;;  %v5489_v5 = vld [vmem:[%s11787_s6 + $0x218] sm:$0xff] }
 0x2d7   :  { %6767 = vmatpush3.bf16.msra.mxu0 %v6766_v44  ;;  %v6780_v22 = vpack.c.bf16 %v1520_v27, %v1519_v21  ;;  %v6782_v44 = vpack.c.bf16 %v1504_v41, %v1503_v42  ;;  %v6784_v49 = vpack.c.bf16 %v5503_v45, %v5502_v50  ;;  %v6788_v61 = vpack.c.bf16 %v5505_v54, %v5504_v52  ;;  %v5490_v29 = vld [vmem:[%s11787_s6 + $0x220] sm:$0xff]  ;;  %v5491_v30 = vld [vmem:[%s11787_s6 + $0x228] sm:$0xff]  ;;  %v5492_v10 = vld [vmem:[%s11787_s6 + $0x230] sm:$0xff] }
 0x2d8   :  { %6769 = vmatprep.subr.bf16.mxu0 %v6768_v31  ;;  %v5487_v31 = vld [vmem:[%s11787_s6 + $0x208] sm:$0xff]  ;;  %v6790_v32 = vpack.c.bf16 %v5489_v5, %v5488_v8  ;;  %v5493_v3 = vld [vmem:[%s11787_s6 + $0x238] sm:$0xff]  ;;  %v5510_v21 = vld [vmem:[%s11787_s6 + $0x2c0] sm:$0xff] }
 0x2d9   :  { %v6786_v28 = vpack.c.bf16 %v5487_v31, %v5486_v6  ;;  %v6798_v27 = vpack.c.bf16 %v5493_v3, %v5492_v10  ;;  %v5495_v42 = vld [vmem:[%s11787_s6 + $0x248] sm:$0xff]  ;;  %v5512_v41 = vld [vmem:[%s11787_s6 + $0x2d0] sm:$0xff]  ;;  %v5513_v50 = vld [vmem:[%s11787_s6 + $0x2d8] sm:$0xff] }
 0x2da   :  { %v6804_v45 = vpack.c.bf16 %v5513_v50, %v5512_v41  ;;  %v5514_v6 = vld [vmem:[%s11787_s6 + $0x2e0] sm:$0xff]  ;;  %v5515_v31 = vld [vmem:[%s11787_s6 + $0x2e8] sm:$0xff]  ;;  %v5516_v8 = vld [vmem:[%s11787_s6 + $0x2f0] sm:$0xff] }
 0x2db   :  { %6771 = vmatpush3.bf16.msra.mxu0 %v6770_v13  ;;  %v5506_v13 = vld [vmem:[%s11787_s6 + $0x2a0] sm:$0xff]  ;;  %v6808_v54 = vpack.c.bf16 %v5515_v31, %v5514_v6  ;;  %v5517_v5 = vld [vmem:[%s11787_s6 + $0x2f8] sm:$0xff]  ;;  %v5536_v10 = vld [vmem:[%s11787_s6 + $0x390] sm:$0xff] }
 0x2dc   :  { %6773 = vmatprep.subr.bf16.mxu0 %v6772_v15  ;;  %v5507_v15 = vld [vmem:[%s11787_s6 + $0x2a8] sm:$0xff]  ;;  %v5537_v3 = vld [vmem:[%s11787_s6 + $0x398] sm:$0xff]  ;;  %v5524_v6 = vld [vmem:[%s11787_s6 + $0x330] sm:$0xff] }
 0x2dd   :  { %v6792_v17 = vpack.c.bf16 %v5507_v15, %v5506_v13  ;;  %v6812_v15 = vpack.c.bf16 %v5517_v5, %v5516_v8  ;;  %v5525_v31 = vld [vmem:[%s11787_s6 + $0x338] sm:$0xff]  ;;  %v5544_v8 = vld [vmem:[%s11787_s6 + $0x3d0] sm:$0xff] }
 0x2df   :  { %6775 = vmatpush3.bf16.msra.mxu0 %v6774_v56  ;;  %v5508_v56 = vld [vmem:[%s11787_s6 + $0x2b0] sm:$0xff] }
 0x2e0   :  { %6777 = vmatprep.subr.bf16.mxu0 %v6776_v59 }
 0x2e3   :  { %6779 = vmatpush3.bf16.msra.mxu0 %v6778_v14 }
 0x2e4   :  { %6781 = vmatprep.subr.bf16.mxu0 %v6780_v22  ;;  %v5494_v22 = vld [vmem:[%s11787_s6 + $0x240] sm:$0xff] }
 0x2e7   :  { %6783 = vmatpush3.bf16.msra.mxu0 %v6782_v44  ;;  %v5496_v44 = vld [vmem:[%s11787_s6 + $0x250] sm:$0xff] }
 0x2e8   :  { %6785 = vmatprep.subr.bf16.mxu0 %v6784_v49  ;;  %v5497_v49 = vld [vmem:[%s11787_s6 + $0x258] sm:$0xff] }
 0x2e9   :  { %v6806_v52 = vpack.c.bf16 %v5497_v49, %v5496_v44  ;;  %v5540_v44 = vld [vmem:[%s11787_s6 + $0x3b0] sm:$0xff] }
 0x2ea   :  { %1720 = vmatmul.mubr.f32.vlgmr.msra.gmra.mrb[14].mxu0 %v9099_v55  ;;  %v5509_v55 = vld [vmem:[%s11787_s6 + $0x2b8] sm:$0xff] }
 0x2eb   :  { %1724 = vmatprep.mubr.f32.mxu0 %v9126_v39  ;;  %6787 = vmatpush3.bf16.msra.mxu0 %v6786_v28  ;;  %v6794_v39 = vpack.c.bf16 %v5491_v30, %v5490_v29  ;;  %v6796_v59 = vpack.c.bf16 %v5509_v55, %v5508_v56  ;;  %v5498_v28 = vld [vmem:[%s11787_s6 + $0x260] sm:$0xff]  ;;  %v5535_v30 = vld [vmem:[%s11787_s6 + $0x388] sm:$0xff] }
 0x2ec   :  { %6789 = vmatprep.subr.bf16.mxu0 %v6788_v61  ;;  %v5499_v61 = vld [vmem:[%s11787_s6 + $0x268] sm:$0xff]  ;;  %v5534_v29 = vld [vmem:[%s11787_s6 + $0x380] sm:$0xff] }
 0x2ed   :  { %v6810_v13 = vpack.c.bf16 %v5499_v61, %v5498_v28  ;;  %v6816_v55 = vpack.c.bf16 %v5535_v30, %v5534_v29  ;;  %v5526_v28 = vld [vmem:[%s11787_s6 + $0x340] sm:$0xff]  ;;  %v5527_v61 = vld [vmem:[%s11787_s6 + $0x348] sm:$0xff] }
 0x2ee   :  { %1725 = vmatmul.mubr.f32.gmra.mrb[16].mxu0 %v9121_v35  ;;  %v5511_v35 = vld [vmem:[%s11787_s6 + $0x2c8] sm:$0xff] }
 0x2ef   :  { %1728 = vmatprep.mubr.f32.mxu0 %v9144_v51  ;;  %6791 = vmatpush3.bf16.msra.mxu0 %v6790_v32  ;;  %v6800_v14 = vpack.c.bf16 %v5511_v35, %v5510_v21  ;;  %v5500_v32 = vld [vmem:[%s11787_s6 + $0x270] sm:$0xff]  ;;  %v6820_v35 = vpack.c.bf16 %v5537_v3, %v5536_v10 }
 0x2f0   :  { %6793 = vmatprep.subr.bf16.mxu0 %v6792_v17  ;;  %v5501_v17 = vld [vmem:[%s11787_s6 + $0x278] sm:$0xff] }
 0x2f1   :  { %v6814_v56 = vpack.c.bf16 %v5501_v17, %v5500_v32  ;;  %v5546_v32 = vld [vmem:[%s11787_s6 + $0x3e0] sm:$0xff]  ;;  %v5547_v17 = vld [vmem:[%s11787_s6 + $0x3e8] sm:$0xff] }
 0x2f2   :  { %1729 = vmatmul.mubr.f32.gmra.mrb[18].mxu0 %v9137_v53  ;;  %v6840_v30 = vpack.c.bf16 %v5547_v17, %v5546_v32  ;;  %v5576_v32 = vld [vmem:[%s11787_s6 + $0x4d0] sm:$0xff] }
 0x2f3   :  { %6795 = vmatpush3.bf16.msra.mxu0 %v6794_v39  ;;  %1847 = vmatprep.mubr.f32.mxu0 %v9149_v62  ;;  %v6802_v62 = vpack.c.bf16 %v5495_v42, %v5494_v22  ;;  %v5518_v39 = vld [vmem:[%s11787_s6 + $0x300] sm:$0xff]  ;;  %v5539_v42 = vld [vmem:[%s11787_s6 + $0x3a8] sm:$0xff] }
 0x2f4   :  { %6797 = vmatprep.subr.bf16.mxu0 %v6796_v59  ;;  %v5519_v59 = vld [vmem:[%s11787_s6 + $0x308] sm:$0xff]  ;;  %v5538_v22 = vld [vmem:[%s11787_s6 + $0x3a0] sm:$0xff] }
 0x2f5   :  { %v6818_v21 = vpack.c.bf16 %v5519_v59, %v5518_v39  ;;  %v6824_v50 = vpack.c.bf16 %v5539_v42, %v5538_v22  ;;  %v5548_v39 = vld [vmem:[%s11787_s6 + $0x3f0] sm:$0xff]  ;;  %v5549_v59 = vld [vmem:[%s11787_s6 + $0x3f8] sm:$0xff] }
 0x2f6   :  { %v6844_v3 = vpack.c.bf16 %v5549_v59, %v5548_v39 }
 0x2f7   :  { %6799 = vmatpush3.bf16.msra.mxu0 %v6798_v27  ;;  %v5520_v27 = vld [vmem:[%s11787_s6 + $0x310] sm:$0xff] }
 0x2f8   :  { %6801 = vmatprep.subr.bf16.mxu0 %v6800_v14  ;;  %v5521_v14 = vld [vmem:[%s11787_s6 + $0x318] sm:$0xff] }
 0x2f9   :  { %v6822_v41 = vpack.c.bf16 %v5521_v14, %v5520_v27  ;;  %v5566_v27 = vld [vmem:[%s11787_s6 + $0x480] sm:$0xff]  ;;  %v5567_v14 = vld [vmem:[%s11787_s6 + $0x488] sm:$0xff] }
 0x2fa   :  { %v6848_v42 = vpack.c.bf16 %v5567_v14, %v5566_v27 }
 0x2fb   :  { %6803 = vmatpush3.bf16.msra.mxu0 %v6802_v62  ;;  %v5522_v62 = vld [vmem:[%s11787_s6 + $0x320] sm:$0xff] }
 0x2fc   :  { %6805 = vmatprep.subr.bf16.mxu0 %v6804_v45  ;;  %v5523_v45 = vld [vmem:[%s11787_s6 + $0x328] sm:$0xff] }
 0x2ff   :  { %6807 = vmatpush3.bf16.msra.mxu0 %v6806_v52  ;;  %v5542_v52 = vld [vmem:[%s11787_s6 + $0x3c0] sm:$0xff] }
 0x300   :  { %6809 = vmatprep.subr.bf16.mxu0 %v6808_v54 }
 0x303   :  { %6811 = vmatpush3.bf16.msra.mxu0 %v6810_v13  ;;  %v5528_v13 = vld [vmem:[%s11787_s6 + $0x350] sm:$0xff] }
 0x304   :  { %6813 = vmatprep.subr.bf16.mxu0 %v6812_v15  ;;  %v5529_v15 = vld [vmem:[%s11787_s6 + $0x358] sm:$0xff] }
 0x305   :  { %v6838_v29 = vpack.c.bf16 %v5529_v15, %v5528_v13  ;;  %v5558_v13 = vld [vmem:[%s11787_s6 + $0x440] sm:$0xff]  ;;  %v5559_v15 = vld [vmem:[%s11787_s6 + $0x448] sm:$0xff] }
 0x307   :  { %6815 = vmatpush3.bf16.msra.mxu0 %v6814_v56  ;;  %v5530_v56 = vld [vmem:[%s11787_s6 + $0x360] sm:$0xff] }
 0x308   :  { %6817 = vmatprep.subr.bf16.mxu0 %v6816_v55  ;;  %v5531_v55 = vld [vmem:[%s11787_s6 + $0x368] sm:$0xff] }
 0x309   :  { %v6842_v10 = vpack.c.bf16 %v5531_v55, %v5530_v56  ;;  %v5578_v56 = vld [vmem:[%s11787_s6 + $0x4e0] sm:$0xff]  ;;  %v5579_v55 = vld [vmem:[%s11787_s6 + $0x4e8] sm:$0xff] }
 0x30a   :  { %1848 = vmatmul.mubr.f32.vlgmr.msra.gmra.mrb[20].mxu0 %v9142_v24  ;;  %v5541_v24 = vld [vmem:[%s11787_s6 + $0x3b8] sm:$0xff]  ;;  %v6872_v59 = vpack.c.bf16 %v5579_v55, %v5578_v56 }
 0x30b   :  { %1852 = vmatprep.mubr.f32.mxu0 %v9180_v19  ;;  %6819 = vmatpush3.bf16.msra.mxu0 %v6818_v21  ;;  %v6826_v19 = vpack.c.bf16 %v5523_v45, %v5522_v62  ;;  %v6828_v49 = vpack.c.bf16 %v5541_v24, %v5540_v44  ;;  %v5532_v21 = vld [vmem:[%s11787_s6 + $0x370] sm:$0xff]  ;;  %v5569_v45 = vld [vmem:[%s11787_s6 + $0x498] sm:$0xff] }
 0x30c   :  { %6821 = vmatprep.subr.bf16.mxu0 %v6820_v35  ;;  %v5533_v35 = vld [vmem:[%s11787_s6 + $0x378] sm:$0xff]  ;;  %v5568_v62 = vld [vmem:[%s11787_s6 + $0x490] sm:$0xff] }
 0x30d   :  { %v6846_v22 = vpack.c.bf16 %v5533_v35, %v5532_v21  ;;  %v6852_v24 = vpack.c.bf16 %v5569_v45, %v5568_v62  ;;  %v5580_v21 = vld [vmem:[%s11787_s6 + $0x4f0] sm:$0xff]  ;;  %v5581_v35 = vld [vmem:[%s11787_s6 + $0x4f8] sm:$0xff] }
 0x30e   :  { %1853 = vmatmul.mubr.f32.gmra.mrb[22].mxu0 %v9170_v36  ;;  %v6830_v36 = vpack.c.bf16 %v5525_v31, %v5524_v6  ;;  %v5570_v6 = vld [vmem:[%s11787_s6 + $0x4a0] sm:$0xff]  ;;  %v5571_v31 = vld [vmem:[%s11787_s6 + $0x4a8] sm:$0xff]  ;;  %v6876_v14 = vpack.c.bf16 %v5581_v35, %v5580_v21 }
 0x30f   :  { %1856 = vmatprep.mubr.f32.mxu0 %v1775_v25  ;;  %6823 = vmatpush3.bf16.msra.mxu0 %v6822_v41  ;;  %v5543_v25 = vld [vmem:[%s11787_s6 + $0x3c8] sm:$0xff]  ;;  %v5550_v41 = vld [vmem:[%s11787_s6 + $0x400] sm:$0xff] }
 0x310   :  { %6825 = vmatprep.subr.bf16.mxu0 %v6824_v50  ;;  %v6832_v54 = vpack.c.bf16 %v5543_v25, %v5542_v52  ;;  %v5551_v50 = vld [vmem:[%s11787_s6 + $0x408] sm:$0xff]  ;;  %v6856_v25 = vpack.c.bf16 %v5571_v31, %v5570_v6 }
 0x311   :  { %v6850_v44 = vpack.c.bf16 %v5551_v50, %v5550_v41  ;;  %v5598_v41 = vld [vmem:[%s11787_s6 + $0x580] sm:$0xff]  ;;  %v5599_v50 = vld [vmem:[%s11787_s6 + $0x588] sm:$0xff] }
 0x312   :  { %1857 = vmatmul.mubr.f32.gmra.mrb[24].mxu0 %v1773_v4  ;;  %v5545_v4 = vld [vmem:[%s11787_s6 + $0x3d8] sm:$0xff]  ;;  %v6880_v45 = vpack.c.bf16 %v5599_v50, %v5598_v41 }
 0x313   :  { %6827 = vmatpush3.bf16.msra.mxu0 %v6826_v19  ;;  %1977 = vmatprep.mubr.f32.mxu0 %v9173_v16  ;;  %v6834_v16 = vpack.c.bf16 %v5527_v61, %v5526_v28  ;;  %v6836_v5 = vpack.c.bf16 %v5545_v4, %v5544_v8  ;;  %v5552_v19 = vld [vmem:[%s11787_s6 + $0x410] sm:$0xff]  ;;  %v5557_v4 = vld [vmem:[%s11787_s6 + $0x438] sm:$0xff] }
 0x314   :  { %6829 = vmatprep.subr.bf16.mxu0 %v6828_v49  ;;  %v5553_v49 = vld [vmem:[%s11787_s6 + $0x418] sm:$0xff]  ;;  %v5572_v28 = vld [vmem:[%s11787_s6 + $0x4b0] sm:$0xff] }
 0x315   :  { %v6854_v52 = vpack.c.bf16 %v5553_v49, %v5552_v19  ;;  %v5556_v8 = vld [vmem:[%s11787_s6 + $0x430] sm:$0xff]  ;;  %v5601_v49 = vld [vmem:[%s11787_s6 + $0x598] sm:$0xff] }
 0x316   :  { %v5600_v19 = vld [vmem:[%s11787_s6 + $0x590] sm:$0xff] }
 0x317   :  { %6831 = vmatpush3.bf16.msra.mxu0 %v6830_v36  ;;  %v5554_v36 = vld [vmem:[%s11787_s6 + $0x420] sm:$0xff]  ;;  %v6884_v31 = vpack.c.bf16 %v5601_v49, %v5600_v19 }
 0x318   :  { %6833 = vmatprep.subr.bf16.mxu0 %v6832_v54  ;;  %v5555_v54 = vld [vmem:[%s11787_s6 + $0x428] sm:$0xff] }
 0x31b   :  { %6835 = vmatpush3.bf16.msra.mxu0 %v6834_v16  ;;  %v5574_v16 = vld [vmem:[%s11787_s6 + $0x4c0] sm:$0xff] }
 0x31c   :  { %6837 = vmatprep.subr.bf16.mxu0 %v6836_v5 }
 0x31f   :  { %6839 = vmatpush3.bf16.msra.mxu0 %v6838_v29  ;;  %v5560_v29 = vld [vmem:[%s11787_s6 + $0x450] sm:$0xff] }
 0x320   :  { %6841 = vmatprep.subr.bf16.mxu0 %v6840_v30  ;;  %v5561_v30 = vld [vmem:[%s11787_s6 + $0x458] sm:$0xff] }
 0x321   :  { %v6870_v39 = vpack.c.bf16 %v5561_v30, %v5560_v29  ;;  %v5610_v29 = vld [vmem:[%s11787_s6 + $0x5e0] sm:$0xff]  ;;  %v5611_v30 = vld [vmem:[%s11787_s6 + $0x5e8] sm:$0xff] }
 0x322   :  { %v6904_v55 = vpack.c.bf16 %v5611_v30, %v5610_v29 }
 0x323   :  { %6843 = vmatpush3.bf16.msra.mxu0 %v6842_v10  ;;  %v5562_v10 = vld [vmem:[%s11787_s6 + $0x460] sm:$0xff] }
 0x324   :  { %6845 = vmatprep.subr.bf16.mxu0 %v6844_v3  ;;  %v5563_v3 = vld [vmem:[%s11787_s6 + $0x468] sm:$0xff] }
 0x325   :  { %v6874_v27 = vpack.c.bf16 %v5563_v3, %v5562_v10  ;;  %v5612_v10 = vld [vmem:[%s11787_s6 + $0x5f0] sm:$0xff]  ;;  %v5613_v3 = vld [vmem:[%s11787_s6 + $0x5f8] sm:$0xff] }
 0x326   :  { %v6908_v35 = vpack.c.bf16 %v5613_v3, %v5612_v10 }
 0x327   :  { %6847 = vmatpush3.bf16.msra.mxu0 %v6846_v22  ;;  %v5564_v22 = vld [vmem:[%s11787_s6 + $0x470] sm:$0xff] }
 0x328   :  { %6849 = vmatprep.subr.bf16.mxu0 %v6848_v42  ;;  %v5565_v42 = vld [vmem:[%s11787_s6 + $0x478] sm:$0xff] }
 0x329   :  { %v6878_v62 = vpack.c.bf16 %v5565_v42, %v5564_v22  ;;  %v5662_v22 = vld [vmem:[%s11787_s6 + $0x780] sm:$0xff]  ;;  %v5663_v42 = vld [vmem:[%s11787_s6 + $0x788] sm:$0xff] }
 0x32a   :  { %1978 = vmatmul.mubr.f32.vlgmr.msra.gmra.mrb[26].mxu0 %v9183_v37  ;;  %v5573_v37 = vld [vmem:[%s11787_s6 + $0x4b8] sm:$0xff]  ;;  %v6944_v50 = vpack.c.bf16 %v5663_v42, %v5662_v22 }
 0x32b   :  { %1982 = vmatprep.mubr.f32.mxu0 %v9204_v33  ;;  %6851 = vmatpush3.bf16.msra.mxu0 %v6850_v44  ;;  %v6858_v33 = vpack.c.bf16 %v5555_v54, %v5554_v36  ;;  %v6860_v61 = vpack.c.bf16 %v5573_v37, %v5572_v28  ;;  %v5582_v44 = vld [vmem:[%s11787_s6 + $0x500] sm:$0xff]  ;;  %v5603_v54 = vld [vmem:[%s11787_s6 + $0x5a8] sm:$0xff] }
 0x32c   :  { %6853 = vmatprep.subr.bf16.mxu0 %v6852_v24  ;;  %v5583_v24 = vld [vmem:[%s11787_s6 + $0x508] sm:$0xff]  ;;  %v5602_v36 = vld [vmem:[%s11787_s6 + $0x5a0] sm:$0xff] }
 0x32d   :  { %v6882_v6 = vpack.c.bf16 %v5583_v24, %v5582_v44  ;;  %v6888_v37 = vpack.c.bf16 %v5603_v54, %v5602_v36  ;;  %v5664_v44 = vld [vmem:[%s11787_s6 + $0x790] sm:$0xff]  ;;  %v5665_v24 = vld [vmem:[%s11787_s6 + $0x798] sm:$0xff] }
 0x32e   :  { %1983 = vmatmul.mubr.f32.gmra.mrb[28].mxu0 %v9209_v60  ;;  %v6862_v60 = vpack.c.bf16 %v5557_v4, %v5556_v8  ;;  %v5604_v8 = vld [vmem:[%s11787_s6 + $0x5b0] sm:$0xff]  ;;  %v6948_v49 = vpack.c.bf16 %v5665_v24, %v5664_v44 }
 0x32f   :  { %1986 = vmatprep.mubr.f32.mxu0 %v1905_v1  ;;  %6855 = vmatpush3.bf16.msra.mxu0 %v6854_v52  ;;  %v5575_v1 = vld [vmem:[%s11787_s6 + $0x4c8] sm:$0xff]  ;;  %v5584_v52 = vld [vmem:[%s11787_s6 + $0x510] sm:$0xff] }
 0x330   :  { %6857 = vmatprep.subr.bf16.mxu0 %v6856_v25  ;;  %v6864_v5 = vpack.c.bf16 %v5575_v1, %v5574_v16  ;;  %v5585_v25 = vld [vmem:[%s11787_s6 + $0x518] sm:$0xff]  ;;  %v5588_v16 = vld [vmem:[%s11787_s6 + $0x530] sm:$0xff] }
 0x331   :  { %v6886_v28 = vpack.c.bf16 %v5585_v25, %v5584_v52  ;;  %v5589_v1 = vld [vmem:[%s11787_s6 + $0x538] sm:$0xff]  ;;  %v5666_v52 = vld [vmem:[%s11787_s6 + $0x7a0] sm:$0xff]  ;;  %v5667_v25 = vld [vmem:[%s11787_s6 + $0x7a8] sm:$0xff] }
 0x332   :  { %1987 = vmatmul.mubr.f32.gmra.mrb[30].mxu0 %v1903_v0  ;;  %v5577_v0 = vld [vmem:[%s11787_s6 + $0x4d8] sm:$0xff]  ;;  %v6952_v54 = vpack.c.bf16 %v5667_v25, %v5666_v52 }
 0x333   :  { %6859 = vmatpush3.bf16.msra.mxu0 %v6858_v33  ;;  %2107 = vmatprep.mubr.f32.mxu0 %v9212_v23  ;;  %v6866_v23 = vpack.c.bf16 %v5559_v15, %v5558_v13  ;;  %v6868_v17 = vpack.c.bf16 %v5577_v0, %v5576_v32  ;;  %v5586_v33 = vld [vmem:[%s11787_s6 + $0x520] sm:$0xff]  ;;  %v5591_v15 = vld [vmem:[%s11787_s6 + $0x548] sm:$0xff]  ;;  %v5608_v32 = vld [vmem:[%s11787_s6 + $0x5d0] sm:$0xff] }
 0x334   :  { %6861 = vmatprep.subr.bf16.mxu0 %v6860_v61  ;;  %v5587_v61 = vld [vmem:[%s11787_s6 + $0x528] sm:$0xff]  ;;  %v5590_v13 = vld [vmem:[%s11787_s6 + $0x540] sm:$0xff] }
 0x337   :  { %6863 = vmatpush3.bf16.msra.mxu0 %v6862_v60  ;;  %v5606_v60 = vld [vmem:[%s11787_s6 + $0x5c0] sm:$0xff] }
 0x338   :  { %6865 = vmatprep.subr.bf16.mxu0 %v6864_v5 }
 0x33b   :  { %6867 = vmatpush3.bf16.msra.mxu0 %v6866_v23  ;;  %v5592_v23 = vld [vmem:[%s11787_s6 + $0x550] sm:$0xff] }
 0x33c   :  { %6869 = vmatprep.subr.bf16.mxu0 %v6868_v17  ;;  %v5593_v17 = vld [vmem:[%s11787_s6 + $0x558] sm:$0xff] }
 0x33d   :  { %v6902_v56 = vpack.c.bf16 %v5593_v17, %v5592_v23  ;;  %v5676_v23 = vld [vmem:[%s11787_s6 + $0x7f0] sm:$0xff]  ;;  %v5677_v17 = vld [vmem:[%s11787_s6 + $0x7f8] sm:$0xff] }
 0x33e   :  { %v6972_v30 = vpack.c.bf16 %v5677_v17, %v5676_v23 }
 0x33f   :  { %6871 = vmatpush3.bf16.msra.mxu0 %v6870_v39  ;;  %v5594_v39 = vld [vmem:[%s11787_s6 + $0x560] sm:$0xff] }
 0x340   :  { %6873 = vmatprep.subr.bf16.mxu0 %v6872_v59  ;;  %v5595_v59 = vld [vmem:[%s11787_s6 + $0x568] sm:$0xff] }
 0x341   :  { %v6906_v21 = vpack.c.bf16 %v5595_v59, %v5594_v39  ;;  %v2535_v59 = vld [vmem:[%s11782_s1] sm:$0x3]  ;;  %s7730_s1 = smov 96  }
 0x342   :  { %2537 = vrot.lane.b32.xlu0 %v2535_v59, %s7729_s21 }
 0x343   :  { %6875 = vmatpush3.bf16.msra.mxu0 %v6874_v27  ;;  %v5596_v27 = vld [vmem:[%s11787_s6 + $0x570] sm:$0xff] }
 0x344   :  { %6877 = vmatprep.subr.bf16.mxu0 %v6876_v14  ;;  %v5597_v14 = vld [vmem:[%s11787_s6 + $0x578] sm:$0xff] }
 0x345   :  { %v6910_v41 = vpack.c.bf16 %v5597_v14, %v5596_v27 }
 0x347   :  { %6879 = vmatpush3.bf16.msra.mxu0 %v6878_v62  ;;  %v5646_v62 = vld [vmem:[%s11787_s6 + $0x700] sm:$0xff] }
 0x348   :  { %6881 = vmatprep.subr.bf16.mxu0 %v6880_v45  ;;  %v5647_v45 = vld [vmem:[%s11787_s6 + $0x708] sm:$0xff] }
 0x349   :  { %v6946_v19 = vpack.c.bf16 %v5647_v45, %v5646_v62 }
 0x34a   :  { %2108 = vmatmul.mubr.f32.vlgmr.msra.gmra.mrb[32].mxu0 %v9225_v38  ;;  %v5605_v38 = vld [vmem:[%s11787_s6 + $0x5b8] sm:$0xff] }
 0x34b   :  { %2112 = vmatprep.mubr.f32.mxu0 %v9230_v40  ;;  %6883 = vmatpush3.bf16.msra.mxu0 %v6882_v6  ;;  %v6890_v40 = vpack.c.bf16 %v5587_v61, %v5586_v33  ;;  %v6892_v4 = vpack.c.bf16 %v5605_v38, %v5604_v8  ;;  %v5648_v6 = vld [vmem:[%s11787_s6 + $0x710] sm:$0xff]  ;;  %v5653_v38 = vld [vmem:[%s11787_s6 + $0x738] sm:$0xff] }
 0x34c   :  { %6885 = vmatprep.subr.bf16.mxu0 %v6884_v31  ;;  %v5649_v31 = vld [vmem:[%s11787_s6 + $0x718] sm:$0xff]  ;;  %v5668_v33 = vld [vmem:[%s11787_s6 + $0x7b0] sm:$0xff] }
 0x34d   :  { %v6950_v36 = vpack.c.bf16 %v5649_v31, %v5648_v6  ;;  %v5652_v8 = vld [vmem:[%s11787_s6 + $0x730] sm:$0xff] }
 0x34e   :  { %2113 = vmatmul.mubr.f32.gmra.mrb[34].mxu0 %v9241_v34  ;;  %v6894_v34 = vpack.c.bf16 %v5589_v1, %v5588_v16  ;;  %v5654_v16 = vld [vmem:[%s11787_s6 + $0x740] sm:$0xff]  ;;  %v5655_v1 = vld [vmem:[%s11787_s6 + $0x748] sm:$0xff] }
 0x34f   :  { %2116 = vmatprep.mubr.f32.mxu0 %v2035_v26  ;;  %6887 = vmatpush3.bf16.msra.mxu0 %v6886_v28  ;;  %v5607_v26 = vld [vmem:[%s11787_s6 + $0x5c8] sm:$0xff]  ;;  %v5650_v28 = vld [vmem:[%s11787_s6 + $0x720] sm:$0xff] }
 0x350   :  { %6889 = vmatprep.subr.bf16.mxu0 %v6888_v37  ;;  %v6896_v5 = vpack.c.bf16 %v5607_v26, %v5606_v60  ;;  %v5651_v37 = vld [vmem:[%s11787_s6 + $0x728] sm:$0xff]  ;;  %v5672_v60 = vld [vmem:[%s11787_s6 + $0x7d0] sm:$0xff] }
 0x352   :  { %2117 = vmatmul.mubr.f32.gmra.mrb[36].mxu0 %v2033_v47  ;;  %v5609_v47 = vld [vmem:[%s11787_s6 + $0x5d8] sm:$0xff] }
 0x353   :  { %6891 = vmatpush3.bf16.msra.mxu0 %v6890_v40  ;;  %2238 = vmatprep.mubr.f32.mxu0 %v9251_v46  ;;  %v6898_v46 = vpack.c.bf16 %v5591_v15, %v5590_v13  ;;  %v6900_v0 = vpack.c.bf16 %v5609_v47, %v5608_v32  ;;  %v5670_v40 = vld [vmem:[%s11787_s6 + $0x7c0] sm:$0xff]  ;;  %v5675_v15 = vld [vmem:[%s11787_s6 + $0x7e8] sm:$0xff] }
 0x354   :  { %6893 = vmatprep.subr.bf16.mxu0 %v6892_v4  ;;  %v5674_v13 = vld [vmem:[%s11787_s6 + $0x7e0] sm:$0xff] }
 0x355   :  { %v6968_v47 = vpack.c.bf16 %v5675_v15, %v5674_v13 }
 0x357   :  { %6895 = vmatpush3.bf16.msra.mxu0 %v6894_v34  ;;  %v5656_v34 = vld [vmem:[%s11787_s6 + $0x750] sm:$0xff] }
 0x358   :  { %6897 = vmatprep.subr.bf16.mxu0 %v6896_v5  ;;  %v5657_v5 = vld [vmem:[%s11787_s6 + $0x758] sm:$0xff] }
 0x359   :  { %v6966_v32 = vpack.c.bf16 %v5657_v5, %v5656_v34 }
 0x35b   :  { %6899 = vmatpush3.bf16.msra.mxu0 %v6898_v46  ;;  %v5658_v46 = vld [vmem:[%s11787_s6 + $0x760] sm:$0xff] }
 0x35c   :  { %6901 = vmatprep.subr.bf16.mxu0 %v6900_v0  ;;  %v5659_v0 = vld [vmem:[%s11787_s6 + $0x768] sm:$0xff] }
 0x35d   :  { %v6970_v29 = vpack.c.bf16 %v5659_v0, %v5658_v46 }
 0x35f   :  { %6903 = vmatpush3.bf16.msra.mxu0 %v6902_v56  ;;  %v5660_v56 = vld [vmem:[%s11787_s6 + $0x770] sm:$0xff] }
 0x360   :  { %6905 = vmatprep.subr.bf16.mxu0 %v6904_v55  ;;  %v5661_v55 = vld [vmem:[%s11787_s6 + $0x778] sm:$0xff] }
 0x361   :  { %v6974_v39 = vpack.c.bf16 %v5661_v55, %v5660_v56 }
 0x363   :  { %6907 = vmatpush3.bf16.msra.mxu0 %v6906_v21 }
 0x364   :  { %6909 = vmatprep.subr.bf16.mxu0 %v6908_v35 }
 0x367   :  { %6911 = vmatpush3.bf16.msra.mxu0 %v6910_v41 }
 0x368   :  { %6945 = vmatprep.subr.bf16.mxu0 %v6944_v50 }
 0x36a   :  { %2239 = vmatmul.mubr.f32.vlgmr.msra.gmra.mrb[38].mxu0 %v9262_v57  ;;  %v5669_v57 = vld [vmem:[%s11787_s6 + $0x7b8] sm:$0xff] }
 0x36b   :  { %2243 = vmatprep.mubr.f32.mxu0 %v9267_v58  ;;  %6947 = vmatpush3.bf16.msra.mxu0 %v6946_v19  ;;  %v6954_v58 = vpack.c.bf16 %v5651_v37, %v5650_v28  ;;  %v6956_v61 = vpack.c.bf16 %v5669_v57, %v5668_v33 }
 0x36c   :  { %6949 = vmatprep.subr.bf16.mxu0 %v6948_v49 }
 0x36e   :  { %2244 = vmatmul.mubr.f32.gmra.mrb[40].mxu0 %v9278_v63  ;;  %v6958_v63 = vpack.c.bf16 %v5653_v38, %v5652_v8 }
 0x36f   :  { %2247 = vmatprep.mubr.f32.mxu0 %v2166_v12  ;;  %6951 = vmatpush3.bf16.msra.mxu0 %v6950_v36  ;;  %v5671_v12 = vld [vmem:[%s11787_s6 + $0x7c8] sm:$0xff] }
 0x370   :  { %6953 = vmatprep.subr.bf16.mxu0 %v6952_v54  ;;  %v6960_v4 = vpack.c.bf16 %v5671_v12, %v5670_v40 }
 0x372   :  { %2248 = vmatmul.mubr.f32.gmra.mrb[42].mxu0 %v2164_v43  ;;  %v5673_v43 = vld [vmem:[%s11787_s6 + $0x7d8] sm:$0xff] }
 0x373   :  { %6955 = vmatpush3.bf16.msra.mxu0 %v6954_v58  ;;  %2500 = vmatprep.mubr.f32.mxu0 %v9281_v2  ;;  %v6962_v2 = vpack.c.bf16 %v5655_v1, %v5654_v16  ;;  %v6964_v26 = vpack.c.bf16 %v5673_v43, %v5672_v60  ;;  %v5680_v16 = vld [vmem:[%s11789_s8 + $0x48] sm:$0xff]  ;;  %v5682_v1 = vld [vmem:[%s11789_s8 + $0x58] sm:$0xff]  ;;  %v5679_v60 = vld [vmem:[%s11789_s8 + $0x40] sm:$0xff] }
 0x374   :  { %6957 = vmatprep.subr.bf16.mxu0 %v6956_v61 }
 0x377   :  { %6959 = vmatpush3.bf16.msra.mxu0 %v6958_v63 }
 0x378   :  { %6961 = vmatprep.subr.bf16.mxu0 %v6960_v4 }
 0x37b   :  { %6963 = vmatpush3.bf16.msra.mxu0 %v6962_v2  ;;  %v6976_v2 = vpack.c.bf16 %v5682_v1, %v5680_v16  ;;  %v5759_v16 = vld [vmem:[%s11791_s10 + $0x200] sm:$0xff] }
 0x37c   :  { %6965 = vmatprep.subr.bf16.mxu0 %v6964_v26  ;;  %v5681_v26 = vld [vmem:[%s11789_s8 + $0x50] sm:$0xff] }
 0x37d   :  { %v6978_v34 = vpack.c.bf16 %v5681_v26, %v5679_v60  ;;  %6977 = vmatprep.subr.bf16.mxu1 %v6976_v2  ;;  %v5761_v60 = vld [vmem:[%s11791_s10 + $0x210] sm:$0xff]  ;;  %v5766_v2 = vld [vmem:[%s11791_s10 + $0x238] sm:$0xff] }
 0x37e   :  { %v7042_v26 = vpack.c.bf16 %v5761_v60, %v5759_v16  ;;  %v5694_v60 = vld [vmem:[%s11789_s8 + $0x88] sm:$0xff] }
 0x37f   :  { %6967 = vmatpush3.bf16.msra.mxu0 %v6966_v32  ;;  %6979 = vmatpush1.bf16.msra.mxu1 %v6978_v34 }
 0x380   :  { %6969 = vmatprep.subr.bf16.mxu0 %v6968_v47 }
 0x383   :  { %6971 = vmatpush3.bf16.msra.mxu0 %v6970_v29 }
 0x384   :  { %6973 = vmatprep.subr.bf16.mxu0 %v6972_v30 }
 0x387   :  { %6975 = vmatpush3.bf16.msra.mxu0 %v6974_v39 }
 0x38a   :  { %2501 = vmatmul.mubr.f32.vlgmr.msra.gmra.mrb[44].mxu0 %v9297_v18 }
 0x38b   :  { %2505 = vmatprep.mubr.f32.mxu0 %v9302_v48 }
 0x38e   :  { %2506 = vmatmul.mubr.f32.gmra.mrb[46].mxu0 %v9307_v20 }
 0x38f   :  { %2509 = vmatprep.mubr.f32.mxu0 %v2428_v9 }
 0x392   :  { %2510 = vmatmul.mubr.f32.gmra.mrb[48].mxu0 %v2426_v11 }
 0x39d   :  { %v6164_v10 = vpop.f32.mrb[8].mxu0  ;;  %v6410_v3 = vpop.f32.mrb[6].mxu1 }
 0x39e   :  { %v6165_v21 = vpop.f32.mrb[9].mxu0  ;;  %v6411_v35 = vpop.f32.mrb[7].mxu1 }
 0x39f   :  { %v6166_v27 = vadd.f32 %v6165_v21, %v6164_v10  ;;  %v9861_v14 = vadd.f32 %v6411_v35, %v6410_v3 }
 0x3a1   :  { %v6167_v18 = vpop.f32.mrb[10].mxu0  ;;  %v6413_v22 = vpop.f32.mrb[8].mxu1 }
 0x3a2   :  { %v6168_v42 = vpop.f32.mrb[11].mxu0  ;;  %v6414_v41 = vpop.f32.mrb[9].mxu1 }
 0x3a5   :  { %v6170_v48 = vpop.f32.mrb[12].mxu0  ;;  %v6416_v50 = vpop.f32.mrb[10].mxu1 }
 0x3a6   :  { %v6171_v20 = vpop.f32.mrb[13].mxu0  ;;  %v6417_v62 = vpop.f32.mrb[11].mxu1 }
 0x3a7   :  { %v6172_v51 = vadd.f32 %v6171_v20, %v6170_v48  ;;  %v6418_v9 = vadd.f32 %v6417_v62, %v6416_v50 }
 0x3b4   :  { %v2538_v7 = vpop.permute.xlu0 %2537 }
 0x3bd   :  { %v6205_v45 = vpop.f32.mrb[14].mxu0 }
 0x3be   :  { %v6206_v53 = vpop.f32.mrb[15].mxu0 }
 0x3bf   :  { %v6207_v11 = vadd.f32 %v6206_v53, %v6205_v45 }
 0x3c1   :  { %v1722_v44 = vadd.f32 %v6207_v11, %v6166_v27  ;;  %v6208_v24 = vpop.f32.mrb[16].mxu0 }
 0x3c2   :  { %v6209_v19 = vpop.f32.mrb[17].mxu0 }
 0x3c5   :  { %v6211_v49 = vpop.f32.mrb[18].mxu0 }
 0x3c6   :  { %v6212_v6 = vpop.f32.mrb[19].mxu0 }
 0x3c7   :  { %v6213_v31 = vadd.f32 %v6212_v6, %v6211_v49  ;;  %v5678_v6 = vld [vmem:[%s11788_s7] ss:$0 sm:$0xff] }
 0x3c9   :  { %v1731_v52 = vadd.f32 %v6213_v31, %v6172_v51 }
 0x3dd   :  { %v6246_v25 = vpop.f32.mrb[20].mxu0 }
 0x3de   :  { %v6247_v36 = vpop.f32.mrb[21].mxu0 }
 0x3df   :  { %v6248_v54 = vadd.f32 %v6247_v36, %v6246_v25 }
 0x3e1   :  { %v1862_v28 = vadd.f32 %v6248_v54, %v1722_v44  ;;  %v6249_v37 = vpop.f32.mrb[22].mxu0  ;;  %v5684_v54 = vld [vmem:[%s11789_s8 + $0x68] sm:$0xff] }
 0x3e2   :  { %v6250_v33 = vpop.f32.mrb[23].mxu0  ;;  %v5683_v37 = vld [vmem:[%s11789_s8 + $0x60] sm:$0xff] }
 0x3e5   :  { %v6252_v57 = vpop.f32.mrb[24].mxu0 }
 0x3e6   :  { %v6253_v58 = vpop.f32.mrb[25].mxu0 }
 0x3e7   :  { %v6254_v61 = vadd.f32 %v6253_v58, %v6252_v57  ;;  %v5685_v57 = vld [vmem:[%s11789_s8 + $0x70] sm:$0xff] }
 0x3e8   :  { %v6982_v58 = vpack.c.bf16 %v5685_v57, %v5683_v37  ;;  %v5791_v37 = vld [vmem:[%s11791_s10 + $0x300] sm:$0xff]  ;;  %v2555_v57 = vld [vmem:[%s11789_s8 + $0x10] sm:$0xff] }
 0x3e9   :  { %v1863_v8 = vadd.f32 %v6254_v61, %v1731_v52 }
 0x3fd   :  { %v6287_v38 = vpop.f32.mrb[26].mxu0 }
 0x3fe   :  { %v6288_v40 = vpop.f32.mrb[27].mxu0 }
 0x3ff   :  { %v6289_v12 = vadd.f32 %v6288_v40, %v6287_v38  ;;  %v2556_v38 = vld [vmem:[%s11789_s8 + $0x18] sm:$0xff] }
 0x401   :  { %v1992_v63 = vadd.f32 %v6289_v12, %v1862_v28  ;;  %v6290_v4 = vpop.f32.mrb[28].mxu0  ;;  %v5686_v28 = vld [vmem:[%s11789_s8 + $0x78] sm:$0xff] }
 0x402   :  { %v6291_v43 = vpop.f32.mrb[29].mxu0  ;;  %v6980_v33 = vpack.c.bf16 %v5686_v28, %v5684_v54  ;;  %v5762_v4 = vld [vmem:[%s11791_s10 + $0x218] sm:$0xff] }
 0x403   :  { %v5764_v43 = vld [vmem:[%s11791_s10 + $0x228] sm:$0xff] }
 0x404   :  { %6981 = vmatprep.subr.bf16.mxu1 %v6980_v33  ;;  %v7044_v34 = vpack.c.bf16 %v5766_v2, %v5764_v43  ;;  %v2553_v33 = vld [vmem:[%s11789_s8] sm:$0xff]  ;;  %v5696_v43 = vld [vmem:[%s11789_s8 + $0x98] sm:$0xff] }
 0x405   :  { %v6293_v5 = vpop.f32.mrb[30].mxu0  ;;  %6983 = vmatpush1.bf16.msra.mxu1 %v6982_v58  ;;  %v2558_v58 = vld [vmem:[%s11789_s8 + $0x28] sm:$0xff] }
 0x406   :  { %v6294_v13 = vpop.f32.mrb[31].mxu0 }
 0x407   :  { %v6295_v15 = vadd.f32 %v6294_v13, %v6293_v5  ;;  %v5763_v5 = vld [vmem:[%s11791_s10 + $0x220] sm:$0xff]  ;;  %v5765_v13 = vld [vmem:[%s11791_s10 + $0x230] sm:$0xff] }
 0x409   :  { %v1993_v32 = vadd.f32 %v6295_v15, %v1863_v8  ;;  %v2554_v8 = vld [vmem:[%s11789_s8 + $0x8] sm:$0xff] }
 0x40a   :  { %v6984_v12 = vpack.c.bf16 %v2556_v38, %v2554_v8  ;;  %v5768_v15 = vld [vmem:[%s11791_s10 + $0x248] sm:$0xff]  ;;  %v5798_v8 = vld [vmem:[%s11791_s10 + $0x338] sm:$0xff] }
 0x40c   :  { %6985 = vmatprep.subr.bf16.mxu1 %v6984_v12  ;;  %v2557_v12 = vld [vmem:[%s11789_s8 + $0x20] sm:$0xff] }
 0x41d   :  { %v6328_v47 = vpop.f32.mrb[32].mxu0 }
 0x41e   :  { %v6329_v46 = vpop.f32.mrb[33].mxu0 }
 0x41f   :  { %v6330_v0 = vadd.f32 %v6329_v46, %v6328_v47  ;;  %v7046_v47 = vpack.c.bf16 %v5765_v13, %v5763_v5  ;;  %v5802_v5 = vld [vmem:[%s11791_s10 + $0x358] sm:$0xff] }
 0x421   :  { %v2122_v23 = vadd.f32 %v6330_v0, %v1992_v63  ;;  %v6331_v17 = vpop.f32.mrb[34].mxu0  ;;  %v5760_v63 = vld [vmem:[%s11791_s10 + $0x208] sm:$0xff]  ;;  %v5767_v0 = vld [vmem:[%s11791_s10 + $0x240] sm:$0xff] }
 0x422   :  { %v6332_v29 = vpop.f32.mrb[35].mxu0  ;;  %v7040_v1 = vpack.c.bf16 %v5762_v4, %v5760_v63  ;;  %v5772_v17 = vld [vmem:[%s11791_s10 + $0x268] sm:$0xff]  ;;  %v5795_v63 = vld [vmem:[%s11791_s10 + $0x320] sm:$0xff]  ;;  %v5797_v4 = vld [vmem:[%s11791_s10 + $0x330] sm:$0xff] }
 0x423   :  { %v5774_v29 = vld [vmem:[%s11791_s10 + $0x278] sm:$0xff]  ;;  %v7078_v13 = vpack.c.bf16 %v5797_v4, %v5795_v63  ;;  %v5727_v4 = vld [vmem:[%s11789_s8 + $0x148] sm:$0xff] }
 0x424   :  { %7041 = vmatprep.subr.bf16.mxu0 %v7040_v1  ;;  %v2559_v1 = vld [vmem:[%s11789_s8 + $0x30] sm:$0xff] }
 0x425   :  { %v6334_v30 = vpop.f32.mrb[36].mxu0  ;;  %7043 = vmatpush1.bf16.msra.mxu0 %v7042_v26 }
 0x426   :  { %v6335_v56 = vpop.f32.mrb[37].mxu0  ;;  %7045 = vmatprep.subr.bf16.mxu0 %v7044_v34  ;;  %v5800_v34 = vld [vmem:[%s11791_s10 + $0x348] sm:$0xff] }
 0x427   :  { %v6336_v55 = vadd.f32 %v6335_v56, %v6334_v30  ;;  %v7052_v56 = vpack.c.bf16 %v5774_v29, %v5772_v17  ;;  %v7080_v17 = vpack.c.bf16 %v5802_v5, %v5800_v34  ;;  %v5804_v29 = vld [vmem:[%s11791_s10 + $0x368] sm:$0xff] }
 0x428   :  { %v5731_v5 = vld [vmem:[%s11789_s8 + $0x168] sm:$0xff] }
 0x429   :  { %v2123_v39 = vadd.f32 %v6336_v55, %v1993_v32  ;;  %v5770_v32 = vld [vmem:[%s11791_s10 + $0x258] sm:$0xff]  ;;  %7047 = vmatpush1.bf16.msra.mxu0 %v7046_v47  ;;  %v5771_v55 = vld [vmem:[%s11791_s10 + $0x260] sm:$0xff]  ;;  %v6990_v47 = vpack.c.bf16 %v2559_v1, %v2557_v12  ;;  %v5721_v12 = vld [vmem:[%s11789_s8 + $0x130] sm:$0xff] }
 0x42a   :  { %v7048_v46 = vpack.c.bf16 %v5770_v32, %v5768_v15  ;;  %v10065_v15 = vld [vmem:[#allocation3] sm:$0xff]  ;;  %v2562_v32 = vld [vmem:[#allocation2 + $0xf] sm:$0xff] }
 0x42b   :  { %v2868_v1 = vld [vmem:[#allocation2 + $0xd] sm:$0xff] }
 0x42c   :  { %7049 = vmatprep.subr.bf16.mxu0 %v7048_v46  ;;  %v5799_v46 = vld [vmem:[%s11791_s10 + $0x340] sm:$0xff] }
 0x43d   :  { %v6369_v59 = vpop.f32.mrb[38].mxu0 }
 0x43e   :  { %v6370_v10 = vpop.f32.mrb[39].mxu0 }
 0x43f   :  { %v6371_v3 = vadd.f32 %v6370_v10, %v6369_v59  ;;  %v5776_v59 = vld [vmem:[%s11791_s10 + $0x288] sm:$0xff]  ;;  %v5778_v10 = vld [vmem:[%s11791_s10 + $0x298] sm:$0xff] }
 0x441   :  { %v2253_v21 = vadd.f32 %v6371_v3, %v2122_v23  ;;  %v6372_v35 = vpop.f32.mrb[40].mxu0  ;;  %v5769_v23 = vld [vmem:[%s11791_s10 + $0x250] sm:$0xff] }
 0x442   :  { %v6373_v27 = vpop.f32.mrb[41].mxu0  ;;  %v7050_v30 = vpack.c.bf16 %v5769_v23, %v5767_v0  ;;  %v5775_v35 = vld [vmem:[%s11791_s10 + $0x280] sm:$0xff]  ;;  %v5801_v0 = vld [vmem:[%s11791_s10 + $0x350] sm:$0xff]  ;;  %v6992_v23 = vpack.c.bf16 %v5696_v43, %v5694_v60 }
 0x443   :  { %v2384_v18 = vadd.f32 %v9861_v14, %v2253_v21  ;;  %v7056_v21 = vpack.c.bf16 %v5778_v10, %v5776_v59  ;;  %v5777_v27 = vld [vmem:[%s11791_s10 + $0x290] sm:$0xff]  ;;  %v5693_v10 = vld [vmem:[%s11789_s8 + $0x80] sm:$0xff] }
 0x444   :  { %7051 = vmatpush1.bf16.msra.mxu0 %v7050_v30  ;;  %v5806_v30 = vld [vmem:[%s11791_s10 + $0x378] sm:$0xff]  ;;  %v5805_v59 = vld [vmem:[%s11791_s10 + $0x370] sm:$0xff] }
 0x445   :  { %v6375_v22 = vpop.f32.mrb[42].mxu0  ;;  %7053 = vmatprep.subr.bf16.mxu0 %v7052_v56  ;;  %v7082_v56 = vpack.c.bf16 %v5801_v0, %v5799_v46  ;;  %v5730_v46 = vld [vmem:[%s11789_s8 + $0x160] sm:$0xff]  ;;  %v5732_v0 = vld [vmem:[%s11789_s8 + $0x170] sm:$0xff] }
 0x446   :  { %v6376_v42 = vpop.f32.mrb[43].mxu0 }
 0x447   :  { %v6377_v41 = vadd.f32 %v6376_v42, %v6375_v22  ;;  %v5782_v22 = vld [vmem:[%s11791_s10 + $0x2b8] sm:$0xff]  ;;  %v7058_v42 = vpack.c.bf16 %v5777_v27, %v5775_v35  ;;  %v5698_v35 = vld [vmem:[%s11789_s8 + $0xa8] sm:$0xff] }
 0x448   :  { %v5700_v27 = vld [vmem:[%s11789_s8 + $0xb8] sm:$0xff] }
 0x449   :  { %v2254_v48 = vadd.f32 %v6377_v41, %v2123_v39  ;;  %v5773_v39 = vld [vmem:[%s11791_s10 + $0x270] sm:$0xff] }
 0x44a   :  { %v7054_v3 = vpack.c.bf16 %v5773_v39, %v5771_v55  ;;  %v7084_v55 = vpack.c.bf16 %v5806_v30, %v5804_v29  ;;  %v5803_v39 = vld [vmem:[%s11791_s10 + $0x360] sm:$0xff]  ;;  %v5740_v29 = vld [vmem:[%s11789_s8 + $0x198] sm:$0xff]  ;;  %v2978_v30 = vld [vmem:[#allocation2 + $0xc] sm:$0xff] }
 0x44b   :  { %v2385_v50 = vadd.f32 %v6418_v9, %v2254_v48  ;;  %v5779_v48 = vld [vmem:[%s11791_s10 + $0x2a0] sm:$0xff] }
 0x44c   :  { %7055 = vmatpush1.bf16.msra.mxu0 %v7054_v3  ;;  %v5695_v3 = vld [vmem:[%s11789_s8 + $0x90] sm:$0xff] }
 0x44d   :  { %7057 = vmatprep.subr.bf16.mxu0 %v7056_v21 }
 0x450   :  { %7059 = vmatpush1.bf16.msra.mxu0 %v7058_v42  ;;  %v6996_v42 = vpack.c.bf16 %v5700_v27, %v5698_v35 }
 0x45d   :  { %v6451_v20 = vpop.f32.mrb[44].mxu0 }
 0x45e   :  { %v6452_v62 = vpop.f32.mrb[45].mxu0 }
 0x45f   :  { %v6453_v51 = vadd.f32 %v6452_v62, %v6451_v20  ;;  %v5784_v20 = vld [vmem:[%s11791_s10 + $0x2c8] sm:$0xff]  ;;  %v5786_v62 = vld [vmem:[%s11791_s10 + $0x2d8] sm:$0xff] }
 0x461   :  { %v2515_v45 = vadd.f32 %v6453_v51, %v2384_v18  ;;  %v6454_v53 = vpop.f32.mrb[46].mxu0  ;;  %v5780_v18 = vld [vmem:[%s11791_s10 + $0x2a8] sm:$0xff] }
 0x462   :  { %v6455_v11 = vpop.f32.mrb[47].mxu0  ;;  %v7060_v41 = vpack.c.bf16 %v5782_v22, %v5780_v18  ;;  %v5783_v53 = vld [vmem:[%s11791_s10 + $0x2c0] sm:$0xff]  ;;  %v7086_v18 = vpack.c.bf16 %v5805_v59, %v5803_v39  ;;  %v6994_v22 = vpack.c.bf16 %v5695_v3, %v5693_v10  ;;  %v5739_v59 = vld [vmem:[%s11789_s8 + $0x190] sm:$0xff]  ;;  %v5742_v3 = vld [vmem:[%s11789_s8 + $0x1a8] sm:$0xff] }
 0x463   :  { %v2524_v31 = vadd.f32 %v5678_v6, %v2515_v45  ;;  %v7064_v45 = vpack.c.bf16 %v5786_v62, %v5784_v20  ;;  %v5785_v11 = vld [vmem:[%s11791_s10 + $0x2d0] sm:$0xff]  ;;  %v5705_v20 = vld [vmem:[%s11789_s8 + $0xc8] sm:$0xff]  ;;  %v5707_v62 = vld [vmem:[%s11789_s8 + $0xd8] sm:$0xff] }
 0x464   :  { %7061 = vmatprep.subr.bf16.mxu0 %v7060_v41  ;;  %v5697_v41 = vld [vmem:[%s11789_s8 + $0xa0] sm:$0xff] }
 0x465   :  { %v6457_v44 = vpop.f32.mrb[48].mxu0  ;;  %v5737_v39 = vld [vmem:[%s11789_s8 + $0x180] sm:$0xff] }
 0x466   :  { %v6458_v24 = vpop.f32.mrb[49].mxu0  ;;  %v7026_v35 = vpack.c.bf16 %v5739_v59, %v5737_v39  ;;  %v3419_v59 = vld [vmem:[%s11790_s9 + $0x10] sm:$0xff] }
 0x467   :  { %v6459_v19 = vadd.f32 %v6458_v24, %v6457_v44  ;;  %v5788_v44 = vld [vmem:[%s11791_s10 + $0x2e8] sm:$0xff]  ;;  %v5790_v24 = vld [vmem:[%s11791_s10 + $0x2f8] sm:$0xff] }
 0x469   :  { %v2516_v49 = vadd.f32 %v6459_v19, %v2385_v50  ;;  %v5781_v50 = vld [vmem:[%s11791_s10 + $0x2b0] sm:$0xff]  ;;  %v7066_v19 = vpack.c.bf16 %v5785_v11, %v5783_v53  ;;  %v7000_v53 = vpack.c.bf16 %v5707_v62, %v5705_v20  ;;  %v5704_v11 = vld [vmem:[%s11789_s8 + $0xc0] sm:$0xff] }
 0x46a   :  { %v7062_v51 = vpack.c.bf16 %v5781_v50, %v5779_v48  ;;  %v5699_v48 = vld [vmem:[%s11789_s8 + $0xb0] sm:$0xff] }
 0x46b   :  { %v2525_v14 = vadd.f32 %v5678_v6, %v2516_v49  ;;  %v7068_v6 = vpack.c.bf16 %v5790_v24, %v5788_v44  ;;  %v5706_v44 = vld [vmem:[%s11789_s8 + $0xd0] sm:$0xff] }
 0x46c   :  { %7063 = vmatpush1.bf16.msra.mxu0 %v7062_v51  ;;  %v2551_v51 = vld [vmem:[#allocation2 + $0x10] sm:$0xff] }
 0x46d   :  { %v2527_v52 = vrot.slane %v2525_v14, 7  ;;  %7065 = vmatprep.subr.bf16.mxu0 %v7064_v45  ;;  %v5787_v14 = vld [vmem:[%s11791_s10 + $0x2e0] sm:$0xff]  ;;  %v6998_v45 = vpack.c.bf16 %v5699_v48, %v5697_v41  ;;  %v5749_v41 = vld [vmem:[%s11789_s8 + $0x1c8] sm:$0xff]  ;;  %v5751_v48 = vld [vmem:[%s11789_s8 + $0x1d8] sm:$0xff] }
 0x46e   :  { %v7032_v62 = vpack.c.bf16 %v5751_v48, %v5749_v41 }
 0x46f   :  { %v9880_v9 = vsel %vm2419_vm8, %v2524_v31, %v2527_v52  ;;  %v5789_v31 = vld [vmem:[%s11791_s10 + $0x2f0] sm:$0xff] }
 0x470   :  { %2531 = vst.msk [vmem:[%s11796_s15] sm:$0x3] %vm2530_vm9, %v9880_v9  ;;  %v2532_v25 = vmul.f32 0.5, %v9880_v9  ;;  %7067 = vmatpush1.bf16.msra.mxu0 %v7066_v19  ;;  %v7070_v54 = vpack.c.bf16 %v5789_v31, %v5787_v14  ;;  %v5709_v19 = vld [vmem:[%s11789_s8 + $0xe8] sm:$0xff]  ;;  %v5708_v31 = vld [vmem:[%s11789_s8 + $0xe0] sm:$0xff] }
 0x471   :  { %7069 = vmatprep.subr.bf16.mxu0 %v7068_v6  ;;  %v7002_v6 = vpack.c.bf16 %v5706_v44, %v5704_v11  ;;  %v5753_v11 = vld [vmem:[%s11789_s8 + $0x1e8] sm:$0xff]  ;;  %v5755_v44 = vld [vmem:[%s11789_s8 + $0x1f8] sm:$0xff] }
 0x472   :  { %v2533_v36 = vmul.f32 1.442695, %v2532_v25  ;;  %v5792_v25 = vld [vmem:[%s11791_s10 + $0x308] sm:$0xff] }
 0x474   :  { %7677 = vpow2.f32 %v2533_v36  ;;  %v5794_v36 = vld [vmem:[%s11791_s10 + $0x318] sm:$0xff]  ;;  %7071 = vmatpush1.bf16.msra.mxu0 %v7070_v54 }
 0x475   :  { %v7072_v28 = vpack.c.bf16 %v5794_v36, %v5792_v25  ;;  %v5716_v36 = vld [vmem:[%s11789_s8 + $0x108] sm:$0xff]  ;;  %v5718_v54 = vld [vmem:[%s11789_s8 + $0x118] sm:$0xff] }
 0x477   :  { %7073 = vmatprep.subr.bf16.mxu0 %v7072_v28  ;;  %v2758_v28 = vld [vmem:[#allocation2 + $0xe] sm:$0xff] }
 0x47e   :  { %v7678_v61 = vpop.eup %7677 }
 0x47f   :  { %v2540_v40 = vmul.f32 %v7678_v61, %v2538_v7  ;;  %v2560_v7 = vld [vmem:[%s11789_s8 + $0x38] sm:$0xff]  ;;  %v5796_v61 = vld [vmem:[%s11791_s10 + $0x328] sm:$0xff] }
 0x480   :  { %v6988_v16 = vpack.c.bf16 %v2560_v7, %v2558_v58  ;;  %v7076_v2 = vpack.c.bf16 %v5798_v8, %v5796_v61  ;;  %v5720_v7 = vld [vmem:[%s11789_s8 + $0x128] sm:$0xff]  ;;  %v5722_v61 = vld [vmem:[%s11789_s8 + $0x138] sm:$0xff] }
 0x481   :  { %2542 = vrot.lane.b32.xlu0 %v2540_v40, %s7730_s1  ;;  %v6986_v40 = vpack.c.bf16 %v2555_v57, %v2553_v33  ;;  %v5715_v33 = vld [vmem:[%s11789_s8 + $0x100] sm:$0xff]  ;;  %v5717_v57 = vld [vmem:[%s11789_s8 + $0x110] sm:$0xff] }
 0x482   :  { %v7010_v8 = vpack.c.bf16 %v5717_v57, %v5715_v33  ;;  %v5807_v33 = vld [vmem:[%s11791_s10 + $0x380] sm:$0xff] }
 0x4f3   :  { %v2543_v49 = vpop.permute.xlu0 %2542 }
 0x4f4   :  { %v2545_v52 = vadd.f32 %v2543_v49, %v9880_v9  ;;  %v5793_v9 = vld [vmem:[%s11791_s10 + $0x310] sm:$0xff]  ;;  %v5711_v49 = vld [vmem:[%s11789_s8 + $0xf8] sm:$0xff] }
 0x4f5   :  { %v7074_v38 = vpack.c.bf16 %v5793_v9, %v5791_v37  ;;  %v7004_v14 = vpack.c.bf16 %v5711_v49, %v5709_v19  ;;  %v7008_v9 = vpack.c.bf16 %v5718_v54, %v5716_v36  ;;  %v7036_v19 = vpack.c.bf16 %v5755_v44, %v5753_v11  ;;  %v5752_v49 = vld [vmem:[%s11789_s8 + $0x1e0] sm:$0xff]  ;;  %v3308_v54 = vld [vmem:[#allocation2 + $0x9] sm:$0xff] }
 0x4f6   :  { %2547 = vst.msk [vmem:[#allocation2 + $0x8] sm:$0x1] %vm2546_vm11, %v2545_v52 }
 0x4f7   :  { %2549 = vst.msk [vmem:[#allocation2 + $0x17] sm:$0x2] %vm2548_vm12, %v2545_v52  ;;  %7075 = vmatpush1.bf16.msra.mxu0 %v7074_v38  ;;  %v5710_v52 = vld [vmem:[%s11789_s8 + $0xf0] sm:$0xff]  ;;  %v7012_v38 = vpack.c.bf16 %v5722_v61, %v5720_v7  ;;  %v5812_v7 = vld [vmem:[%s11791_s10 + $0x3a8] sm:$0xff]  ;;  %v5814_v61 = vld [vmem:[%s11791_s10 + $0x3b8] sm:$0xff] }
 0x4f8   :  { %7077 = vmatprep.subr.bf16.mxu0 %v7076_v2  ;;  %v7006_v37 = vpack.c.bf16 %v5710_v52, %v5708_v31  ;;  %v5726_v2 = vld [vmem:[%s11789_s8 + $0x140] sm:$0xff]  ;;  %v3198_v31 = vld [vmem:[#allocation2 + $0xa] sm:$0xff] }
 0x4fb   :  { %7079 = vmatpush1.bf16.msra.mxu0 %v7078_v13  ;;  %v5733_v13 = vld [vmem:[%s11789_s8 + $0x178] sm:$0xff] }
 0x4fc   :  { %7081 = vmatprep.subr.bf16.mxu0 %v7080_v17  ;;  %v5738_v17 = vld [vmem:[%s11789_s8 + $0x188] sm:$0xff] }
 0x4fd   :  { %v2561_v26 = vld [vmem:[#allocation2 + $0x7] sm:$0xff] }
 0x4fe   :  { %5687 = vmatmul.mubr.msk.f32.vlgmr.msra.gmra.mrb[12].mxu1 %vm50_vm10, %v2561_v26  ;;  %v2563_v21 = vld [vmem:[#allocation2 + $0x17] sm:$0xff]  ;;  %v2550_v50 = vld [vmem:[#allocation2 + $0x8] sm:$0xff] }
 0x4ff   :  { %6987 = vmatpush1.bf16.msra.mxu1 %v6986_v40  ;;  %2652 = vmatprep.mubr.f32.mxu1 %v10065_v15  ;;  %v2552_v24 = vld [vmem:[#allocation2 + $0x18] sm:$0xff]  ;;  %v2757_v25 = vld [vmem:[#allocation2 + $0x6] sm:$0xff]  ;;  %v5728_v26 = vld [vmem:[%s11789_s8 + $0x150] sm:$0xff] }
 0x500   :  { %6989 = vmatprep.subr.bf16.mxu1 %v6988_v16  ;;  %7083 = vmatpush1.bf16.msra.mxu0 %v7082_v56  ;;  %v2759_v58 = vld [vmem:[#allocation2 + $0x16] sm:$0xff]  ;;  %v5719_v40 = vld [vmem:[%s11789_s8 + $0x120] sm:$0xff]  ;;  %v7022_v56 = vpack.c.bf16 %v5732_v0, %v5730_v46 }
 0x501   :  { %7085 = vmatprep.subr.bf16.mxu0 %v7084_v55  ;;  %v2867_v63 = vld [vmem:[#allocation2 + $0x5] sm:$0xff]  ;;  %v5729_v16 = vld [vmem:[%s11789_s8 + $0x158] sm:$0xff]  ;;  %v7014_v60 = vpack.c.bf16 %v5721_v12, %v5719_v40  ;;  %v7024_v55 = vpack.c.bf16 %v5740_v29, %v5738_v17  ;;  %v5813_v40 = vld [vmem:[%s11791_s10 + $0x3b0] sm:$0xff] }
 0x502   :  { %5688 = vmatmul.mubr.msk.f32.gmra.mrb[14].mxu1 %vm50_vm10, %v2562_v32  ;;  %v7016_v43 = vpack.c.bf16 %v5729_v16, %v5727_v4  ;;  %v2869_v34 = vld [vmem:[#allocation2 + $0x15] sm:$0xff]  ;;  %v7018_v32 = vpack.c.bf16 %v5728_v26, %v5726_v2  ;;  %v3307_v36 = vld [vmem:[#allocation2 + $0x1] sm:$0xff] }
 0x503   :  { %2658 = vmatprep.mubr.f32.mxu1 %v10065_v15  ;;  %6991 = vmatpush1.bf16.msra.mxu1 %v6990_v47  ;;  %v7020_v47 = vpack.c.bf16 %v5733_v13, %v5731_v5  ;;  %v2979_v10 = vld [vmem:[#allocation2 + $0x14] sm:$0xff]  ;;  %v5815_v16 = vld [vmem:[%s11791_s10 + $0x3c0] sm:$0xff]  ;;  %v3418_v17 = vld [vmem:[%s11790_s9 + $0x8] sm:$0xff] }
 0x504   :  { %6993 = vmatprep.subr.bf16.mxu1 %v6992_v23  ;;  %7087 = vmatpush1.bf16.msra.mxu0 %v7086_v18  ;;  %v2977_v23 = vld [vmem:[#allocation2 + $0x4] sm:$0xff]  ;;  %v5818_v4 = vld [vmem:[%s11791_s10 + $0x3d8] sm:$0xff]  ;;  %v5821_v13 = vld [vmem:[%s11791_s10 + $0x3f0] sm:$0xff] }
 0x505   :  { %v5741_v18 = vld [vmem:[%s11789_s8 + $0x1a0] sm:$0xff]  ;;  %v5822_v2 = vld [vmem:[%s11791_s10 + $0x3f8] sm:$0xff] }
 0x506   :  { %5689 = vmatmul.mubr.msk.f32.gmra.mrb[16].mxu1 %vm50_vm10, %v2563_v21  ;;  %v5744_v21 = vld [vmem:[%s11789_s8 + $0x1b8] sm:$0xff]  ;;  %v5819_v5 = vld [vmem:[%s11791_s10 + $0x3e0] sm:$0xff] }
 0x507   :  { %2738 = vmatprep.mubr.f32.mxu1 %v10065_v15  ;;  %v7028_v27 = vpack.c.bf16 %v5744_v21, %v5742_v3  ;;  %v7102_v46 = vpack.c.bf16 %v5821_v13, %v5819_v5  ;;  %v3420_v21 = vld [vmem:[%s11790_s9 + $0x18] sm:$0xff]  ;;  %v3442_v5 = vld [vmem:[#allocation3 + $0x8] sm:$0xf0] }
 0x50a   :  { %5690 = vmatmul.mubr.msk.f32.vlgmr.msra.gmra.mrb[12].mxu1 %vm50_vm10, %v2550_v50  ;;  %v3088_v50 = vld [vmem:[#allocation2 + $0xb] sm:$0xff] }
 0x50b   :  { %6995 = vmatpush1.bf16.msra.mxu1 %v6994_v22  ;;  %2744 = vmatprep.mubr.f32.mxu1 %v10065_v15  ;;  %v5743_v22 = vld [vmem:[%s11789_s8 + $0x1b0] sm:$0xff] }
 0x50c   :  { %6997 = vmatprep.subr.bf16.mxu1 %v6996_v42  ;;  %v3087_v42 = vld [vmem:[#allocation2 + $0x3] sm:$0xff]  ;;  %v7030_v20 = vpack.c.bf16 %v5743_v22, %v5741_v18 }
 0x50d   :  { %v3451_v22 = vld [vmem:[%s11791_s10] sm:$0xff] }
 0x50e   :  { %5691 = vmatmul.mubr.msk.f32.gmra.mrb[14].mxu1 %vm50_vm10, %v2551_v51  ;;  %v5748_v51 = vld [vmem:[%s11789_s8 + $0x1c0] sm:$0xff] }
 0x50f   :  { %2750 = vmatprep.mubr.f32.mxu1 %v10065_v15  ;;  %6999 = vmatpush1.bf16.msra.mxu1 %v6998_v45  ;;  %v5750_v45 = vld [vmem:[%s11789_s8 + $0x1d0] sm:$0xff] }
 0x510   :  { %7001 = vmatprep.subr.bf16.mxu1 %v7000_v53  ;;  %v3089_v53 = vld [vmem:[#allocation2 + $0x13] sm:$0xff] }
 0x512   :  { %5692 = vmatmul.mubr.msk.f32.gmra.mrb[16].mxu1 %vm50_vm10, %v2552_v24  ;;  %v7034_v24 = vpack.c.bf16 %v5750_v45, %v5748_v51  ;;  %v3458_v51 = vld [vmem:[%s11791_s10 + $0x38] sm:$0xff] }
 0x513   :  { %2842 = vmatprep.mubr.f32.mxu1 %v10065_v15 }
 0x516   :  { %5701 = vmatmul.mubr.msk.f32.vlgmr.msra.gmra.mrb[12].mxu1 %vm50_vm10, %v2757_v25  ;;  %v3199_v25 = vld [vmem:[#allocation2 + $0x12] sm:$0xff] }
 0x517   :  { %7003 = vmatpush1.bf16.msra.mxu1 %v7002_v6  ;;  %2848 = vmatprep.mubr.f32.mxu1 %v10065_v15  ;;  %v5754_v6 = vld [vmem:[%s11789_s8 + $0x1f0] sm:$0xff] }
 0x518   :  { %7005 = vmatprep.subr.bf16.mxu1 %v7004_v14  ;;  %v3197_v14 = vld [vmem:[#allocation2 + $0x2] sm:$0xff]  ;;  %v7038_v52 = vpack.c.bf16 %v5754_v6, %v5752_v49 }
 0x51a   :  { %5702 = vmatmul.mubr.msk.f32.gmra.mrb[14].mxu1 %vm50_vm10, %v2758_v28  ;;  %v3309_v28 = vld [vmem:[#allocation2 + $0x11] sm:$0xff] }
 0x51b   :  { %2854 = vmatprep.mubr.f32.mxu1 %v10065_v15  ;;  %7007 = vmatpush1.bf16.msra.mxu1 %v7006_v37  ;;  %v5808_v37 = vld [vmem:[%s11791_s10 + $0x388] sm:$0xff] }
 0x51c   :  { %7009 = vmatprep.subr.bf16.mxu1 %v7008_v9  ;;  %v5810_v9 = vld [vmem:[%s11791_s10 + $0x398] sm:$0xff] }
 0x51d   :  { %v7088_v57 = vpack.c.bf16 %v5810_v9, %v5808_v37  ;;  %v3460_v9 = vld [vmem:[%s11791_s10 + $0x48] sm:$0xff] }
 0x51e   :  { %5703 = vmatmul.mubr.msk.f32.gmra.mrb[16].mxu1 %vm50_vm10, %v2759_v58 }
 0x51f   :  { %2952 = vmatprep.mubr.f32.mxu1 %v10065_v15  ;;  %7089 = vmatprep.subr.bf16.mxu0 %v7088_v57 }
 0x522   :  { %5712 = vmatmul.mubr.msk.f32.vlgmr.msra.gmra.mrb[12].mxu1 %vm50_vm10, %v2867_v63  ;;  %v5816_v63 = vld [vmem:[%s11791_s10 + $0x3c8] sm:$0xff] }
 0x523   :  { %7011 = vmatpush1.bf16.msra.mxu1 %v7010_v8  ;;  %2958 = vmatprep.mubr.f32.mxu1 %v10065_v15  ;;  %v5811_v8 = vld [vmem:[%s11791_s10 + $0x3a0] sm:$0xff] }
 0x524   :  { %7013 = vmatprep.subr.bf16.mxu1 %v7012_v38  ;;  %v7092_v38 = vpack.c.bf16 %v5814_v61, %v5812_v7  ;;  %v7094_v12 = vpack.c.bf16 %v5813_v40, %v5811_v8  ;;  %v3518_v61 = vld [vmem:[#allocation3 + $0x48] sm:$0x1f] }
 0x526   :  { %5713 = vmatmul.mubr.msk.f32.gmra.mrb[14].mxu1 %vm50_vm10, %v2868_v1  ;;  %v7096_v1 = vpack.c.bf16 %v5818_v4, %v5816_v63  ;;  %v3461_v63 = vld [vmem:[%s11791_s10 + $0x50] sm:$0xff] }
 0x527   :  { %2964 = vmatprep.mubr.f32.mxu1 %v10065_v15  ;;  %7015 = vmatpush1.bf16.msra.mxu1 %v7014_v60  ;;  %v5817_v60 = vld [vmem:[%s11791_s10 + $0x3d0] sm:$0xff] }
 0x528   :  { %7017 = vmatprep.subr.bf16.mxu1 %v7016_v43  ;;  %v5820_v43 = vld [vmem:[%s11791_s10 + $0x3e8] sm:$0xff]  ;;  %v7098_v26 = vpack.c.bf16 %v5817_v60, %v5815_v16  ;;  %v3466_v60 = vld [vmem:[%s11791_s10 + $0x78] sm:$0xff] }
 0x52a   :  { %5714 = vmatmul.mubr.msk.f32.gmra.mrb[16].mxu1 %vm50_vm10, %v2869_v34  ;;  %v7100_v34 = vpack.c.bf16 %v5822_v2, %v5820_v43  ;;  %v3610_v2 = vrot.slane %v3518_v61, 5 }
 0x52b   :  { %3062 = vmatprep.mubr.f32.mxu1 %v10065_v15 }
 0x52e   :  { %5723 = vmatmul.mubr.msk.f32.vlgmr.msra.gmra.mrb[12].mxu1 %vm50_vm10, %v2977_v23  ;;  %v3417_v23 = vld [vmem:[%s11790_s9] sm:$0xff] }
 0x52f   :  { %7019 = vmatpush1.bf16.msra.mxu1 %v7018_v32  ;;  %3068 = vmatprep.mubr.f32.mxu1 %v10065_v15  ;;  %v3452_v32 = vld [vmem:[%s11791_s10 + $0x8] sm:$0xff] }
 0x530   :  { %7021 = vmatprep.subr.bf16.mxu1 %v7020_v47  ;;  %v3454_v47 = vld [vmem:[%s11791_s10 + $0x18] sm:$0xff] }
 0x531   :  { %v7104_v0 = vpack.c.bf16 %v3454_v47, %v3452_v32  ;;  %v3463_v47 = vld [vmem:[%s11791_s10 + $0x60] sm:$0xff] }
 0x532   :  { %5724 = vmatmul.mubr.msk.f32.gmra.mrb[14].mxu1 %vm50_vm10, %v2978_v30 }
 0x533   :  { %3074 = vmatprep.mubr.f32.mxu1 %v10065_v15  ;;  %7023 = vmatpush1.bf16.msra.mxu1 %v7022_v56 }
 0x534   :  { %7025 = vmatprep.subr.bf16.mxu1 %v7024_v55  ;;  %v3516_v55 = vld [vmem:[#allocation3 + $0x8] sm:$0xe0] }
 0x535   :  { %v3597_v18 = vrot.slane %v3516_v55, 5 }
 0x536   :  { %5725 = vmatmul.mubr.msk.f32.gmra.mrb[16].mxu1 %vm50_vm10, %v2979_v10  ;;  %v3515_v10 = vld [vmem:[#allocation3] sm:$0xe0] }
 0x537   :  { %3172 = vmatprep.mubr.f32.mxu1 %v10065_v15 }
 0x53a   :  { %5734 = vmatmul.mubr.msk.f32.vlgmr.msra.gmra.mrb[12].mxu1 %vm50_vm10, %v3087_v42  ;;  %v3453_v42 = vld [vmem:[%s11791_s10 + $0x10] sm:$0xff] }
 0x53b   :  { %7027 = vmatpush1.bf16.msra.mxu1 %v7026_v35  ;;  %3178 = vmatprep.mubr.f32.mxu1 %v10065_v15 }
 0x53c   :  { %7029 = vmatprep.subr.bf16.mxu1 %v7028_v27 }
 0x53e   :  { %5735 = vmatmul.mubr.msk.f32.gmra.mrb[14].mxu1 %vm50_vm10, %v3088_v50  ;;  %v3594_v50 = vrot.slane %v3515_v10, 5  ;;  %v3467_v10 = vld [vmem:[%s11791_s10 + $0x80] sm:$0xff] }
 0x53f   :  { %3184 = vmatprep.mubr.f32.mxu1 %v10065_v15  ;;  %7031 = vmatpush1.bf16.msra.mxu1 %v7030_v20 }
 0x540   :  { %7033 = vmatprep.subr.bf16.mxu1 %v7032_v62  ;;  %v3456_v62 = vld [vmem:[%s11791_s10 + $0x28] sm:$0xff] }
 0x542   :  { %5736 = vmatmul.mubr.msk.f32.gmra.mrb[16].mxu1 %vm50_vm10, %v3089_v53  ;;  %v3421_v53 = vld [vmem:[%s11790_s9 + $0x20] sm:$0xff] }
 0x543   :  { %3282 = vmatprep.mubr.f32.mxu1 %v10065_v15 }
 0x546   :  { %5745 = vmatmul.mubr.msk.f32.vlgmr.msra.gmra.mrb[12].mxu1 %vm50_vm10, %v3197_v14 }
 0x547   :  { %7035 = vmatpush1.bf16.msra.mxu1 %v7034_v24  ;;  %3288 = vmatprep.mubr.f32.mxu1 %v10065_v15  ;;  %v3422_v24 = vld [vmem:[%s11790_s9 + $0x28] sm:$0xff] }
 0x548   :  { %7037 = vmatprep.subr.bf16.mxu1 %v7036_v19  ;;  %v7106_v19 = vpack.c.bf16 %v3453_v42, %v3451_v22  ;;  %v3474_v22 = vld [vmem:[%s11791_s10 + $0xb8] sm:$0xff] }
 0x54a   :  { %5746 = vmatmul.mubr.msk.f32.gmra.mrb[14].mxu1 %vm50_vm10, %v3198_v31  ;;  %v7108_v31 = vpack.c.bf16 %v3458_v51, %v3456_v62  ;;  %v3476_v62 = vld [vmem:[%s11791_s10 + $0xc8] sm:$0xff]  ;;  %v3478_v51 = vld [vmem:[%s11791_s10 + $0xd8] sm:$0xff] }
 0x54b   :  { %3294 = vmatprep.mubr.f32.mxu1 %v10065_v15  ;;  %7039 = vmatpush1.bf16.msra.mxu1 %v7038_v52  ;;  %v3455_v52 = vld [vmem:[%s11791_s10 + $0x20] sm:$0xff] }
 0x54e   :  { %5747 = vmatmul.mubr.msk.f32.gmra.mrb[16].mxu1 %vm50_vm10, %v3199_v25  ;;  %v3457_v25 = vld [vmem:[%s11791_s10 + $0x30] sm:$0xff] }
 0x54f   :  { %3392 = vmatprep.mubr.f32.mxu1 %v10065_v15  ;;  %v7110_v7 = vpack.c.bf16 %v3457_v25, %v3455_v52  ;;  %v3479_v52 = vld [vmem:[%s11791_s10 + $0xe0] sm:$0xff]  ;;  %v3481_v25 = vld [vmem:[%s11791_s10 + $0xf0] sm:$0xff] }
 0x552   :  { %5756 = vmatmul.mubr.msk.f32.vlgmr.msra.gmra.mrb[12].mxu1 %vm50_vm10, %v3307_v36 }
 0x553   :  { %3398 = vmatprep.mubr.f32.mxu1 %v10065_v15 }
 0x556   :  { %5757 = vmatmul.mubr.msk.f32.gmra.mrb[14].mxu1 %vm50_vm10, %v3308_v54 }
 0x557   :  { %3404 = vmatprep.mubr.f32.mxu1 %v10065_v15  ;;  %v5809_v15 = vld [vmem:[%s11791_s10 + $0x390] sm:$0xff] }
 0x558   :  { %v7090_v58 = vpack.c.bf16 %v5809_v15, %v5807_v33  ;;  %v3462_v33 = vld [vmem:[%s11791_s10 + $0x58] sm:$0xff] }
 0x559   :  { %v7112_v40 = vpack.c.bf16 %v3462_v33, %v3460_v9  ;;  %v3483_v9 = vld [vmem:[%s11791_s10 + $0x100] sm:$0xff]  ;;  %v3485_v33 = vld [vmem:[%s11791_s10 + $0x110] sm:$0xff] }
 0x55a   :  { %5758 = vmatmul.mubr.msk.f32.gmra.mrb[16].mxu1 %vm50_vm10, %v3309_v28  ;;  %7091 = vmatpush1.bf16.msra.mxu0 %v7090_v58 }
 0x55b   :  { %7093 = vmatprep.subr.bf16.mxu0 %v7092_v38 }
 0x55e   :  { %7095 = vmatpush1.bf16.msra.mxu0 %v7094_v12  ;;  %v3459_v12 = vld [vmem:[%s11791_s10 + $0x40] sm:$0xff] }
 0x55f   :  { %7097 = vmatprep.subr.bf16.mxu0 %v7096_v1  ;;  %v3464_v1 = vld [vmem:[%s11791_s10 + $0x68] sm:$0xff] }
 0x560   :  { %v7116_v32 = vpack.c.bf16 %v3466_v60, %v3464_v1  ;;  %v3491_v1 = vld [vmem:[%s11791_s10 + $0x140] sm:$0xff]  ;;  %v3493_v60 = vld [vmem:[%s11791_s10 + $0x150] sm:$0xff] }
 0x562   :  { %7099 = vmatpush1.bf16.msra.mxu0 %v7098_v26  ;;  %v3517_v26 = vld [vmem:[#allocation3 + $0x40] sm:$0x1f] }
 0x563   :  { %7101 = vmatprep.subr.bf16.mxu0 %v7100_v34  ;;  %v7114_v34 = vpack.c.bf16 %v3461_v63, %v3459_v12  ;;  %v3492_v12 = vld [vmem:[%s11791_s10 + $0x148] sm:$0xff]  ;;  %v3494_v63 = vld [vmem:[%s11791_s10 + $0x158] sm:$0xff] }
 0x566   :  { %7103 = vmatpush1.bf16.msra.mxu0 %v7102_v46  ;;  %v3465_v46 = vld [vmem:[%s11791_s10 + $0x70] sm:$0xff] }
 0x567   :  { %7105 = vmatprep.subr.bf16.mxu0 %v7104_v0 }
 0x625   :  { %v3394_v29 = vpop.f32.mrb[12].mxu1 }
 0x626   :  { %v3423_v30 = vadd.f32 %v3417_v23, %v3394_v29  ;;  %v3396_v56 = vpop.f32.mrb[13].mxu1  ;;  %v3608_v23 = vrot.slane %v3517_v26, 5  ;;  %v3470_v29 = vld [vmem:[%s11791_s10 + $0x98] sm:$0xff]  ;;  %v7146_v26 = vpack.c.bf16 %v3493_v60, %v3491_v1  ;;  %v5831_v1 = vld [vmem:[%s11791_s10 + $0x440] sm:$0xff]  ;;  %v5833_v60 = vld [vmem:[%s11791_s10 + $0x450] sm:$0xff] }
 0x627   :  { %v3424_v39 = vadd.f32 %v3418_v17, %v3396_v56  ;;  %v3468_v17 = vld [vmem:[%s11791_s10 + $0x88] sm:$0xff]  ;;  %v3716_v56 = vrot.slane %v3442_v5, 4  ;;  %v3495_v5 = vld [vmem:[%s11791_s10 + $0x160] sm:$0xff] }
 0x628   :  { %v10332_v3 = vmax.f32 %v3423_v30, 0.0 }
 0x629   :  { %v10337_v35 = vmax.f32 %v3424_v39, 0.0  ;;  %v3400_v27 = vpop.f32.mrb[14].mxu1  ;;  %v7118_v39 = vpack.c.bf16 %v3465_v46, %v3463_v47  ;;  %v3502_v47 = vld [vmem:[%s11791_s10 + $0x198] sm:$0xff] }
 0x62a   :  { %3435 = vst [vmem:[#allocation3 + $0x10] sm:$0xff] %v10332_v3  ;;  %v3425_v41 = vadd.f32 %v3419_v59, %v3400_v27  ;;  %v3402_v48 = vpop.f32.mrb[15].mxu1  ;;  %v3595_v20 = vrot.slane %v10332_v3, 5  ;;  %v7120_v59 = vpack.c.bf16 %v3470_v29, %v3468_v17  ;;  %v3501_v17 = vld [vmem:[%s11791_s10 + $0x190] sm:$0xff]  ;;  %v3504_v29 = vld [vmem:[%s11791_s10 + $0x1a8] sm:$0xff] }
 0x62b   :  { %3436 = vst [vmem:[#allocation3 + $0x18] sm:$0xff] %v10337_v35  ;;  %v3426_v45 = vadd.f32 %v3420_v21, %v3402_v48  ;;  %v3598_v11 = vrot.slane %v10337_v35, 5  ;;  %v3717_v55 = vrot.slane %v10337_v35, 4  ;;  %v3469_v21 = vld [vmem:[%s11791_s10 + $0x90] sm:$0xff] }
 0x62c   :  { %v10358_v44 = vmax.f32 %v3425_v41, 0.0  ;;  %v3596_v28 = vsel %vm2157_vm7, %v3594_v50, %v3595_v20  ;;  %v7122_v41 = vpack.c.bf16 %v3469_v21, %v3467_v10  ;;  %v3471_v50 = vld [vmem:[%s11791_s10 + $0xa0] sm:$0xff]  ;;  %v3505_v10 = vld [vmem:[%s11791_s10 + $0x1b0] sm:$0xff]  ;;  %v3508_v21 = vld [vmem:[%s11791_s10 + $0x1c8] sm:$0xff] }
 0x62d   :  { %v10363_v49 = vmax.f32 %v3426_v45, 0.0  ;;  %v3406_v6 = vpop.f32.mrb[16].mxu1  ;;  %v3599_v14 = vsel %vm2157_vm7, %v3597_v18, %v3598_v11  ;;  %v3472_v18 = vld [vmem:[%s11791_s10 + $0xa8] sm:$0xff]  ;;  %v3718_v42 = vsel %vm1352_vm5, %v3716_v56, %v3717_v55 }
 0x62e   :  { %3437 = vst [vmem:[#allocation3 + $0x20] sm:$0xff] %v10358_v44  ;;  %v3427_v36 = vadd.f32 %v3421_v53, %v3406_v6  ;;  %v3408_v54 = vpop.f32.mrb[17].mxu1  ;;  %3684 = vmatprep.mubr.f32.mxu0 %v3599_v14  ;;  %v3600_v37 = vrot.slane %v10358_v44, 5  ;;  %v7124_v48 = vpack.c.bf16 %v3474_v22, %v3472_v18  ;;  %v7128_v53 = vpack.c.bf16 %v3478_v51, %v3476_v62  ;;  %v3482_v6 = vld [vmem:[%s11791_s10 + $0xf8] sm:$0xff]  ;;  %v3511_v51 = vld [vmem:[%s11791_s10 + $0x1e0] sm:$0xff] }
 0x62f   :  { %3438 = vst [vmem:[#allocation3 + $0x28] sm:$0xff] %v10363_v49  ;;  %v3428_v57 = vadd.f32 %v3422_v24, %v3408_v54  ;;  %3685 = vmatmul.mubr.f32.vlgmr.msra.gmra.mrb[50].mxu0 %v3596_v28  ;;  %v3602_v15 = vrot.slane %v10363_v49, 5  ;;  %v3477_v24 = vld [vmem:[%s11791_s10 + $0xd0] sm:$0xff]  ;;  %v3486_v54 = vld [vmem:[%s11791_s10 + $0x118] sm:$0xff]  ;;  %v7134_v28 = vpack.c.bf16 %v3481_v25, %v3479_v52  ;;  %v3714_v25 = vrot.slane %v10332_v3, 4 }
 0x630   :  { %v10383_v58 = vmax.f32 %v3427_v36, 0.0  ;;  %7107 = vmatpush1.bf16.msra.mxu0 %v7106_v19  ;;  %v3601_v4 = vsel %vm2157_vm7, %v3595_v20, %v3600_v37  ;;  %v3473_v20 = vld [vmem:[%s11791_s10 + $0xb0] sm:$0xff]  ;;  %v3480_v19 = vld [vmem:[%s11791_s10 + $0xe8] sm:$0xff] }
 0x631   :  { %v10385_v8 = vmax.f32 %v3428_v57, 0.0  ;;  %v3603_v38 = vsel %vm2157_vm7, %v3598_v11, %v3602_v15  ;;  %7109 = vmatprep.subr.bf16.mxu0 %v7108_v31  ;;  %v7126_v45 = vpack.c.bf16 %v3473_v20, %v3471_v50  ;;  %v3475_v11 = vld [vmem:[%s11791_s10 + $0xc0] sm:$0xff]  ;;  %v7132_v31 = vpack.c.bf16 %v3482_v6, %v3480_v19  ;;  %v3484_v36 = vld [vmem:[%s11791_s10 + $0x108] sm:$0xff]  ;;  %v3514_v50 = vld [vmem:[%s11791_s10 + $0x1f8] sm:$0xff] }
 0x632   :  { %3439 = vst [vmem:[#allocation3 + $0x30] sm:$0xff] %v10383_v58  ;;  %3690 = vmatprep.mubr.f32.mxu0 %v3603_v38  ;;  %v3604_v16 = vrot.slane %v10383_v58, 5  ;;  %v7130_v14 = vpack.c.bf16 %v3477_v24, %v3475_v11  ;;  %v3488_v57 = vld [vmem:[%s11791_s10 + $0x128] sm:$0xff]  ;;  %v3487_v38 = vld [vmem:[%s11791_s10 + $0x120] sm:$0xff]  ;;  %v5826_v11 = vld [vmem:[%s11791_s10 + $0x418] sm:$0xff] }
 0x633   :  { %3440 = vst [vmem:[#allocation3 + $0x38] sm:$0xff] %v10385_v8  ;;  %3691 = vmatmul.mubr.f32.gmra.mrb[52].mxu0 %v3601_v4  ;;  %v3606_v43 = vrot.slane %v10385_v8, 5  ;;  %v3441_v24 = vld [vmem:[#allocation3] sm:$0xf0] }
 0x634   :  { %7111 = vmatpush1.bf16.msra.mxu0 %v7110_v7  ;;  %v3605_v0 = vsel %vm2157_vm7, %v3600_v37, %v3604_v16  ;;  %v3609_v27 = vsel %vm2157_vm7, %v3604_v16, %v3608_v23  ;;  %v7136_v37 = vpack.c.bf16 %v3486_v54, %v3484_v36  ;;  %v7138_v7 = vpack.c.bf16 %v3485_v33, %v3483_v9  ;;  %v3499_v23 = vld [vmem:[%s11791_s10 + $0x180] sm:$0xff]  ;;  %v5828_v36 = vld [vmem:[%s11791_s10 + $0x428] sm:$0xff]  ;;  %v5830_v54 = vld [vmem:[%s11791_s10 + $0x438] sm:$0xff] }
 0x635   :  { %v3607_v13 = vsel %vm2157_vm7, %v3602_v15, %v3606_v43  ;;  %7113 = vmatprep.subr.bf16.mxu0 %v7112_v40  ;;  %v3611_v30 = vsel %vm2157_vm7, %v3606_v43, %v3610_v2  ;;  %v3490_v15 = vld [vmem:[%s11791_s10 + $0x138] sm:$0xff]  ;;  %v3489_v40 = vld [vmem:[%s11791_s10 + $0x130] sm:$0xff]  ;;  %v7144_v16 = vpack.c.bf16 %v3494_v63, %v3492_v12  ;;  %v3496_v43 = vld [vmem:[%s11791_s10 + $0x168] sm:$0xff]  ;;  %v7154_v56 = vpack.c.bf16 %v3501_v17, %v3499_v23 }
 0x636   :  { %3696 = vmatprep.mubr.f32.mxu0 %v3607_v13  ;;  %v7140_v61 = vpack.c.bf16 %v3490_v15, %v3488_v57  ;;  %v7142_v4 = vpack.c.bf16 %v3489_v40, %v3487_v38  ;;  %v3498_v2 = vld [vmem:[%s11791_s10 + $0x178] sm:$0xff]  ;;  %v3497_v13 = vld [vmem:[%s11791_s10 + $0x170] sm:$0xff]  ;;  %v3713_v52 = vrot.slane %v3441_v24, 4  ;;  %v7172_v9 = vpack.c.bf16 %v5830_v54, %v5828_v36  ;;  %v5827_v33 = vld [vmem:[%s11791_s10 + $0x420] sm:$0xff] }
 0x637   :  { %3697 = vmatmul.mubr.f32.gmra.mrb[54].mxu0 %v3605_v0  ;;  %v7150_v46 = vpack.c.bf16 %v3497_v13, %v3495_v5  ;;  %v5829_v57 = vld [vmem:[%s11791_s10 + $0x430] sm:$0xff]  ;;  %v5834_v38 = vld [vmem:[%s11791_s10 + $0x458] sm:$0xff]  ;;  %v3725_v12 = vrot.slane %v10385_v8, 4  ;;  %v3449_v13 = vld [vmem:[#allocation3 + $0x40] sm:$0xf] }
 0x638   :  { %7115 = vmatpush1.bf16.msra.mxu0 %v7114_v34  ;;  %3702 = vmatprep.mubr.f32.mxu0 %v3611_v30  ;;  %v7148_v34 = vpack.c.bf16 %v3498_v2, %v3496_v43  ;;  %v3506_v30 = vld [vmem:[%s11791_s10 + $0x1b8] sm:$0xff]  ;;  %v3715_v15 = vsel %vm1352_vm5, %v3713_v52, %v3714_v25  ;;  %v7174_v63 = vpack.c.bf16 %v5829_v57, %v5827_v33  ;;  %v5836_v2 = vld [vmem:[%s11791_s10 + $0x468] sm:$0xff]  ;;  %v5837_v23 = vld [vmem:[%s11791_s10 + $0x470] sm:$0xff] }
 0x639   :  { %7117 = vmatprep.subr.bf16.mxu0 %v7116_v32  ;;  %v3500_v32 = vld [vmem:[%s11791_s10 + $0x188] sm:$0xff]  ;;  %v5854_v52 = vld [vmem:[%s11791_s10 + $0x4f8] sm:$0xff]  ;;  %v5851_v54 = vld [vmem:[%s11791_s10 + $0x4e0] sm:$0xff] }
 0x63a   :  { %v7152_v0 = vpack.c.bf16 %v3502_v47, %v3500_v32  ;;  %v7178_v32 = vpack.c.bf16 %v5833_v60, %v5831_v1  ;;  %v3829_v47 = vld [vmem:[#allocation3 + $0x8] sm:$0xc0]  ;;  %v5866_v1 = vld [vmem:[%s11791_s10 + $0x558] sm:$0xff] }
 0x63b   :  { %3703 = vmatmul.mubr.f32.gmra.mrb[56].mxu0 %v3609_v27  ;;  %v3510_v27 = vld [vmem:[%s11791_s10 + $0x1d8] sm:$0xff] }
 0x63c   :  { %7119 = vmatpush1.bf16.msra.mxu0 %v7118_v39  ;;  %3803 = vmatprep.mubr.f32.mxu0 %v3718_v42  ;;  %v7156_v39 = vpack.c.bf16 %v3506_v30, %v3504_v29  ;;  %v7160_v22 = vpack.c.bf16 %v3510_v27, %v3508_v21  ;;  %v3507_v42 = vld [vmem:[%s11791_s10 + $0x1c0] sm:$0xff]  ;;  %v3727_v29 = vrot.slane %v3449_v13, 4  ;;  %v5840_v30 = vld [vmem:[%s11791_s10 + $0x488] sm:$0xff] }
 0x63d   :  { %7121 = vmatprep.subr.bf16.mxu0 %v7120_v59  ;;  %v3503_v59 = vld [vmem:[%s11791_s10 + $0x1a0] sm:$0xff] }
 0x63e   :  { %v7158_v18 = vpack.c.bf16 %v3505_v10, %v3503_v59  ;;  %v3904_v59 = vrot.slane %v3829_v47, 6  ;;  %v3905_v10 = vrot.slane %v10337_v35, 6  ;;  %v5869_v47 = vld [vmem:[%s11791_s10 + $0x570] sm:$0xff] }
 0x640   :  { %7123 = vmatpush1.bf16.msra.mxu0 %v7122_v41  ;;  %v3509_v41 = vld [vmem:[%s11791_s10 + $0x1d0] sm:$0xff] }
 0x641   :  { %7125 = vmatprep.subr.bf16.mxu0 %v7124_v48  ;;  %v3512_v48 = vld [vmem:[%s11791_s10 + $0x1e8] sm:$0xff]  ;;  %v7162_v20 = vpack.c.bf16 %v3509_v41, %v3507_v42 }
 0x642   :  { %v7164_v62 = vpack.c.bf16 %v3514_v50, %v3512_v48  ;;  %v5844_v41 = vld [vmem:[%s11791_s10 + $0x4a8] sm:$0xff]  ;;  %v5846_v48 = vld [vmem:[%s11791_s10 + $0x4b8] sm:$0xff]  ;;  %v3906_v50 = vsel %vm2288_vm6, %v3904_v59, %v3905_v10 }
 0x644   :  { %7127 = vmatpush1.bf16.msra.mxu0 %v7126_v45  ;;  %v3513_v45 = vld [vmem:[%s11791_s10 + $0x1f0] sm:$0xff] }
 0x645   :  { %7129 = vmatprep.subr.bf16.mxu0 %v7128_v53  ;;  %v5824_v53 = vld [vmem:[%s11791_s10 + $0x408] sm:$0xff]  ;;  %v7166_v19 = vpack.c.bf16 %v3513_v45, %v3511_v51  ;;  %v5843_v51 = vld [vmem:[%s11791_s10 + $0x4a0] sm:$0xff]  ;;  %v5845_v45 = vld [vmem:[%s11791_s10 + $0x4b0] sm:$0xff] }
 0x646   :  { %v7168_v6 = vpack.c.bf16 %v5826_v11, %v5824_v53  ;;  %v5848_v53 = vld [vmem:[%s11791_s10 + $0x4c8] sm:$0xff]  ;;  %v5850_v11 = vld [vmem:[%s11791_s10 + $0x4d8] sm:$0xff]  ;;  %v7190_v24 = vpack.c.bf16 %v5845_v45, %v5843_v51 }
 0x647   :  { %v5886_v51 = vld [vmem:[%s11791_s10 + $0x5f8] sm:$0xff] }
 0x648   :  { %7131 = vmatpush1.bf16.msra.mxu0 %v7130_v14  ;;  %v5823_v14 = vld [vmem:[%s11791_s10 + $0x400] sm:$0xff] }
 0x649   :  { %7133 = vmatprep.subr.bf16.mxu0 %v7132_v31  ;;  %v5825_v31 = vld [vmem:[%s11791_s10 + $0x410] sm:$0xff] }
 0x64c   :  { %7135 = vmatpush1.bf16.msra.mxu0 %v7134_v28  ;;  %v3721_v28 = vrot.slane %v10363_v49, 4 }
 0x64d   :  { %7137 = vmatprep.subr.bf16.mxu0 %v7136_v37  ;;  %v7170_v37 = vpack.c.bf16 %v5825_v31, %v5823_v14  ;;  %v5849_v14 = vld [vmem:[%s11791_s10 + $0x4d0] sm:$0xff]  ;;  %v5852_v31 = vld [vmem:[%s11791_s10 + $0x4e8] sm:$0xff] }
 0x64e   :  { %v3722_v40 = vsel %vm1352_vm5, %v3717_v55, %v3721_v28  ;;  %v3723_v55 = vrot.slane %v10383_v58, 4  ;;  %v7196_v36 = vpack.c.bf16 %v5854_v52, %v5852_v31 }
 0x650   :  { %7139 = vmatpush1.bf16.msra.mxu0 %v7138_v7  ;;  %v3719_v7 = vrot.slane %v10358_v44, 4  ;;  %v3728_v42 = vsel %vm1352_vm5, %v3723_v55, %v3727_v29  ;;  %v5871_v29 = vld [vmem:[%s11791_s10 + $0x580] sm:$0xff] }
 0x651   :  { %7141 = vmatprep.subr.bf16.mxu0 %v7140_v61  ;;  %v5832_v61 = vld [vmem:[%s11791_s10 + $0x448] sm:$0xff] }
 0x652   :  { %v3720_v43 = vsel %vm1352_vm5, %v3714_v25, %v3719_v7  ;;  %v3724_v17 = vsel %vm1352_vm5, %v3719_v7, %v3723_v55  ;;  %v5857_v7 = vld [vmem:[%s11791_s10 + $0x510] sm:$0xff]  ;;  %v5863_v55 = vld [vmem:[%s11791_s10 + $0x540] sm:$0xff] }
 0x654   :  { %7143 = vmatpush1.bf16.msra.mxu0 %v7142_v4  ;;  %v3450_v4 = vld [vmem:[#allocation3 + $0x48] sm:$0xf] }
 0x655   :  { %7145 = vmatprep.subr.bf16.mxu0 %v7144_v16  ;;  %v7176_v16 = vpack.c.bf16 %v5834_v38, %v5832_v61  ;;  %v3729_v5 = vrot.slane %v3450_v4, 4  ;;  %v5860_v61 = vld [vmem:[%s11791_s10 + $0x528] sm:$0xff]  ;;  %v5862_v38 = vld [vmem:[%s11791_s10 + $0x538] sm:$0xff]  ;;  %v5861_v4 = vld [vmem:[%s11791_s10 + $0x530] sm:$0xff] }
 0x658   :  { %7147 = vmatpush1.bf16.msra.mxu0 %v7146_v26  ;;  %v5838_v26 = vld [vmem:[%s11791_s10 + $0x478] sm:$0xff] }
 0x659   :  { %7149 = vmatprep.subr.bf16.mxu0 %v7148_v34  ;;  %v3726_v34 = vsel %vm1352_vm5, %v3721_v28, %v3725_v12  ;;  %v5853_v28 = vld [vmem:[%s11791_s10 + $0x4f0] sm:$0xff] }
 0x65a   :  { %v7198_v33 = vpack.c.bf16 %v5853_v28, %v5851_v54  ;;  %v3902_v28 = vrot.slane %v10332_v3, 6  ;;  %v5893_v3 = vld [vmem:[%s11791_s10 + $0x630] sm:$0xff] }
 0x65c   :  { %7151 = vmatpush1.bf16.msra.mxu0 %v7150_v46  ;;  %v7180_v46 = vpack.c.bf16 %v5838_v26, %v5836_v2  ;;  %v5865_v2 = vld [vmem:[%s11791_s10 + $0x550] sm:$0xff]  ;;  %v5868_v26 = vld [vmem:[%s11791_s10 + $0x568] sm:$0xff] }
 0x65d   :  { %7153 = vmatprep.subr.bf16.mxu0 %v7152_v0  ;;  %v5835_v0 = vld [vmem:[%s11791_s10 + $0x460] sm:$0xff] }
 0x65e   :  { %v7182_v21 = vpack.c.bf16 %v5837_v23, %v5835_v0  ;;  %v5874_v0 = vld [vmem:[%s11791_s10 + $0x598] sm:$0xff] }
 0x660   :  { %7155 = vmatpush1.bf16.msra.mxu0 %v7154_v56  ;;  %v5842_v56 = vld [vmem:[%s11791_s10 + $0x498] sm:$0xff] }
 0x661   :  { %7157 = vmatprep.subr.bf16.mxu0 %v7156_v39  ;;  %v3730_v39 = vsel %vm1352_vm5, %v3725_v12, %v3729_v5  ;;  %v7184_v27 = vpack.c.bf16 %v5842_v56, %v5840_v30  ;;  %v7204_v12 = vpack.c.bf16 %v5862_v38, %v5860_v61  ;;  %v7210_v5 = vpack.c.bf16 %v5865_v2, %v5863_v55  ;;  %v5873_v30 = vld [vmem:[%s11791_s10 + $0x590] sm:$0xff]  ;;  %v5876_v56 = vld [vmem:[%s11791_s10 + $0x5a8] sm:$0xff]  ;;  %v5902_v2 = vld [vmem:[%s11791_s10 + $0x678] sm:$0xff] }
 0x662   :  { %v7218_v59 = vpack.c.bf16 %v5873_v30, %v5871_v29  ;;  %v3907_v38 = vrot.slane %v10358_v44, 6  ;;  %v5900_v55 = vld [vmem:[%s11791_s10 + $0x668] sm:$0xff]  ;;  %v5906_v29 = vld [vmem:[%s11791_s10 + $0x698] sm:$0xff] }
 0x664   :  { %7159 = vmatpush1.bf16.msra.mxu0 %v7158_v18  ;;  %v5839_v18 = vld [vmem:[%s11791_s10 + $0x480] sm:$0xff] }
 0x665   :  { %7161 = vmatprep.subr.bf16.mxu0 %v7160_v22  ;;  %v5841_v22 = vld [vmem:[%s11791_s10 + $0x490] sm:$0xff] }
 0x668   :  { %7163 = vmatpush1.bf16.msra.mxu0 %v7162_v20  ;;  %v7186_v20 = vpack.c.bf16 %v5841_v22, %v5839_v18  ;;  %v5877_v18 = vld [vmem:[%s11791_s10 + $0x5b0] sm:$0xff]  ;;  %v5880_v22 = vld [vmem:[%s11791_s10 + $0x5c8] sm:$0xff] }
 0x669   :  { %7165 = vmatprep.subr.bf16.mxu0 %v7164_v62  ;;  %v7188_v62 = vpack.c.bf16 %v5846_v48, %v5844_v41 }
 0x66c   :  { %7167 = vmatpush1.bf16.msra.mxu0 %v7166_v19  ;;  %v7192_v19 = vpack.c.bf16 %v5850_v11, %v5848_v53  ;;  %v5883_v11 = vld [vmem:[%s11791_s10 + $0x5e0] sm:$0xff] }
 0x66d   :  { %7169 = vmatprep.subr.bf16.mxu0 %v7168_v6  ;;  %v5847_v6 = vld [vmem:[%s11791_s10 + $0x4c0] sm:$0xff] }
 0x66e   :  { %v7194_v25 = vpack.c.bf16 %v5849_v14, %v5847_v6  ;;  %v5890_v6 = vld [vmem:[%s11791_s10 + $0x618] sm:$0xff]  ;;  %v3828_v14 = vld [vmem:[#allocation3] sm:$0xc0] }
 0x66f   :  { %3804 = vmatmul.mubr.f32.vlgmr.msra.gmra.mrb[50].mxu0 %v3715_v15  ;;  %v5855_v15 = vld [vmem:[%s11791_s10 + $0x500] sm:$0xff]  ;;  %v3901_v54 = vrot.slane %v3828_v14, 6  ;;  %v5912_v14 = vld [vmem:[%s11791_s10 + $0x6c8] sm:$0xff] }
 0x670   :  { %3809 = vmatprep.mubr.f32.mxu0 %v3722_v40  ;;  %7171 = vmatpush1.bf16.msra.mxu0 %v7170_v37  ;;  %v5856_v37 = vld [vmem:[%s11791_s10 + $0x508] sm:$0xff]  ;;  %v7202_v40 = vpack.c.bf16 %v5857_v7, %v5855_v15  ;;  %v5891_v7 = vld [vmem:[%s11791_s10 + $0x620] sm:$0xff] }
 0x671   :  { %7173 = vmatprep.subr.bf16.mxu0 %v7172_v9  ;;  %v5858_v9 = vld [vmem:[%s11791_s10 + $0x518] sm:$0xff]  ;;  %v3903_v61 = vsel %vm2288_vm6, %v3901_v54, %v3902_v28 }
 0x672   :  { %v7200_v57 = vpack.c.bf16 %v5858_v9, %v5856_v37  ;;  %v5892_v37 = vld [vmem:[%s11791_s10 + $0x628] sm:$0xff]  ;;  %v5894_v9 = vld [vmem:[%s11791_s10 + $0x638] sm:$0xff] }
 0x673   :  { %3810 = vmatmul.mubr.f32.gmra.mrb[52].mxu0 %v3720_v43  ;;  %v7236_v15 = vpack.c.bf16 %v5894_v9, %v5892_v37  ;;  %v5911_v37 = vld [vmem:[%s11791_s10 + $0x6c0] sm:$0xff]  ;;  %v5913_v9 = vld [vmem:[%s11791_s10 + $0x6d0] sm:$0xff] }
 0x674   :  { %3815 = vmatprep.mubr.f32.mxu0 %v3726_v34  ;;  %7175 = vmatpush1.bf16.msra.mxu0 %v7174_v63  ;;  %v5859_v63 = vld [vmem:[%s11791_s10 + $0x520] sm:$0xff]  ;;  %v5870_v34 = vld [vmem:[%s11791_s10 + $0x578] sm:$0xff] }
 0x675   :  { %7177 = vmatprep.subr.bf16.mxu0 %v7176_v16  ;;  %v5864_v16 = vld [vmem:[%s11791_s10 + $0x548] sm:$0xff]  ;;  %v7206_v60 = vpack.c.bf16 %v5861_v4, %v5859_v63  ;;  %v7212_v13 = vpack.c.bf16 %v5870_v34, %v5868_v26  ;;  %v3913_v63 = vrot.slane %v10385_v8, 6  ;;  %v7238_v4 = vpack.c.bf16 %v5893_v3, %v5891_v7  ;;  %v6021_v7 = vld [vmem:[%s11793_s12 + $0xf0] sm:$0xff]  ;;  %v6022_v3 = vld [vmem:[%s11793_s12 + $0xf8] sm:$0xff] }
 0x676   :  { %v7208_v43 = vpack.c.bf16 %v5866_v1, %v5864_v16  ;;  %v3831_v16 = vld [vmem:[#allocation3 + $0x48] sm:$0x3f]  ;;  %v5895_v1 = vld [vmem:[%s11791_s10 + $0x640] sm:$0xff] }
 0x677   :  { %3816 = vmatmul.mubr.f32.gmra.mrb[54].mxu0 %v3724_v17  ;;  %v3917_v34 = vrot.slane %v3831_v16, 6  ;;  %v6023_v16 = vld [vmem:[%s11793_s12 + $0x100] sm:$0xff] }
 0x678   :  { %3821 = vmatprep.mubr.f32.mxu0 %v3730_v39  ;;  %7179 = vmatpush1.bf16.msra.mxu0 %v7178_v32  ;;  %v5867_v32 = vld [vmem:[%s11791_s10 + $0x560] sm:$0xff]  ;;  %v5878_v39 = vld [vmem:[%s11791_s10 + $0x5b8] sm:$0xff] }
 0x679   :  { %7181 = vmatprep.subr.bf16.mxu0 %v7180_v46  ;;  %v5872_v46 = vld [vmem:[%s11791_s10 + $0x588] sm:$0xff]  ;;  %v7214_v23 = vpack.c.bf16 %v5869_v47, %v5867_v32  ;;  %v7244_v47 = vpack.c.bf16 %v5902_v2, %v5900_v55  ;;  %v3918_v30 = vsel %vm2288_vm6, %v3913_v63, %v3917_v34  ;;  %v5926_v2 = vld [vmem:[%s11791_s10 + $0x738] sm:$0xff]  ;;  %v6025_v34 = vld [vmem:[%s11793_s12 + $0x110] sm:$0xff] }
 0x67a   :  { %v7216_v17 = vpack.c.bf16 %v5874_v0, %v5872_v46  ;;  %v4025_v32 = vld [vmem:[#allocation3 + $0x8] sm:$0x80]  ;;  %v5901_v46 = vld [vmem:[%s11791_s10 + $0x670] sm:$0xff] }
 0x67b   :  { %3822 = vmatmul.mubr.f32.gmra.mrb[56].mxu0 %v3728_v42  ;;  %v5882_v42 = vld [vmem:[%s11791_s10 + $0x5d8] sm:$0xff]  ;;  %v5924_v55 = vld [vmem:[%s11791_s10 + $0x728] sm:$0xff] }
 0x67c   :  { %7183 = vmatpush1.bf16.msra.mxu0 %v7182_v21  ;;  %3991 = vmatprep.mubr.f32.mxu0 %v3906_v50  ;;  %v7220_v21 = vpack.c.bf16 %v5878_v39, %v5876_v56  ;;  %v7224_v48 = vpack.c.bf16 %v5882_v42, %v5880_v22  ;;  %v5879_v50 = vld [vmem:[%s11791_s10 + $0x5c0] sm:$0xff]  ;;  %v4100_v56 = vrot.slane %v4025_v32, 7  ;;  %v4101_v39 = vrot.slane %v10337_v35, 7  ;;  %v5908_v42 = vld [vmem:[%s11791_s10 + $0x6a8] sm:$0xff] }
 0x67d   :  { %7185 = vmatprep.subr.bf16.mxu0 %v7184_v27  ;;  %v5875_v27 = vld [vmem:[%s11791_s10 + $0x5a0] sm:$0xff]  ;;  %v7268_v32 = vpack.c.bf16 %v5926_v2, %v5924_v55  ;;  %v11052_v55 = vld [vmem:[#allocation3 + $0x10] sm:$0xff] }
 0x67e   :  { %v7222_v41 = vpack.c.bf16 %v5877_v18, %v5875_v27  ;;  %v5903_v27 = vld [vmem:[%s11791_s10 + $0x680] sm:$0xff]  ;;  %v5905_v18 = vld [vmem:[%s11791_s10 + $0x690] sm:$0xff]  ;;  %v4098_v2 = vrot.slane %v11052_v55, 7 }
 0x680   :  { %7187 = vmatpush1.bf16.msra.mxu0 %v7186_v20  ;;  %v5881_v20 = vld [vmem:[%s11791_s10 + $0x5d0] sm:$0xff] }
 0x681   :  { %7189 = vmatprep.subr.bf16.mxu0 %v7188_v62  ;;  %v5884_v62 = vld [vmem:[%s11791_s10 + $0x5e8] sm:$0xff]  ;;  %v7226_v45 = vpack.c.bf16 %v5881_v20, %v5879_v50  ;;  %v6015_v50 = vld [vmem:[%s11793_s12 + $0xc0] sm:$0xff] }
 0x682   :  { %v7228_v53 = vpack.c.bf16 %v5886_v51, %v5884_v62  ;;  %v6016_v20 = vld [vmem:[%s11793_s12 + $0xc8] sm:$0xff]  ;;  %v6017_v62 = vld [vmem:[%s11793_s12 + $0xd0] sm:$0xff]  ;;  %v7250_v51 = vpack.c.bf16 %v5905_v18, %v5903_v27  ;;  %v5934_v18 = vld [vmem:[%s11791_s10 + $0x778] sm:$0xff] }
 0x683   :  { %v5932_v27 = vld [vmem:[%s11791_s10 + $0x768] sm:$0xff] }
 0x684   :  { %7191 = vmatpush1.bf16.msra.mxu0 %v7190_v24  ;;  %v5885_v24 = vld [vmem:[%s11791_s10 + $0x5f0] sm:$0xff] }
 0x685   :  { %7193 = vmatprep.subr.bf16.mxu0 %v7192_v19  ;;  %v5888_v19 = vld [vmem:[%s11791_s10 + $0x608] sm:$0xff]  ;;  %v7230_v31 = vpack.c.bf16 %v5885_v24, %v5883_v11  ;;  %v5907_v24 = vld [vmem:[%s11791_s10 + $0x6a0] sm:$0xff] }
 0x686   :  { %v7232_v52 = vpack.c.bf16 %v5890_v6, %v5888_v19  ;;  %v5909_v19 = vld [vmem:[%s11791_s10 + $0x6b0] sm:$0xff]  ;;  %v7731_v6 = vmov 0.0|0.0  }
 0x687   :  { %7360 = vmatprep.subr.bf16.mxu1 %v7731_v6  ;;  %v7254_v54 = vpack.c.bf16 %v5909_v19, %v5907_v24  ;;  %v5935_v19 = vld [vmem:[%s11791_s10 + $0x780] sm:$0xff] }
 0x688   :  { %7195 = vmatpush1.bf16.msra.mxu0 %v7194_v25  ;;  %v5887_v25 = vld [vmem:[%s11791_s10 + $0x600] sm:$0xff] }
 0x689   :  { %7197 = vmatprep.subr.bf16.mxu0 %v7196_v36  ;;  %v5889_v36 = vld [vmem:[%s11791_s10 + $0x610] sm:$0xff] }
 0x68c   :  { %7199 = vmatpush1.bf16.msra.mxu0 %v7198_v33  ;;  %v3909_v33 = vrot.slane %v10363_v49, 6  ;;  %v5896_v49 = vld [vmem:[%s11791_s10 + $0x648] sm:$0xff] }
 0x68d   :  { %7201 = vmatprep.subr.bf16.mxu0 %v7200_v57  ;;  %v7234_v57 = vpack.c.bf16 %v5889_v36, %v5887_v25  ;;  %v6019_v25 = vld [vmem:[%s11793_s12 + $0xe0] sm:$0xff]  ;;  %v6020_v36 = vld [vmem:[%s11793_s12 + $0xe8] sm:$0xff] }
 0x68e   :  { %v3914_v26 = vsel %vm2288_vm6, %v3909_v33, %v3913_v63  ;;  %v5922_v63 = vld [vmem:[%s11791_s10 + $0x718] sm:$0xff] }
 0x690   :  { %7203 = vmatpush1.bf16.msra.mxu0 %v7202_v40  ;;  %v5898_v40 = vld [vmem:[%s11791_s10 + $0x658] sm:$0xff] }
 0x691   :  { %7205 = vmatprep.subr.bf16.mxu0 %v7204_v12  ;;  %v3910_v12 = vsel %vm2288_vm6, %v3905_v10, %v3909_v33  ;;  %v7240_v44 = vpack.c.bf16 %v5898_v40, %v5896_v49  ;;  %v3911_v10 = vrot.slane %v10383_v58, 6  ;;  %v5899_v58 = vld [vmem:[%s11791_s10 + $0x660] sm:$0xff]  ;;  %v5916_v33 = vld [vmem:[%s11791_s10 + $0x6e8] sm:$0xff]  ;;  %v5917_v40 = vld [vmem:[%s11791_s10 + $0x6f0] sm:$0xff] }
 0x692   :  { %v5915_v49 = vld [vmem:[%s11791_s10 + $0x6e0] sm:$0xff] }
 0x693   :  { %v3912_v0 = vsel %vm2288_vm6, %v3907_v38, %v3911_v10 }
 0x694   :  { %7207 = vmatpush1.bf16.msra.mxu0 %v7206_v60  ;;  %v5897_v60 = vld [vmem:[%s11791_s10 + $0x650] sm:$0xff] }
 0x695   :  { %7209 = vmatprep.subr.bf16.mxu0 %v7208_v43  ;;  %v3908_v43 = vsel %vm2288_vm6, %v3902_v28, %v3907_v38 }
 0x698   :  { %7211 = vmatpush1.bf16.msra.mxu0 %v7210_v5  ;;  %v3830_v5 = vld [vmem:[#allocation3 + $0x40] sm:$0x3f] }
 0x699   :  { %7213 = vmatprep.subr.bf16.mxu0 %v7212_v13  ;;  %v7242_v13 = vpack.c.bf16 %v5897_v60, %v5895_v1  ;;  %v7262_v1 = vpack.c.bf16 %v5917_v40, %v5915_v49  ;;  %v5947_v40 = vld [vmem:[%s11791_s10 + $0x7e0] sm:$0xff] }
 0x69c   :  { %7215 = vmatpush1.bf16.msra.mxu0 %v7214_v23  ;;  %v3915_v23 = vrot.slane %v3830_v5, 6  ;;  %v6026_v5 = vld [vmem:[%s11793_s12 + $0x118] sm:$0xff] }
 0x69d   :  { %7217 = vmatprep.subr.bf16.mxu0 %v7216_v17  ;;  %v5904_v17 = vld [vmem:[%s11791_s10 + $0x688] sm:$0xff] }
 0x69e   :  { %v3916_v22 = vsel %vm2288_vm6, %v3911_v10, %v3915_v23  ;;  %v5921_v10 = vld [vmem:[%s11791_s10 + $0x710] sm:$0xff]  ;;  %v7376_v23 = vpack.c.bf16 %v6026_v5, %v6025_v34  ;;  %v5958_v34 = vld [vmem:[%s11791_s10 + $0x838] sm:$0xff]  ;;  %v11061_v5 = vld [vmem:[#allocation3 + $0x28] sm:$0xff] }
 0x6a0   :  { %7219 = vmatpush1.bf16.msra.mxu0 %v7218_v59  ;;  %v7246_v59 = vpack.c.bf16 %v5901_v46, %v5899_v58  ;;  %v5925_v58 = vld [vmem:[%s11791_s10 + $0x730] sm:$0xff]  ;;  %v5928_v46 = vld [vmem:[%s11791_s10 + $0x748] sm:$0xff] }
 0x6a1   :  { %7221 = vmatprep.subr.bf16.mxu0 %v7220_v21  ;;  %v7248_v21 = vpack.c.bf16 %v5906_v29, %v5904_v17  ;;  %v6027_v17 = vld [vmem:[%s11793_s12 + $0x120] sm:$0xff]  ;;  %v6028_v29 = vld [vmem:[%s11793_s12 + $0x128] sm:$0xff] }
 0x6a4   :  { %7223 = vmatpush1.bf16.msra.mxu0 %v7222_v41  ;;  %v5910_v41 = vld [vmem:[%s11791_s10 + $0x6b8] sm:$0xff] }
 0x6a5   :  { %7225 = vmatprep.subr.bf16.mxu0 %v7224_v48  ;;  %v4102_v48 = vsel %vm2419_vm8, %v4100_v56, %v4101_v39  ;;  %v7252_v11 = vpack.c.bf16 %v5910_v41, %v5908_v42  ;;  %v6029_v42 = vld [vmem:[%s11793_s12 + $0x130] sm:$0xff]  ;;  %v6030_v41 = vld [vmem:[%s11793_s12 + $0x138] sm:$0xff] }
 0x6a8   :  { %7227 = vmatpush1.bf16.msra.mxu0 %v7226_v45  ;;  %v7361_v45 = vpack.c.bf16 %v6016_v20, %v6015_v50  ;;  %v7276_v50 = vpack.c.bf16 %v5934_v18, %v5932_v27  ;;  %v5931_v20 = vld [vmem:[%s11791_s10 + $0x760] sm:$0xff]  ;;  %v4027_v27 = vld [vmem:[#allocation3 + $0x48] sm:$0x7f] }
 0x6a9   :  { %7229 = vmatprep.subr.bf16.mxu0 %v7228_v53  ;;  %v6018_v53 = vld [vmem:[%s11793_s12 + $0xd8] sm:$0xff] }
 0x6aa   :  { %7362 = vmatpush1.bf16.msra.mxu1 %v7361_v45  ;;  %v5938_v45 = vld [vmem:[%s11791_s10 + $0x798] sm:$0xff] }
 0x6ab   :  { %7363 = vmatprep.subr.bf16.mxu1 %v7731_v6 }
 0x6ac   :  { %7231 = vmatpush1.bf16.msra.mxu0 %v7230_v31  ;;  %v5914_v31 = vld [vmem:[%s11791_s10 + $0x6d8] sm:$0xff] }
 0x6ad   :  { %7233 = vmatprep.subr.bf16.mxu0 %v7232_v52  ;;  %v7364_v52 = vpack.c.bf16 %v6018_v53, %v6017_v62  ;;  %v7256_v28 = vpack.c.bf16 %v5914_v31, %v5912_v14  ;;  %v5933_v62 = vld [vmem:[%s11791_s10 + $0x770] sm:$0xff]  ;;  %v7382_v53 = vpack.c.bf16 %v6030_v41, %v6029_v42  ;;  %v5940_v31 = vld [vmem:[%s11791_s10 + $0x7a8] sm:$0xff] }
 0x6ae   :  { %v5937_v14 = vld [vmem:[%s11791_s10 + $0x790] sm:$0xff] }
 0x6af   :  { %3992 = vmatmul.mubr.f32.vlgmr.msra.gmra.mrb[50].mxu0 %v3903_v61  ;;  %7365 = vmatpush1.bf16.msra.mxu1 %v7364_v52  ;;  %v7258_v61 = vpack.c.bf16 %v5913_v9, %v5911_v37  ;;  %v5942_v52 = vld [vmem:[%s11791_s10 + $0x7b8] sm:$0xff]  ;;  %v5944_v37 = vld [vmem:[%s11791_s10 + $0x7c8] sm:$0xff]  ;;  %v5961_v42 = vld [vmem:[%s11791_s10 + $0x850] sm:$0xff] }
 0x6b0   :  { %3997 = vmatprep.mubr.f32.mxu0 %v3910_v12  ;;  %7235 = vmatpush1.bf16.msra.mxu0 %v7234_v57  ;;  %v5918_v57 = vld [vmem:[%s11791_s10 + $0x6f8] sm:$0xff]  ;;  %v5920_v12 = vld [vmem:[%s11791_s10 + $0x708] sm:$0xff]  ;;  %v11091_v41 = vld [vmem:[#allocation3 + $0x30] sm:$0xff] }
 0x6b1   :  { %7237 = vmatprep.subr.bf16.mxu0 %v7236_v15  ;;  %v7367_v15 = vpack.c.bf16 %v6020_v36, %v6019_v25  ;;  %7366 = vmatprep.subr.bf16.mxu1 %v7731_v6  ;;  %v7260_v38 = vpack.c.bf16 %v5918_v57, %v5916_v33  ;;  %v7264_v60 = vpack.c.bf16 %v5922_v63, %v5920_v12  ;;  %v5946_v9 = vld [vmem:[%s11791_s10 + $0x7d8] sm:$0xff]  ;;  %v5949_v12 = vld [vmem:[%s11791_s10 + $0x7f0] sm:$0xff]  ;;  %v5952_v63 = vld [vmem:[%s11791_s10 + $0x808] sm:$0xff] }
 0x6b2   :  { %v7282_v25 = vpack.c.bf16 %v5937_v14, %v5935_v19  ;;  %v7284_v36 = vpack.c.bf16 %v5942_v52, %v5940_v31  ;;  %v7288_v57 = vpack.c.bf16 %v5946_v9, %v5944_v37  ;;  %v5968_v14 = vld [vmem:[%s11791_s10 + $0x888] sm:$0xff]  ;;  %v5970_v31 = vld [vmem:[%s11791_s10 + $0x898] sm:$0xff] }
 0x6b3   :  { %3998 = vmatmul.mubr.f32.gmra.mrb[52].mxu0 %v3908_v43  ;;  %7368 = vmatpush1.bf16.msra.mxu1 %v7367_v15  ;;  %v5919_v43 = vld [vmem:[%s11791_s10 + $0x700] sm:$0xff]  ;;  %v5972_v9 = vld [vmem:[%s11791_s10 + $0x8a8] sm:$0xff] }
 0x6b4   :  { %4003 = vmatprep.mubr.f32.mxu0 %v3914_v26  ;;  %7239 = vmatpush1.bf16.msra.mxu0 %v7238_v4  ;;  %v7370_v4 = vpack.c.bf16 %v6022_v3, %v6021_v7  ;;  %v5943_v15 = vld [vmem:[%s11791_s10 + $0x7c0] sm:$0xff]  ;;  %v5945_v7 = vld [vmem:[%s11791_s10 + $0x7d0] sm:$0xff]  ;;  %v5948_v3 = vld [vmem:[%s11791_s10 + $0x7e8] sm:$0xff] }
 0x6b5   :  { %7241 = vmatprep.subr.bf16.mxu0 %v7240_v44  ;;  %7369 = vmatprep.subr.bf16.mxu1 %v7731_v6  ;;  %v6024_v44 = vld [vmem:[%s11793_s12 + $0x108] sm:$0xff] }
 0x6b6   :  { %v7373_v26 = vpack.c.bf16 %v6024_v44, %v6023_v16  ;;  %v4024_v16 = vld [vmem:[#allocation3] sm:$0x80]  ;;  %v7294_v44 = vpack.c.bf16 %v5949_v12, %v5947_v40 }
 0x6b7   :  { %4004 = vmatmul.mubr.f32.gmra.mrb[54].mxu0 %v3912_v0  ;;  %7371 = vmatpush1.bf16.msra.mxu1 %v7370_v4  ;;  %v5930_v0 = vld [vmem:[%s11791_s10 + $0x758] sm:$0xff] }
 0x6b8   :  { %4009 = vmatprep.mubr.f32.mxu0 %v3918_v30  ;;  %7243 = vmatpush1.bf16.msra.mxu0 %v7242_v13  ;;  %v7266_v13 = vpack.c.bf16 %v5921_v10, %v5919_v43  ;;  %v7272_v56 = vpack.c.bf16 %v5930_v0, %v5928_v46  ;;  %v5954_v4 = vld [vmem:[%s11791_s10 + $0x818] sm:$0xff]  ;;  %v5953_v43 = vld [vmem:[%s11791_s10 + $0x810] sm:$0xff]  ;;  %v4097_v10 = vrot.slane %v4024_v16, 7  ;;  %v5980_v16 = vld [vmem:[%s11791_s10 + $0x8e8] sm:$0xff] }
 0x6b9   :  { %7245 = vmatprep.subr.bf16.mxu0 %v7244_v47  ;;  %7372 = vmatprep.subr.bf16.mxu1 %v7731_v6  ;;  %v5923_v47 = vld [vmem:[%s11791_s10 + $0x720] sm:$0xff]  ;;  %v5957_v46 = vld [vmem:[%s11791_s10 + $0x830] sm:$0xff] }
 0x6ba   :  { %v7270_v30 = vpack.c.bf16 %v5925_v58, %v5923_v47  ;;  %v5955_v58 = vld [vmem:[%s11791_s10 + $0x820] sm:$0xff]  ;;  %v4099_v0 = vsel %vm2419_vm8, %v4097_v10, %v4098_v2  ;;  %v5981_v10 = vld [vmem:[%s11791_s10 + $0x8f0] sm:$0xff] }
 0x6bb   :  { %4010 = vmatmul.mubr.f32.gmra.mrb[56].mxu0 %v3916_v22  ;;  %7374 = vmatpush1.bf16.msra.mxu1 %v7373_v26  ;;  %v7379_v22 = vpack.c.bf16 %v6028_v29, %v6027_v17  ;;  %v5956_v26 = vld [vmem:[%s11791_s10 + $0x828] sm:$0xff] }
 0x6bc   :  { %7247 = vmatpush1.bf16.msra.mxu0 %v7246_v59  ;;  %4187 = vmatprep.mubr.f32.mxu0 %v4102_v48  ;;  %v5927_v59 = vld [vmem:[%s11791_s10 + $0x740] sm:$0xff]  ;;  %v7300_v47 = vpack.c.bf16 %v5958_v34, %v5956_v26  ;;  %v5960_v29 = vld [vmem:[%s11791_s10 + $0x848] sm:$0xff]  ;;  %v5986_v26 = vld [vmem:[%s11791_s10 + $0x918] sm:$0xff] }
 0x6bd   :  { %7249 = vmatprep.subr.bf16.mxu0 %v7248_v21  ;;  %7375 = vmatprep.subr.bf16.mxu1 %v7731_v6  ;;  %v5929_v21 = vld [vmem:[%s11791_s10 + $0x750] sm:$0xff] }
 0x6be   :  { %v7274_v48 = vpack.c.bf16 %v5929_v21, %v5927_v59  ;;  %v4109_v59 = vrot.slane %v10385_v8, 7  ;;  %v7302_v21 = vpack.c.bf16 %v5957_v46, %v5955_v58  ;;  %v4107_v8 = vrot.slane %v11091_v41, 7  ;;  %v5988_v58 = vld [vmem:[%s11791_s10 + $0x928] sm:$0xff]  ;;  %v5990_v46 = vld [vmem:[%s11791_s10 + $0x938] sm:$0xff] }
 0x6bf   :  { %7377 = vmatpush1.bf16.msra.mxu1 %v7376_v23  ;;  %v11071_v23 = vld [vmem:[#allocation3 + $0x20] sm:$0xff] }
 0x6c0   :  { %7251 = vmatpush1.bf16.msra.mxu0 %v7250_v51  ;;  %7378 = vmatprep.subr.bf16.mxu1 %v7731_v6  ;;  %v5936_v51 = vld [vmem:[%s11791_s10 + $0x788] sm:$0xff]  ;;  %v4103_v17 = vrot.slane %v11071_v23, 7 }
 0x6c1   :  { %7253 = vmatprep.subr.bf16.mxu0 %v7252_v11  ;;  %v7278_v11 = vpack.c.bf16 %v5933_v62, %v5931_v20  ;;  %v7280_v24 = vpack.c.bf16 %v5938_v45, %v5936_v51  ;;  %v4113_v20 = vrot.slane %v4027_v27, 7  ;;  %v4026_v62 = vld [vmem:[#allocation3 + $0x40] sm:$0x7f] }
 0x6c2   :  { %v4104_v35 = vsel %vm2419_vm8, %v4098_v2, %v4103_v17  ;;  %v4111_v19 = vrot.slane %v4026_v62, 7  ;;  %v5984_v2 = vld [vmem:[%s11791_s10 + $0x908] sm:$0xff]  ;;  %v6002_v62 = vld [vmem:[%s11791_s10 + $0x998] sm:$0xff] }
 0x6c3   :  { %7380 = vmatpush1.bf16.msra.mxu1 %v7379_v22  ;;  %v5959_v22 = vld [vmem:[%s11791_s10 + $0x840] sm:$0xff]  ;;  %v4114_v52 = vsel %vm2419_vm8, %v4109_v59, %v4113_v20  ;;  %v6000_v20 = vld [vmem:[%s11791_s10 + $0x988] sm:$0xff] }
 0x6c4   :  { %7255 = vmatpush1.bf16.msra.mxu0 %v7254_v54  ;;  %7381 = vmatprep.subr.bf16.mxu1 %v7731_v6  ;;  %v5939_v54 = vld [vmem:[%s11791_s10 + $0x7a0] sm:$0xff]  ;;  %v7306_v51 = vpack.c.bf16 %v5961_v42, %v5959_v22  ;;  %v4112_v37 = vsel %vm2419_vm8, %v4107_v8, %v4111_v19  ;;  %v5993_v22 = vld [vmem:[%s11791_s10 + $0x950] sm:$0xff]  ;;  %v5996_v42 = vld [vmem:[%s11791_s10 + $0x968] sm:$0xff] }
 0x6c5   :  { %7257 = vmatprep.subr.bf16.mxu0 %v7256_v28  ;;  %v5941_v28 = vld [vmem:[%s11791_s10 + $0x7b0] sm:$0xff]  ;;  %v6006_v19 = vld [vmem:[%s11791_s10 + $0x9b8] sm:$0xff] }
 0x6c6   :  { %v7286_v33 = vpack.c.bf16 %v5941_v28, %v5939_v54  ;;  %v5967_v54 = vld [vmem:[%s11791_s10 + $0x880] sm:$0xff]  ;;  %v5969_v28 = vld [vmem:[%s11791_s10 + $0x890] sm:$0xff] }
 0x6c7   :  { %7383 = vmatpush1.bf16.msra.mxu1 %v7382_v53  ;;  %v5963_v53 = vld [vmem:[%s11791_s10 + $0x860] sm:$0xff] }
 0x6c8   :  { %7259 = vmatpush1.bf16.msra.mxu0 %v7258_v61  ;;  %7384 = vmatprep.subr.bf16.mxu1 %v7731_v6  ;;  %v5950_v61 = vld [vmem:[%s11791_s10 + $0x7f8] sm:$0xff] }
 0x6c9   :  { %7261 = vmatprep.subr.bf16.mxu0 %v7260_v38  ;;  %v7290_v38 = vpack.c.bf16 %v5945_v7, %v5943_v15  ;;  %v7292_v49 = vpack.c.bf16 %v5950_v61, %v5948_v3  ;;  %v7314_v15 = vpack.c.bf16 %v5969_v28, %v5967_v54  ;;  %v5971_v3 = vld [vmem:[%s11791_s10 + $0x8a0] sm:$0xff]  ;;  %v5973_v61 = vld [vmem:[%s11791_s10 + $0x8b0] sm:$0xff]  ;;  %v6010_v54 = vld [vmem:[%s11791_s10 + $0x9d8] sm:$0xff] }
 0x6ca   :  { %v7318_v40 = vpack.c.bf16 %v5973_v61, %v5971_v3  ;;  %v6011_v61 = vld [vmem:[%s11791_s10 + $0x9e0] sm:$0xff] }
 0x6cc   :  { %7263 = vmatpush1.bf16.msra.mxu0 %v7262_v1  ;;  %v7296_v1 = vpack.c.bf16 %v5954_v4, %v5952_v63  ;;  %v5975_v63 = vld [vmem:[%s11791_s10 + $0x8c0] sm:$0xff]  ;;  %v5977_v4 = vld [vmem:[%s11791_s10 + $0x8d0] sm:$0xff] }
 0x6cd   :  { %7265 = vmatprep.subr.bf16.mxu0 %v7264_v60  ;;  %v5951_v60 = vld [vmem:[%s11791_s10 + $0x800] sm:$0xff] }
 0x6d0   :  { %7267 = vmatpush1.bf16.msra.mxu0 %v7266_v13  ;;  %v4105_v13 = vrot.slane %v11061_v5, 7 }
 0x6d1   :  { %7269 = vmatprep.subr.bf16.mxu0 %v7268_v32  ;;  %v7298_v32 = vpack.c.bf16 %v5953_v43, %v5951_v60  ;;  %v5979_v43 = vld [vmem:[%s11791_s10 + $0x8e0] sm:$0xff] }
 0x6d2   :  { %v7326_v34 = vpack.c.bf16 %v5981_v10, %v5979_v43  ;;  %v6038_v43 = vld [vmem:[%s11793_s12 + $0x178] sm:$0xff] }
 0x6d4   :  { %7271 = vmatpush1.bf16.msra.mxu0 %v7270_v30  ;;  %v5962_v30 = vld [vmem:[%s11791_s10 + $0x858] sm:$0xff] }
 0x6d5   :  { %7273 = vmatprep.subr.bf16.mxu0 %v7272_v56  ;;  %v4106_v56 = vsel %vm2419_vm8, %v4101_v39, %v4105_v13  ;;  %v7304_v18 = vpack.c.bf16 %v5962_v30, %v5960_v29  ;;  %v5964_v39 = vld [vmem:[%s11791_s10 + $0x868] sm:$0xff]  ;;  %v5987_v29 = vld [vmem:[%s11791_s10 + $0x920] sm:$0xff]  ;;  %v5989_v30 = vld [vmem:[%s11791_s10 + $0x930] sm:$0xff] }
 0x6d8   :  { %7275 = vmatpush1.bf16.msra.mxu0 %v7274_v48  ;;  %v5966_v48 = vld [vmem:[%s11791_s10 + $0x878] sm:$0xff] }
 0x6d9   :  { %7277 = vmatprep.subr.bf16.mxu0 %v7276_v50  ;;  %v4110_v50 = vsel %vm2419_vm8, %v4105_v13, %v4109_v59  ;;  %v7308_v45 = vpack.c.bf16 %v5966_v48, %v5964_v39  ;;  %v7328_v13 = vpack.c.bf16 %v5986_v26, %v5984_v2  ;;  %v5994_v59 = vld [vmem:[%s11791_s10 + $0x958] sm:$0xff]  ;;  %v5995_v48 = vld [vmem:[%s11791_s10 + $0x960] sm:$0xff]  ;;  %v4385_v26 = vld [vmem:[%s11792_s11 + $0x8] sm:$0xff] }
 0x6da   :  { %v4384_v2 = vld [vmem:[%s11792_s11] sm:$0xff] }
 0x6dc   :  { %7279 = vmatpush1.bf16.msra.mxu0 %v7278_v11  ;;  %v5965_v11 = vld [vmem:[%s11791_s10 + $0x870] sm:$0xff] }
 0x6dd   :  { %7281 = vmatprep.subr.bf16.mxu0 %v7280_v24  ;;  %v4108_v24 = vsel %vm2419_vm8, %v4103_v17, %v4107_v8  ;;  %v7332_v17 = vpack.c.bf16 %v5990_v46, %v5988_v58  ;;  %v4386_v58 = vld [vmem:[%s11792_s11 + $0x10] sm:$0xff] }
 0x6e0   :  { %7283 = vmatpush1.bf16.msra.mxu0 %v7282_v25  ;;  %v7310_v25 = vpack.c.bf16 %v5965_v11, %v5963_v53  ;;  %v5999_v53 = vld [vmem:[%s11791_s10 + $0x980] sm:$0xff]  ;;  %v6001_v11 = vld [vmem:[%s11791_s10 + $0x990] sm:$0xff] }
 0x6e1   :  { %7285 = vmatprep.subr.bf16.mxu0 %v7284_v36  ;;  %v7312_v36 = vpack.c.bf16 %v5970_v31, %v5968_v14  ;;  %v7346_v14 = vpack.c.bf16 %v6001_v11, %v5999_v53 }
 0x6e4   :  { %7287 = vmatpush1.bf16.msra.mxu0 %v7286_v33  ;;  %v5974_v33 = vld [vmem:[%s11791_s10 + $0x8b8] sm:$0xff] }
 0x6e5   :  { %7289 = vmatprep.subr.bf16.mxu0 %v7288_v57  ;;  %v7701_v57 = vld [vmem:[#allocation3 + $0x18] sm:$0xff]  ;;  %v7316_v7 = vpack.c.bf16 %v5974_v33, %v5972_v9  ;;  %v6007_v9 = vld [vmem:[%s11791_s10 + $0x9c0] sm:$0xff]  ;;  %v6009_v33 = vld [vmem:[%s11791_s10 + $0x9d0] sm:$0xff] }
 0x6e8   :  { %7291 = vmatpush1.bf16.msra.mxu0 %v7290_v38  ;;  %v5976_v38 = vld [vmem:[%s11791_s10 + $0x8c8] sm:$0xff] }
 0x6e9   :  { %7293 = vmatprep.subr.bf16.mxu0 %v7292_v49  ;;  %v5978_v49 = vld [vmem:[%s11791_s10 + $0x8d8] sm:$0xff] }
 0x6ea   :  { %v7320_v12 = vpack.c.bf16 %v5978_v49, %v5976_v38  ;;  %v6013_v38 = vld [vmem:[%s11791_s10 + $0x9f0] sm:$0xff] }
 0x6eb   :  { %v7358_v49 = vpack.c.bf16 %v6013_v38, %v6011_v61 }
 0x6ec   :  { %7295 = vmatpush1.bf16.msra.mxu0 %v7294_v44  ;;  %v5982_v44 = vld [vmem:[%s11791_s10 + $0x8f8] sm:$0xff] }
 0x6ed   :  { %7297 = vmatprep.subr.bf16.mxu0 %v7296_v1  ;;  %v7322_v1 = vpack.c.bf16 %v5977_v4, %v5975_v63  ;;  %v7324_v60 = vpack.c.bf16 %v5982_v44, %v5980_v16  ;;  %v6031_v63 = vld [vmem:[%s11793_s12 + $0x140] sm:$0xff]  ;;  %v6032_v4 = vld [vmem:[%s11793_s12 + $0x148] sm:$0xff] }
 0x6ee   :  { %v6035_v16 = vld [vmem:[%s11793_s12 + $0x160] sm:$0xff]  ;;  %v6036_v44 = vld [vmem:[%s11793_s12 + $0x168] sm:$0xff] }
 0x6ef   :  { %4188 = vmatmul.mubr.f32.vlgmr.msra.gmra.mrb[50].mxu0 %v4099_v0 }
 0x6f0   :  { %4193 = vmatprep.mubr.f32.mxu0 %v4106_v56  ;;  %7299 = vmatpush1.bf16.msra.mxu0 %v7298_v32  ;;  %v5983_v32 = vld [vmem:[%s11791_s10 + $0x900] sm:$0xff]  ;;  %v5992_v56 = vld [vmem:[%s11791_s10 + $0x948] sm:$0xff] }
 0x6f1   :  { %7301 = vmatprep.subr.bf16.mxu0 %v7300_v47  ;;  %v5985_v47 = vld [vmem:[%s11791_s10 + $0x910] sm:$0xff]  ;;  %v7336_v27 = vpack.c.bf16 %v5994_v59, %v5992_v56 }
 0x6f2   :  { %v7330_v0 = vpack.c.bf16 %v5985_v47, %v5983_v32 }
 0x6f3   :  { %4194 = vmatmul.mubr.f32.gmra.mrb[52].mxu0 %v4104_v35  ;;  %v5998_v35 = vld [vmem:[%s11791_s10 + $0x978] sm:$0xff] }
 0x6f4   :  { %4199 = vmatprep.mubr.f32.mxu0 %v4110_v50  ;;  %7303 = vmatpush1.bf16.msra.mxu0 %v7302_v21  ;;  %v7334_v21 = vpack.c.bf16 %v5989_v30, %v5987_v29  ;;  %v7340_v39 = vpack.c.bf16 %v5998_v35, %v5996_v42  ;;  %v5997_v50 = vld [vmem:[%s11791_s10 + $0x970] sm:$0xff] }
 0x6f5   :  { %7305 = vmatprep.subr.bf16.mxu0 %v7304_v18  ;;  %v5991_v18 = vld [vmem:[%s11791_s10 + $0x940] sm:$0xff] }
 0x6f6   :  { %v7338_v8 = vpack.c.bf16 %v5993_v22, %v5991_v18  ;;  %v4389_v18 = vld [vmem:[%s11792_s11 + $0x28] sm:$0xff] }
 0x6f7   :  { %4200 = vmatmul.mubr.f32.gmra.mrb[54].mxu0 %v4108_v24  ;;  %v6004_v24 = vld [vmem:[%s11791_s10 + $0x9a8] sm:$0xff] }
 0x6f8   :  { %4205 = vmatprep.mubr.f32.mxu0 %v4114_v52  ;;  %7307 = vmatpush1.bf16.msra.mxu0 %v7306_v51  ;;  %v7342_v51 = vpack.c.bf16 %v5997_v50, %v5995_v48  ;;  %v7348_v31 = vpack.c.bf16 %v6006_v19, %v6004_v24  ;;  %v6003_v52 = vld [vmem:[%s11791_s10 + $0x9a0] sm:$0xff]  ;;  %v4390_v50 = vld [vmem:[%s11792_s11 + $0x30] sm:$0xff]  ;;  %v4427_v19 = vld [vmem:[%s11793_s12 + $0x8] sm:$0xff] }
 0x6f9   :  { %7309 = vmatprep.subr.bf16.mxu0 %v7308_v45  ;;  %v7344_v45 = vpack.c.bf16 %v6002_v62, %v6000_v20  ;;  %v4450_v20 = vld [vmem:[#allocation4] sm:$0xe0]  ;;  %v4426_v24 = vld [vmem:[%s11793_s12] sm:$0xff] }
 0x6fb   :  { %4206 = vmatmul.mubr.f32.gmra.mrb[56].mxu0 %v4112_v37 }
 0x6fc   :  { %7311 = vmatpush1.bf16.msra.mxu0 %v7310_v25  ;;  %4351 = vmatprep.mubr.f32.mxu0 %v7701_v57  ;;  %v6005_v25 = vld [vmem:[%s11791_s10 + $0x9b0] sm:$0xff]  ;;  %v6012_v57 = vld [vmem:[%s11791_s10 + $0x9e8] sm:$0xff] }
 0x6fd   :  { %7313 = vmatprep.subr.bf16.mxu0 %v7312_v36  ;;  %v6008_v36 = vld [vmem:[%s11791_s10 + $0x9c8] sm:$0xff]  ;;  %v7350_v28 = vpack.c.bf16 %v6005_v25, %v6003_v52  ;;  %v4489_v25 = vrot.slane %v4450_v20, 5  ;;  %v4442_v20 = vld [vmem:[%s11793_s12 + $0x80] sm:$0xff] }
 0x6fe   :  { %v7352_v37 = vpack.c.bf16 %v6010_v54, %v6008_v36 }
 0x700   :  { %7315 = vmatpush1.bf16.msra.mxu0 %v7314_v15  ;;  %v6014_v15 = vld [vmem:[%s11791_s10 + $0x9f8] sm:$0xff] }
 0x701   :  { %7317 = vmatprep.subr.bf16.mxu0 %v7316_v7  ;;  %v7354_v7 = vpack.c.bf16 %v6009_v33, %v6007_v9  ;;  %v7356_v3 = vpack.c.bf16 %v6014_v15, %v6012_v57  ;;  %v7397_v9 = vpack.c.bf16 %v4427_v19, %v4426_v24  ;;  %v4428_v15 = vld [vmem:[%s11793_s12 + $0x10] sm:$0xff]  ;;  %v4446_v19 = vld [vmem:[%s11793_s12 + $0xa0] sm:$0xff] }
 0x704   :  { %7319 = vmatpush1.bf16.msra.mxu0 %v7318_v40  ;;  %v7702_v40 = vld [vmem:[#allocation3 + $0x38] sm:$0xff] }
 0x705   :  { %7321 = vmatprep.subr.bf16.mxu0 %v7320_v12  ;;  %v7703_v12 = vld [vmem:[#allocation3] sm:$0xff] }
 0x708   :  { %7323 = vmatpush1.bf16.msra.mxu0 %v7322_v1  ;;  %v7391_v1 = vpack.c.bf16 %v6036_v44, %v6035_v16  ;;  %v4417_v44 = vld [vmem:[#allocation4 + $0x8] sm:$0xf0] }
 0x709   :  { %7325 = vmatprep.subr.bf16.mxu0 %v7324_v60  ;;  %v6037_v60 = vld [vmem:[%s11793_s12 + $0x170] sm:$0xff] }
 0x70a   :  { %v7394_v10 = vpack.c.bf16 %v6038_v43, %v6037_v60  ;;  %v4432_v43 = vld [vmem:[%s11793_s12 + $0x30] sm:$0xff] }
 0x70c   :  { %7327 = vmatpush1.bf16.msra.mxu0 %v7326_v34 }
 0x70d   :  { %7329 = vmatprep.subr.bf16.mxu0 %v7328_v13 }
 0x710   :  { %7331 = vmatpush1.bf16.msra.mxu0 %v7330_v0  ;;  %v4387_v0 = vld [vmem:[%s11792_s11 + $0x18] sm:$0xff] }
 0x711   :  { %7333 = vmatprep.subr.bf16.mxu0 %v7332_v17 }
 0x714   :  { %7335 = vmatpush1.bf16.msra.mxu0 %v7334_v21  ;;  %v4388_v21 = vld [vmem:[%s11792_s11 + $0x20] sm:$0xff] }
 0x715   :  { %7337 = vmatprep.subr.bf16.mxu0 %v7336_v27 }
 0x718   :  { %7339 = vmatpush1.bf16.msra.mxu0 %v7338_v8 }
 0x719   :  { %7341 = vmatprep.subr.bf16.mxu0 %v7340_v39  ;;  %v4451_v39 = vld [vmem:[#allocation4 + $0x8] sm:$0xe0] }
 0x71a   :  { %v4492_v11 = vrot.slane %v4451_v39, 5  ;;  %v4440_v39 = vld [vmem:[%s11793_s12 + $0x70] sm:$0xff] }
 0x71c   :  { %7343 = vmatpush1.bf16.msra.mxu0 %v7342_v51  ;;  %v4391_v51 = vld [vmem:[%s11792_s11 + $0x38] sm:$0xff] }
 0x71d   :  { %7345 = vmatprep.subr.bf16.mxu0 %v7344_v45 }
 0x720   :  { %7347 = vmatpush1.bf16.msra.mxu0 %v7346_v14 }
 0x721   :  { %7349 = vmatprep.subr.bf16.mxu0 %v7348_v31 }
 0x724   :  { %7351 = vmatpush1.bf16.msra.mxu0 %v7350_v28 }
 0x725   :  { %7353 = vmatprep.subr.bf16.mxu0 %v7352_v37 }
 0x728   :  { %7355 = vmatpush1.bf16.msra.mxu0 %v7354_v7  ;;  %v4429_v7 = vld [vmem:[%s11793_s12 + $0x18] sm:$0xff] }
 0x729   :  { %7357 = vmatprep.subr.bf16.mxu0 %v7356_v3 }
 0x72c   :  { %7359 = vmatpush1.bf16.msra.mxu0 %v7358_v49 }
 0x72f   :  { %4352 = vmatmul.mubr.f32.vlgmr.msra.gmra.mrb[50].mxu0 %v11052_v55  ;;  %v7385_v55 = vpack.c.bf16 %v6032_v4, %v6031_v63  ;;  %v4430_v63 = vld [vmem:[%s11793_s12 + $0x20] sm:$0xff]  ;;  %v4431_v4 = vld [vmem:[%s11793_s12 + $0x28] sm:$0xff] }
 0x730   :  { %4357 = vmatprep.mubr.f32.mxu0 %v11061_v5  ;;  %v6033_v5 = vld [vmem:[%s11793_s12 + $0x150] sm:$0xff]  ;;  %v7403_v16 = vpack.c.bf16 %v4431_v4, %v4430_v63 }
 0x731   :  { %7386 = vmatpush1.bf16.msra.mxu1 %v7385_v55 }
 0x732   :  { %7387 = vmatprep.subr.bf16.mxu1 %v7731_v6 }
 0x733   :  { %4358 = vmatmul.mubr.f32.gmra.mrb[52].mxu0 %v11071_v23  ;;  %v6034_v23 = vld [vmem:[%s11793_s12 + $0x158] sm:$0xff] }
 0x734   :  { %4363 = vmatprep.mubr.f32.mxu0 %v7702_v40  ;;  %v7400_v40 = vpack.c.bf16 %v4429_v7, %v4428_v15 }
 0x737   :  { %4364 = vmatmul.mubr.f32.gmra.mrb[54].mxu0 %v11091_v41  ;;  %v7388_v41 = vpack.c.bf16 %v6034_v23, %v6033_v5 }
 0x738   :  { %4369 = vmatprep.mubr.f32.mxu0 %v7703_v12 }
 0x739   :  { %7389 = vmatpush1.bf16.msra.mxu1 %v7388_v41 }
 0x73a   :  { %7390 = vmatprep.subr.bf16.mxu1 %v7731_v6 }
 0x73b   :  { %4370 = vmatmul.mubr.f32.gmra.mrb[56].mxu0 %v7703_v12 }
 0x73d   :  { %7392 = vmatpush1.bf16.msra.mxu1 %v7391_v1 }
 0x73e   :  { %7393 = vmatprep.subr.bf16.mxu1 %v7731_v6 }
 0x741   :  { %7395 = vmatpush1.bf16.msra.mxu1 %v7394_v10  ;;  %v4433_v10 = vld [vmem:[%s11793_s12 + $0x38] sm:$0xff] }
 0x742   :  { %7396 = vmatprep.subr.bf16.mxu1 %v7731_v6 }
 0x802   :  { %v4353_v34 = vpop.f32.mrb[50].mxu0 }
 0x803   :  { %v4392_v13 = vadd.f32 %v4384_v2, %v4353_v34  ;;  %v4355_v32 = vpop.f32.mrb[51].mxu0 }
 0x804   :  { %v4393_v47 = vadd.f32 %v4385_v26, %v4355_v32  ;;  %v4611_v32 = vrot.slane %v4417_v44, 4  ;;  %v6052_v44 = vld [vmem:[%s11793_s12 + $0x1a8] sm:$0xff] }
 0x805   :  { %v11295_v46 = vmax.f32 %v4392_v13, 0.0 }
 0x806   :  { %v4401_v17 = vmax.f32 %v4393_v47, 0.0  ;;  %v4359_v29 = vpop.f32.mrb[52].mxu0 }
 0x807   :  { %v4394_v30 = vadd.f32 %v4386_v58, %v4359_v29  ;;  %v4361_v56 = vpop.f32.mrb[53].mxu0  ;;  %v4490_v36 = vrot.slane %v11295_v46, 5  ;;  %v7406_v58 = vpack.c.bf16 %v4433_v10, %v4432_v43  ;;  %v4435_v29 = vld [vmem:[%s11793_s12 + $0x48] sm:$0xff]  ;;  %v4609_v7 = vrot.slane %v11295_v46, 4 }
 0x808   :  { %4409 = vst.msk [vmem:[#allocation4 + $0x18] sm:$0xff] %vm66_vm1, %v4401_v17  ;;  %v4395_v59 = vadd.f32 %v4387_v0, %v4361_v56  ;;  %v4434_v17 = vld [vmem:[%s11793_s12 + $0x40] sm:$0xff] }
 0x809   :  { %v11304_v27 = vmax.f32 %v4394_v30, 0.0  ;;  %v4491_v3 = vsel %vm2157_vm7, %v4489_v25, %v4490_v36 }
 0x80a   :  { %v4403_v22 = vmax.f32 %v4395_v59, 0.0  ;;  %v4365_v42 = vpop.f32.mrb[54].mxu0  ;;  %v7409_v59 = vpack.c.bf16 %v4435_v29, %v4434_v17 }
 0x80b   :  { %v4396_v35 = vadd.f32 %v4388_v21, %v4365_v42  ;;  %v4367_v8 = vpop.f32.mrb[55].mxu0  ;;  %v4495_v38 = vrot.slane %v11304_v27, 5  ;;  %v4436_v21 = vld [vmem:[%s11793_s12 + $0x50] sm:$0xff]  ;;  %v4438_v42 = vld [vmem:[%s11793_s12 + $0x60] sm:$0xff]  ;;  %v4614_v63 = vrot.slane %v11304_v27, 4 }
 0x80c   :  { %4411 = vst.msk [vmem:[#allocation4 + $0x28] sm:$0xff] %vm66_vm1, %v4403_v22  ;;  %v4397_v48 = vadd.f32 %v4389_v18, %v4367_v8  ;;  %v4437_v18 = vld [vmem:[%s11793_s12 + $0x58] sm:$0xff] }
 0x80d   :  { %v11313_v62 = vmax.f32 %v4396_v35, 0.0  ;;  %v4496_v55 = vsel %vm2157_vm7, %v4490_v36, %v4495_v38  ;;  %v7412_v22 = vpack.c.bf16 %v4437_v18, %v4436_v21  ;;  %v4439_v35 = vld [vmem:[%s11793_s12 + $0x68] sm:$0xff]  ;;  %v4448_v36 = vld [vmem:[%s11793_s12 + $0xb0] sm:$0xff] }
 0x80e   :  { %v4405_v45 = vmax.f32 %v4397_v48, 0.0  ;;  %v4371_v53 = vpop.f32.mrb[56].mxu0  ;;  %v7415_v8 = vpack.c.bf16 %v4439_v35, %v4438_v42  ;;  %v4441_v48 = vld [vmem:[%s11793_s12 + $0x78] sm:$0xff]  ;;  %v6057_v42 = vld [vmem:[%s11793_s12 + $0x1d0] sm:$0xff] }
 0x80f   :  { %v11324_v14 = vadd.f32 %v4390_v50, %v4371_v53  ;;  %v4373_v31 = vpop.f32.mrb[57].mxu0  ;;  %v11326_v52 = vld [vmem:[#allocation4 + $0x18] sm:$0xff]  ;;  %v4499_v23 = vrot.slane %v11313_v62, 5  ;;  %v7418_v50 = vpack.c.bf16 %v4441_v48, %v4440_v39  ;;  %v4444_v53 = vld [vmem:[%s11793_s12 + $0x90] sm:$0xff]  ;;  %v6058_v35 = vld [vmem:[%s11793_s12 + $0x1d8] sm:$0xff] }
 0x810   :  { %4413 = vst.msk [vmem:[#allocation4 + $0x38] sm:$0xff] %vm66_vm1, %v4405_v45  ;;  %v4399_v54 = vadd.f32 %v4391_v51, %v4373_v31  ;;  %v4493_v28 = vrot.slane %v11326_v52, 5  ;;  %v4612_v47 = vrot.slane %v11326_v52, 4  ;;  %v4443_v51 = vld [vmem:[%s11793_s12 + $0x88] sm:$0xff]  ;;  %v4760_v29 = vrot.slane %v11326_v52, 6  ;;  %v6059_v39 = vld [vmem:[%s11793_s12 + $0x1e0] sm:$0xff] }
 0x811   :  { %v4406_v37 = vmax.f32 %v11324_v14, 0.0  ;;  %v4500_v2 = vsel %vm2157_vm7, %v4495_v38, %v4499_v23  ;;  %v7421_v45 = vpack.c.bf16 %v4443_v51, %v4442_v20  ;;  %v4447_v31 = vld [vmem:[%s11793_s12 + $0xa8] sm:$0xff]  ;;  %v6061_v20 = vld [vmem:[%s11793_s12 + $0x1f0] sm:$0xff]  ;;  %v6062_v51 = vld [vmem:[%s11793_s12 + $0x1f8] sm:$0xff] }
 0x812   :  { %v4407_v33 = vmax.f32 %v4399_v54, 0.0  ;;  %v4494_v57 = vsel %vm2157_vm7, %v4492_v11, %v4493_v28  ;;  %v4613_v56 = vsel %vm1352_vm5, %v4611_v32, %v4612_v47  ;;  %v4445_v11 = vld [vmem:[%s11793_s12 + $0x98] sm:$0xff]  ;;  %v7427_v25 = vpack.c.bf16 %v4447_v31, %v4446_v19  ;;  %v6060_v48 = vld [vmem:[%s11793_s12 + $0x1e8] sm:$0xff]  ;;  %v6065_v19 = vld [vmem:[%s11793_s12 + $0x210] sm:$0xff] }
 0x813   :  { %4414 = vst [vmem:[#allocation4 + $0x40] sm:$0xff] %v4406_v37  ;;  %6039 = vmatprep.mubr.msk.f32.mxu1 %vm66_vm1, %v4494_v57  ;;  %v11343_v61 = vld [vmem:[#allocation4 + $0x28] sm:$0xff]  ;;  %v7424_v24 = vpack.c.bf16 %v4445_v11, %v4444_v53  ;;  %v6048_v57 = vld [vmem:[%s11793_s12 + $0x188] sm:$0xff]  ;;  %v6063_v53 = vld [vmem:[%s11793_s12 + $0x200] sm:$0xff] }
 0x814   :  { %4415 = vst.msk [vmem:[#allocation4 + $0x48] sm:$0xff] %vm66_vm1, %v4407_v33  ;;  %4584 = vmatmul.mubr.f32.vlgmr.msra.gmra.mrb[18].mxu1 %v4491_v3  ;;  %v4497_v49 = vrot.slane %v11343_v61, 5  ;;  %v4449_v54 = vld [vmem:[%s11793_s12 + $0xb8] sm:$0xff]  ;;  %v6047_v33 = vld [vmem:[%s11793_s12 + $0x180] sm:$0xff]  ;;  %v4616_v3 = vrot.slane %v11343_v61, 4  ;;  %v6064_v11 = vld [vmem:[%s11793_s12 + $0x208] sm:$0xff] }
 0x815   :  { %7398 = vmatpush1.bf16.msra.mxu1 %v7397_v9  ;;  %v7430_v9 = vpack.c.bf16 %v4449_v54, %v4448_v36  ;;  %v7433_v38 = vpack.c.bf16 %v6048_v57, %v6047_v33  ;;  %v6054_v32 = vld [vmem:[%s11793_s12 + $0x1b8] sm:$0xff]  ;;  %v6067_v36 = vld [vmem:[%s11793_s12 + $0x220] sm:$0xff]  ;;  %v6068_v54 = vld [vmem:[%s11793_s12 + $0x228] sm:$0xff] }
 0x816   :  { %v4498_v12 = vsel %vm2157_vm7, %v4493_v28, %v4497_v49  ;;  %7399 = vmatprep.subr.bf16.mxu1 %v7731_v6  ;;  %v4416_v28 = vld [vmem:[#allocation4] sm:$0xf0]  ;;  %v4617_v4 = vsel %vm1352_vm5, %v4612_v47, %v4616_v3  ;;  %v6066_v31 = vld [vmem:[%s11793_s12 + $0x218] sm:$0xff] }
 0x817   :  { %6040 = vmatprep.mubr.msk.f32.mxu1 %vm66_vm1, %v4498_v12  ;;  %v11358_v5 = vld [vmem:[#allocation4 + $0x38] sm:$0xff]  ;;  %v4608_v15 = vrot.slane %v4416_v28, 4  ;;  %v7463_v28 = vpack.c.bf16 %v6068_v54, %v6067_v36  ;;  %v6070_v33 = vld [vmem:[%s11793_s12 + $0x238] sm:$0xff]  ;;  %v4723_v57 = vld [vmem:[#allocation4] sm:$0xc0] }
 0x818   :  { %4589 = vmatmul.mubr.f32.gmra.mrb[20].mxu1 %v4496_v55  ;;  %v4501_v41 = vrot.slane %v11358_v5, 5  ;;  %v4620_v55 = vrot.slane %v11358_v5, 4  ;;  %v6093_v36 = vld [vmem:[%s11793_s12 + $0x2d0] sm:$0xff]  ;;  %v6094_v54 = vld [vmem:[%s11793_s12 + $0x2d8] sm:$0xff] }
 0x819   :  { %7401 = vmatpush1.bf16.msra.mxu1 %v7400_v40  ;;  %v6050_v40 = vld [vmem:[%s11793_s12 + $0x198] sm:$0xff]  ;;  %v4610_v12 = vsel %vm1352_vm5, %v4608_v15, %v4609_v7 }
 0x81a   :  { %v4502_v1 = vsel %vm2157_vm7, %v4497_v49, %v4501_v41  ;;  %7402 = vmatprep.subr.bf16.mxu1 %v7731_v6  ;;  %v4452_v60 = vld [vmem:[#allocation4 + $0x40] sm:$0x1f]  ;;  %v4621_v43 = vsel %vm1352_vm5, %v4616_v3, %v4620_v55  ;;  %v6076_v3 = vld [vmem:[%s11793_s12 + $0x248] sm:$0xff] }
 0x81b   :  { %6041 = vmatprep.mubr.msk.f32.mxu1 %vm66_vm1, %v4502_v1  ;;  %v4453_v26 = vld [vmem:[#allocation4 + $0x48] sm:$0x1f]  ;;  %v4503_v34 = vrot.slane %v4452_v60, 5  ;;  %v6049_v49 = vld [vmem:[%s11793_s12 + $0x190] sm:$0xff]  ;;  %v4615_v1 = vsel %vm1352_vm5, %v4609_v7, %v4614_v63  ;;  %v4618_v60 = vrot.slane %v11313_v62, 4  ;;  %v6075_v7 = vld [vmem:[%s11793_s12 + $0x240] sm:$0xff] }
 0x81c   :  { %4594 = vmatmul.mubr.f32.gmra.mrb[22].mxu1 %v4500_v2  ;;  %v4505_v13 = vrot.slane %v4453_v26, 5  ;;  %v4424_v2 = vld [vmem:[#allocation4 + $0x40] sm:$0xf] }
 0x81d   :  { %7404 = vmatpush1.bf16.msra.mxu1 %v7403_v16  ;;  %v4504_v30 = vsel %vm2157_vm7, %v4499_v23, %v4503_v34  ;;  %v7436_v23 = vpack.c.bf16 %v6050_v40, %v6049_v49  ;;  %v6051_v16 = vld [vmem:[%s11793_s12 + $0x1a0] sm:$0xff]  ;;  %v4724_v34 = vld [vmem:[#allocation4 + $0x8] sm:$0xc0]  ;;  %v4619_v47 = vsel %vm1352_vm5, %v4614_v63, %v4618_v60  ;;  %v4757_v49 = vrot.slane %v11295_v46, 6  ;;  %v6077_v63 = vld [vmem:[%s11793_s12 + $0x250] sm:$0xff] }
 0x81e   :  { %v4506_v0 = vsel %vm2157_vm7, %v4501_v41, %v4505_v13  ;;  %7405 = vmatprep.subr.bf16.mxu1 %v7731_v6  ;;  %v4425_v41 = vld [vmem:[#allocation4 + $0x48] sm:$0xf]  ;;  %v7439_v26 = vpack.c.bf16 %v6052_v44, %v6051_v16  ;;  %v6053_v13 = vld [vmem:[%s11793_s12 + $0x1b0] sm:$0xff]  ;;  %v4759_v17 = vrot.slane %v4724_v34, 6  ;;  %v4764_v40 = vrot.slane %v11343_v61, 6 }
 0x81f   :  { %6042 = vmatprep.mubr.msk.f32.mxu1 %vm66_vm1, %v4506_v0  ;;  %v4624_v10 = vrot.slane %v4425_v41, 4  ;;  %v4768_v16 = vrot.slane %v11358_v5, 6 }
 0x820   :  { %4599 = vmatmul.mubr.f32.gmra.mrb[24].mxu1 %v4504_v30  ;;  %v7442_v30 = vpack.c.bf16 %v6054_v32, %v6053_v13  ;;  %v4761_v18 = vsel %vm2288_vm6, %v4759_v17, %v4760_v29  ;;  %v4765_v41 = vsel %vm2288_vm6, %v4760_v29, %v4764_v40  ;;  %v4725_v13 = vld [vmem:[#allocation4 + $0x40] sm:$0x3f] }
 0x821   :  { %7407 = vmatpush1.bf16.msra.mxu1 %v7406_v58  ;;  %6043 = vmatprep.mubr.msk.f32.mxu1 %vm66_vm1, %v4613_v56  ;;  %v4622_v58 = vrot.slane %v4424_v2, 4  ;;  %v4625_v0 = vsel %vm1352_vm5, %v4620_v55, %v4624_v10  ;;  %v6055_v56 = vld [vmem:[%s11793_s12 + $0x1c0] sm:$0xff]  ;;  %v4766_v2 = vrot.slane %v11313_v62, 6  ;;  %v4770_v29 = vrot.slane %v4725_v13, 6 }
 0x822   :  { %7408 = vmatprep.subr.bf16.mxu1 %v7731_v6  ;;  %v4918_v13 = vrot.slane %v11313_v62, 7 }
 0x823   :  { %v4623_v21 = vsel %vm1352_vm5, %v4618_v60, %v4622_v58  ;;  %v6079_v60 = vld [vmem:[%s11793_s12 + $0x260] sm:$0xff]  ;;  %v6081_v58 = vld [vmem:[%s11793_s12 + $0x270] sm:$0xff] }
 0x825   :  { %7410 = vmatpush1.bf16.msra.mxu1 %v7409_v59  ;;  %v6056_v59 = vld [vmem:[%s11793_s12 + $0x1c8] sm:$0xff] }
 0x826   :  { %7411 = vmatprep.subr.bf16.mxu1 %v7731_v6 }
 0x829   :  { %7413 = vmatpush1.bf16.msra.mxu1 %v7412_v22  ;;  %v7445_v22 = vpack.c.bf16 %v6056_v59, %v6055_v56  ;;  %v4912_v59 = vrot.slane %v11326_v52, 7 }
 0x82a   :  { %7414 = vmatprep.subr.bf16.mxu1 %v7731_v6 }
 0x82d   :  { %7416 = vmatpush1.bf16.msra.mxu1 %v7415_v8  ;;  %v7448_v8 = vpack.c.bf16 %v6058_v35, %v6057_v42  ;;  %v4771_v42 = vsel %vm2288_vm6, %v4766_v2, %v4770_v29  ;;  %v6110_v29 = vld [vmem:[%s11793_s12 + $0x338] sm:$0xff] }
 0x82e   :  { %7417 = vmatprep.subr.bf16.mxu1 %v7731_v6 }
 0x831   :  { %7419 = vmatpush1.bf16.msra.mxu1 %v7418_v50  ;;  %v7451_v50 = vpack.c.bf16 %v6060_v48, %v6059_v39  ;;  %v6085_v39 = vld [vmem:[%s11793_s12 + $0x290] sm:$0xff]  ;;  %v6086_v48 = vld [vmem:[%s11793_s12 + $0x298] sm:$0xff] }
 0x832   :  { %7420 = vmatprep.subr.bf16.mxu1 %v7731_v6 }
 0x835   :  { %7422 = vmatpush1.bf16.msra.mxu1 %v7421_v45  ;;  %v7454_v45 = vpack.c.bf16 %v6062_v51, %v6061_v20  ;;  %v6087_v20 = vld [vmem:[%s11793_s12 + $0x2a0] sm:$0xff]  ;;  %v6088_v51 = vld [vmem:[%s11793_s12 + $0x2a8] sm:$0xff] }
 0x836   :  { %7423 = vmatprep.subr.bf16.mxu1 %v7731_v6 }
 0x839   :  { %7425 = vmatpush1.bf16.msra.mxu1 %v7424_v24  ;;  %v7457_v24 = vpack.c.bf16 %v6064_v11, %v6063_v53  ;;  %v6089_v53 = vld [vmem:[%s11793_s12 + $0x2b0] sm:$0xff]  ;;  %v6090_v11 = vld [vmem:[%s11793_s12 + $0x2b8] sm:$0xff] }
 0x83a   :  { %7426 = vmatprep.subr.bf16.mxu1 %v7731_v6 }
 0x83d   :  { %7428 = vmatpush1.bf16.msra.mxu1 %v7427_v25  ;;  %v7460_v25 = vpack.c.bf16 %v6066_v31, %v6065_v19  ;;  %v6091_v19 = vld [vmem:[%s11793_s12 + $0x2c0] sm:$0xff]  ;;  %v6092_v31 = vld [vmem:[%s11793_s12 + $0x2c8] sm:$0xff] }
 0x83e   :  { %7429 = vmatprep.subr.bf16.mxu1 %v7731_v6 }
 0x841   :  { %7431 = vmatpush1.bf16.msra.mxu1 %v7430_v9  ;;  %v6069_v9 = vld [vmem:[%s11793_s12 + $0x230] sm:$0xff] }
 0x842   :  { %7432 = vmatprep.subr.bf16.mxu1 %v7731_v6  ;;  %v7466_v15 = vpack.c.bf16 %v6070_v33, %v6069_v9  ;;  %v6095_v9 = vld [vmem:[%s11793_s12 + $0x2e0] sm:$0xff]  ;;  %v6096_v33 = vld [vmem:[%s11793_s12 + $0x2e8] sm:$0xff] }
 0x844   :  { %4703 = vmatmul.mubr.f32.vlgmr.msra.gmra.mrb[26].mxu1 %v4610_v12  ;;  %v7469_v12 = vpack.c.bf16 %v6076_v3, %v6075_v7  ;;  %v6098_v7 = vld [vmem:[%s11793_s12 + $0x2f8] sm:$0xff]  ;;  %v4875_v3 = vld [vmem:[#allocation4] sm:$0x80] }
 0x845   :  { %6044 = vmatprep.mubr.msk.f32.mxu1 %vm66_vm1, %v4617_v4  ;;  %7434 = vmatpush1.bf16.msra.mxu1 %v7433_v38  ;;  %v4756_v38 = vrot.slane %v4723_v57, 6  ;;  %v6078_v4 = vld [vmem:[%s11793_s12 + $0x258] sm:$0xff]  ;;  %v7499_v57 = vpack.c.bf16 %v6096_v33, %v6095_v9  ;;  %v6125_v33 = vld [vmem:[%s11793_s12 + $0x3b0] sm:$0xff] }
 0x846   :  { %7435 = vmatprep.subr.bf16.mxu1 %v7731_v6  ;;  %v7472_v44 = vpack.c.bf16 %v6078_v4, %v6077_v63  ;;  %v4909_v63 = vrot.slane %v11295_v46, 7  ;;  %v4916_v4 = vrot.slane %v11343_v61, 7 }
 0x847   :  { %v4758_v55 = vsel %vm2288_vm6, %v4756_v38, %v4757_v49 }
 0x848   :  { %4708 = vmatmul.mubr.f32.gmra.mrb[28].mxu1 %v4615_v1  ;;  %v4726_v1 = vld [vmem:[#allocation4 + $0x48] sm:$0x3f] }
 0x849   :  { %6045 = vmatprep.mubr.msk.f32.mxu1 %vm66_vm1, %v4621_v43  ;;  %7437 = vmatpush1.bf16.msra.mxu1 %v7436_v23  ;;  %v4762_v23 = vrot.slane %v11304_v27, 6  ;;  %v6080_v43 = vld [vmem:[%s11793_s12 + $0x268] sm:$0xff]  ;;  %v4772_v34 = vrot.slane %v4726_v1, 6  ;;  %v4917_v1 = vsel %vm2419_vm8, %v4912_v59, %v4916_v4 }
 0x84a   :  { %7438 = vmatprep.subr.bf16.mxu1 %v7731_v6  ;;  %v7475_v32 = vpack.c.bf16 %v6080_v43, %v6079_v60  ;;  %v4920_v60 = vrot.slane %v11358_v5, 7 }
 0x84b   :  { %v4763_v10 = vsel %vm2288_vm6, %v4757_v49, %v4762_v23  ;;  %v4767_v17 = vsel %vm2288_vm6, %v4762_v23, %v4766_v2  ;;  %v6103_v49 = vld [vmem:[%s11793_s12 + $0x300] sm:$0xff]  ;;  %v6105_v23 = vld [vmem:[%s11793_s12 + $0x310] sm:$0xff] }
 0x84c   :  { %4713 = vmatmul.mubr.f32.gmra.mrb[30].mxu1 %v4619_v47  ;;  %v4876_v47 = vld [vmem:[#allocation4 + $0x8] sm:$0x80]  ;;  %v6107_v2 = vld [vmem:[%s11793_s12 + $0x320] sm:$0xff] }
 0x84d   :  { %6046 = vmatprep.mubr.msk.f32.mxu1 %vm66_vm1, %v4625_v0  ;;  %7440 = vmatpush1.bf16.msra.mxu1 %v7439_v26  ;;  %v4769_v26 = vsel %vm2288_vm6, %v4764_v40, %v4768_v16  ;;  %v6082_v0 = vld [vmem:[%s11793_s12 + $0x278] sm:$0xff]  ;;  %v4911_v56 = vrot.slane %v4876_v47, 7  ;;  %v6104_v40 = vld [vmem:[%s11793_s12 + $0x308] sm:$0xff] }
 0x84e   :  { %7441 = vmatprep.subr.bf16.mxu1 %v7731_v6 }
 0x84f   :  { %v4913_v35 = vsel %vm2419_vm8, %v4911_v56, %v4912_v59 }
 0x850   :  { %4718 = vmatmul.mubr.f32.gmra.mrb[32].mxu1 %v4623_v21  ;;  %v7478_v21 = vpack.c.bf16 %v6082_v0, %v6081_v58  ;;  %v4877_v58 = vld [vmem:[#allocation4 + $0x40] sm:$0x7f] }
 0x851   :  { %7443 = vmatpush1.bf16.msra.mxu1 %v7442_v30  ;;  %6071 = vmatprep.mubr.msk.f32.mxu1 %vm66_vm1, %v4761_v18  ;;  %v4773_v30 = vsel %vm2288_vm6, %v4768_v16, %v4772_v34  ;;  %v6083_v18 = vld [vmem:[%s11793_s12 + $0x280] sm:$0xff]  ;;  %v4922_v56 = vrot.slane %v4877_v58, 7 }
 0x852   :  { %7444 = vmatprep.subr.bf16.mxu1 %v7731_v6 }
 0x855   :  { %7446 = vmatpush1.bf16.msra.mxu1 %v7445_v22  ;;  %v6084_v22 = vld [vmem:[%s11793_s12 + $0x288] sm:$0xff] }
 0x856   :  { %7447 = vmatprep.subr.bf16.mxu1 %v7731_v6 }
 0x859   :  { %7449 = vmatpush1.bf16.msra.mxu1 %v7448_v8  ;;  %v7481_v8 = vpack.c.bf16 %v6084_v22, %v6083_v18  ;;  %v6111_v18 = vld [vmem:[%s11793_s12 + $0x340] sm:$0xff]  ;;  %v6112_v22 = vld [vmem:[%s11793_s12 + $0x348] sm:$0xff] }
 0x85a   :  { %7450 = vmatprep.subr.bf16.mxu1 %v7731_v6 }
 0x85d   :  { %7452 = vmatpush1.bf16.msra.mxu1 %v7451_v50  ;;  %v7484_v50 = vpack.c.bf16 %v6086_v48, %v6085_v39  ;;  %v6114_v39 = vld [vmem:[%s11793_s12 + $0x358] sm:$0xff] }
 0x85e   :  { %7453 = vmatprep.subr.bf16.mxu1 %v7731_v6 }
 0x861   :  { %7455 = vmatpush1.bf16.msra.mxu1 %v7454_v45  ;;  %v7487_v45 = vpack.c.bf16 %v6088_v51, %v6087_v20  ;;  %v6117_v51 = vld [vmem:[%s11793_s12 + $0x370] sm:$0xff] }
 0x862   :  { %7456 = vmatprep.subr.bf16.mxu1 %v7731_v6 }
 0x865   :  { %7458 = vmatpush1.bf16.msra.mxu1 %v7457_v24  ;;  %v7490_v24 = vpack.c.bf16 %v6090_v11, %v6089_v53  ;;  %v6119_v11 = vld [vmem:[%s11793_s12 + $0x380] sm:$0xff] }
 0x866   :  { %7459 = vmatprep.subr.bf16.mxu1 %v7731_v6 }
 0x869   :  { %7461 = vmatpush1.bf16.msra.mxu1 %v7460_v25  ;;  %v7493_v25 = vpack.c.bf16 %v6092_v31, %v6091_v19  ;;  %v6121_v31 = vld [vmem:[%s11793_s12 + $0x390] sm:$0xff] }
 0x86a   :  { %7462 = vmatprep.subr.bf16.mxu1 %v7731_v6 }
 0x86d   :  { %7464 = vmatpush1.bf16.msra.mxu1 %v7463_v28  ;;  %v7496_v28 = vpack.c.bf16 %v6094_v54, %v6093_v36  ;;  %v6123_v54 = vld [vmem:[%s11793_s12 + $0x3a0] sm:$0xff] }
 0x86e   :  { %7465 = vmatprep.subr.bf16.mxu1 %v7731_v6 }
 0x871   :  { %7467 = vmatpush1.bf16.msra.mxu1 %v7466_v15  ;;  %v6097_v15 = vld [vmem:[%s11793_s12 + $0x2f0] sm:$0xff] }
 0x872   :  { %7468 = vmatprep.subr.bf16.mxu1 %v7731_v6  ;;  %v7502_v38 = vpack.c.bf16 %v6098_v7, %v6097_v15  ;;  %v5028_v7 = vld [vmem:[#allocation4 + $0x48] sm:$0xff] }
 0x874   :  { %4851 = vmatmul.mubr.f32.vlgmr.msra.gmra.mrb[34].mxu1 %v4758_v55  ;;  %v7505_v55 = vpack.c.bf16 %v6104_v40, %v6103_v49 }
 0x875   :  { %6072 = vmatprep.mubr.msk.f32.mxu1 %vm66_vm1, %v4765_v41  ;;  %7470 = vmatpush1.bf16.msra.mxu1 %v7469_v12  ;;  %v4908_v12 = vrot.slane %v4875_v3, 7  ;;  %v6106_v41 = vld [vmem:[%s11793_s12 + $0x318] sm:$0xff] }
 0x876   :  { %7471 = vmatprep.subr.bf16.mxu1 %v7731_v6  ;;  %v7508_v43 = vpack.c.bf16 %v6106_v41, %v6105_v23 }
 0x877   :  { %v4910_v16 = vsel %vm2419_vm8, %v4908_v12, %v4909_v63 }
 0x878   :  { %4856 = vmatmul.mubr.f32.gmra.mrb[36].mxu1 %v4763_v10  ;;  %v4878_v10 = vld [vmem:[#allocation4 + $0x48] sm:$0x7f] }
 0x879   :  { %6073 = vmatprep.mubr.msk.f32.mxu1 %vm66_vm1, %v4769_v26  ;;  %7473 = vmatpush1.bf16.msra.mxu1 %v7472_v44  ;;  %v4914_v44 = vrot.slane %v11304_v27, 7  ;;  %v6108_v26 = vld [vmem:[%s11793_s12 + $0x328] sm:$0xff]  ;;  %v4924_v47 = vrot.slane %v4878_v10, 7 }
 0x87a   :  { %7474 = vmatprep.subr.bf16.mxu1 %v7731_v6  ;;  %v7511_v0 = vpack.c.bf16 %v6108_v26, %v6107_v2 }
 0x87b   :  { %v4915_v34 = vsel %vm2419_vm8, %v4909_v63, %v4914_v44  ;;  %v4925_v59 = vsel %vm2419_vm8, %v4920_v60, %v4924_v47 }
 0x87c   :  { %4861 = vmatmul.mubr.f32.gmra.mrb[38].mxu1 %v4767_v17  ;;  %v6109_v17 = vld [vmem:[%s11793_s12 + $0x330] sm:$0xff] }
 0x87d   :  { %6074 = vmatprep.mubr.msk.f32.mxu1 %vm66_vm1, %v4773_v30  ;;  %7476 = vmatpush1.bf16.msra.mxu1 %v7475_v32  ;;  %v4921_v32 = vsel %vm2419_vm8, %v4916_v4, %v4920_v60  ;;  %v4919_v30 = vsel %vm2419_vm8, %v4914_v44, %v4918_v13 }
 0x87e   :  { %7477 = vmatprep.subr.bf16.mxu1 %v7731_v6 }
 0x880   :  { %4866 = vmatmul.mubr.f32.gmra.mrb[40].mxu1 %v4771_v42  ;;  %v4923_v42 = vsel %vm2419_vm8, %v4918_v13, %v4922_v56 }
 0x881   :  { %7479 = vmatpush1.bf16.msra.mxu1 %v7478_v21  ;;  %6099 = vmatprep.mubr.msk.f32.mxu1 %vm66_vm1, %v4913_v35  ;;  %v7514_v21 = vpack.c.bf16 %v6110_v29, %v6109_v17  ;;  %v7517_v35 = vpack.c.bf16 %v6112_v22, %v6111_v18 }
 0x882   :  { %7480 = vmatprep.subr.bf16.mxu1 %v7731_v6 }
 0x885   :  { %7482 = vmatpush1.bf16.msra.mxu1 %v7481_v8  ;;  %v6113_v8 = vld [vmem:[%s11793_s12 + $0x350] sm:$0xff] }
 0x886   :  { %7483 = vmatprep.subr.bf16.mxu1 %v7731_v6  ;;  %v7520_v48 = vpack.c.bf16 %v6114_v39, %v6113_v8 }
 0x889   :  { %7485 = vmatpush1.bf16.msra.mxu1 %v7484_v50  ;;  %v6115_v50 = vld [vmem:[%s11793_s12 + $0x360] sm:$0xff] }
 0x88a   :  { %7486 = vmatprep.subr.bf16.mxu1 %v7731_v6 }
 0x88d   :  { %7488 = vmatpush1.bf16.msra.mxu1 %v7487_v45  ;;  %v6118_v45 = vld [vmem:[%s11793_s12 + $0x378] sm:$0xff] }
 0x88e   :  { %7489 = vmatprep.subr.bf16.mxu1 %v7731_v6  ;;  %v7526_v53 = vpack.c.bf16 %v6118_v45, %v6117_v51 }
 0x891   :  { %7491 = vmatpush1.bf16.msra.mxu1 %v7490_v24  ;;  %v6120_v24 = vld [vmem:[%s11793_s12 + $0x388] sm:$0xff] }
 0x892   :  { %7492 = vmatprep.subr.bf16.mxu1 %v7731_v6  ;;  %v7529_v19 = vpack.c.bf16 %v6120_v24, %v6119_v11 }
 0x895   :  { %7494 = vmatpush1.bf16.msra.mxu1 %v7493_v25  ;;  %v6122_v25 = vld [vmem:[%s11793_s12 + $0x398] sm:$0xff] }
 0x896   :  { %7495 = vmatprep.subr.bf16.mxu1 %v7731_v6  ;;  %v7532_v36 = vpack.c.bf16 %v6122_v25, %v6121_v31 }
 0x899   :  { %7497 = vmatpush1.bf16.msra.mxu1 %v7496_v28  ;;  %v6124_v28 = vld [vmem:[%s11793_s12 + $0x3a8] sm:$0xff] }
 0x89a   :  { %7498 = vmatprep.subr.bf16.mxu1 %v7731_v6  ;;  %v7535_v9 = vpack.c.bf16 %v6124_v28, %v6123_v54 }
 0x89d   :  { %7500 = vmatpush1.bf16.msra.mxu1 %v7499_v57  ;;  %v6126_v57 = vld [vmem:[%s11793_s12 + $0x3b8] sm:$0xff] }
 0x89e   :  { %7501 = vmatprep.subr.bf16.mxu1 %v7731_v6  ;;  %v7538_v15 = vpack.c.bf16 %v6126_v57, %v6125_v33 }
 0x8a1   :  { %7503 = vmatpush1.bf16.msra.mxu1 %v7502_v38 }
 0x8a2   :  { %7504 = vmatprep.subr.bf16.mxu1 %v7731_v6 }
 0x8a4   :  { %5003 = vmatmul.mubr.f32.vlgmr.msra.gmra.mrb[42].mxu1 %v4910_v16 }
 0x8a5   :  { %6100 = vmatprep.mubr.msk.f32.mxu1 %vm66_vm1, %v4917_v1  ;;  %7506 = vmatpush1.bf16.msra.mxu1 %v7505_v55 }
 0x8a6   :  { %7507 = vmatprep.subr.bf16.mxu1 %v7731_v6 }
 0x8a8   :  { %5008 = vmatmul.mubr.f32.gmra.mrb[44].mxu1 %v4915_v34 }
 0x8a9   :  { %6101 = vmatprep.mubr.msk.f32.mxu1 %vm66_vm1, %v4921_v32  ;;  %7509 = vmatpush1.bf16.msra.mxu1 %v7508_v43 }
 0x8aa   :  { %7510 = vmatprep.subr.bf16.mxu1 %v7731_v6 }
 0x8ac   :  { %5013 = vmatmul.mubr.f32.gmra.mrb[46].mxu1 %v4919_v30 }
 0x8ad   :  { %6102 = vmatprep.mubr.msk.f32.mxu1 %vm66_vm1, %v4925_v59  ;;  %7512 = vmatpush1.bf16.msra.mxu1 %v7511_v0 }
 0x8ae   :  { %7513 = vmatprep.subr.bf16.mxu1 %v7731_v6 }
 0x8b0   :  { %5018 = vmatmul.mubr.f32.gmra.mrb[48].mxu1 %v4923_v42 }
 0x8b1   :  { %7515 = vmatpush1.bf16.msra.mxu1 %v7514_v21  ;;  %6127 = vmatprep.mubr.msk.f32.mxu1 %vm66_vm1, %v11326_v52  ;;  %v6116_v52 = vld [vmem:[%s11793_s12 + $0x368] sm:$0xff] }
 0x8b2   :  { %7516 = vmatprep.subr.bf16.mxu1 %v7731_v6  ;;  %v7523_v20 = vpack.c.bf16 %v6116_v52, %v6115_v50  ;;  %v6131_v50 = vld [vmem:[%s11794_s13] ss:$0 sm:$0xff]  ;;  %s7732_s13 = smov [#allocation5]  }
 0x8b3   :  { %s5196_s10 = sshll.u32 %s7732_s13, 4  ;;  %s5197_s10 = int_to_ptr.vmem [resolvable:$true] %s5196_s10 }
 0x8b4   :  { %s7704_s25 = scalar_lea.vmem %s5197_s10, 512  ;;  %p7709_p1 = scmp.lt.s32.totalorder %s5197_s10, %s5197_s10 }
 0x8b5   :  { %7518 = vmatpush1.bf16.msra.mxu1 %v7517_v35  ;;  %p7705_p0 = scmp.ne.s32.totalorder %s5197_s10, %s7704_s25  ;;  %p7710_p2 = scmp.lt.s32.totalorder %s7704_s25, %s7704_s25 }
 0x8b6   :  { %7519 = vmatprep.subr.bf16.mxu1 %v7731_v6 }
 0x8b7   :  { %p7711_p3 = por %p7710_p2, %p7709_p1 }
 0x8b9   :  { %7521 = vmatpush1.bf16.msra.mxu1 %v7520_v48  ;;  %p7712_p4 = pnand %p7711_p3, %p7705_p0 }
 0x8ba   :  { %7522 = vmatprep.subr.bf16.mxu1 %v7731_v6 }
 0x8bd   :  { %7524 = vmatpush1.bf16.msra.mxu1 %v7523_v20 }
 0x8be   :  { %7525 = vmatprep.subr.bf16.mxu1 %v7731_v6 }
 0x8c1   :  { %7527 = vmatpush1.bf16.msra.mxu1 %v7526_v53 }
 0x8c2   :  { %7528 = vmatprep.subr.bf16.mxu1 %v7731_v6 }
 0x8c5   :  { %7530 = vmatpush1.bf16.msra.mxu1 %v7529_v19 }
 0x8c6   :  { %7531 = vmatprep.subr.bf16.mxu1 %v7731_v6 }
 0x8c9   :  { %7533 = vmatpush1.bf16.msra.mxu1 %v7532_v36 }
 0x8ca   :  { %7534 = vmatprep.subr.bf16.mxu1 %v7731_v6 }
 0x8cd   :  { %7536 = vmatpush1.bf16.msra.mxu1 %v7535_v9 }
 0x8ce   :  { %7537 = vmatprep.subr.bf16.mxu1 %v7731_v6 }
 0x8d1   :  { %7539 = vmatpush1.bf16.msra.mxu1 %v7538_v15 }
 0x8d4   :  { %5128 = vmatmul.mubr.f32.vlgmr.msra.gmra.mrb[50].mxu1 %v11295_v46 }
 0x8d5   :  { %6128 = vmatprep.mubr.msk.f32.mxu1 %vm66_vm1, %v11343_v61 }
 0x8d8   :  { %5133 = vmatmul.mubr.f32.gmra.mrb[52].mxu1 %v11304_v27 }
 0x8d9   :  { %6129 = vmatprep.mubr.msk.f32.mxu1 %vm66_vm1, %v11358_v5 }
 0x8dc   :  { %5138 = vmatmul.mubr.f32.gmra.mrb[54].mxu1 %v11313_v62 }
 0x8dd   :  { %6130 = vmatprep.mubr.msk.f32.mxu1 %vm66_vm1, %v5028_v7 }
 0x8e0   :  { %5143 = vmatmul.mubr.f32.gmra.mrb[56].mxu1 %v4406_v37 }
 0x8e7   :  { %v4585_v6 = vpop.f32.mrb[18].mxu1 }
 0x8e8   :  { %v4587_v3 = vpop.f32.mrb[19].mxu1 }
 0x8eb   :  { %v4590_v38 = vpop.f32.mrb[20].mxu1 }
 0x8ec   :  { %v4592_v46 = vpop.f32.mrb[21].mxu1 }
 0x8ef   :  { %v4595_v49 = vpop.f32.mrb[22].mxu1 }
 0x8f0   :  { %v4597_v40 = vpop.f32.mrb[23].mxu1 }
 0x8f3   :  { %v4600_v61 = vpop.f32.mrb[24].mxu1 }
 0x8f4   :  { %v4602_v12 = vpop.f32.mrb[25].mxu1 }
 0x917   :  { %v4704_v27 = vpop.f32.mrb[26].mxu1 }
 0x918   :  { %v4705_v63 = vadd.f32 %v4704_v27, %v4585_v6  ;;  %v4706_v4 = vpop.f32.mrb[27].mxu1 }
 0x91b   :  { %v4709_v5 = vpop.f32.mrb[28].mxu1 }
 0x91c   :  { %v4710_v55 = vadd.f32 %v4709_v5, %v4590_v38  ;;  %v4711_v62 = vpop.f32.mrb[29].mxu1 }
 0x91f   :  { %v4714_v23 = vpop.f32.mrb[30].mxu1 }
 0x920   :  { %v4715_v41 = vadd.f32 %v4714_v23, %v4595_v49  ;;  %v4716_v16 = vpop.f32.mrb[31].mxu1 }
 0x923   :  { %v4719_v44 = vpop.f32.mrb[32].mxu1 }
 0x924   :  { %v4720_v14 = vadd.f32 %v4719_v44, %v4600_v61  ;;  %v4721_v37 = vpop.f32.mrb[33].mxu1 }
 0x947   :  { %v4852_v1 = vpop.f32.mrb[34].mxu1 }
 0x948   :  { %v4871_v60 = vadd.f32 %v4852_v1, %v4705_v63  ;;  %v4854_v43 = vpop.f32.mrb[35].mxu1 }
 0x94b   :  { %v4857_v10 = vpop.f32.mrb[36].mxu1 }
 0x94c   :  { %v4872_v2 = vadd.f32 %v4857_v10, %v4710_v55  ;;  %v4859_v26 = vpop.f32.mrb[37].mxu1 }
 0x94f   :  { %v4862_v34 = vpop.f32.mrb[38].mxu1 }
 0x950   :  { %v4873_v13 = vadd.f32 %v4862_v34, %v4715_v41  ;;  %v4864_v32 = vpop.f32.mrb[39].mxu1 }
 0x953   :  { %v4867_v47 = vpop.f32.mrb[40].mxu1 }
 0x954   :  { %v4874_v58 = vadd.f32 %v4867_v47, %v4720_v14  ;;  %v4869_v0 = vpop.f32.mrb[41].mxu1 }
 0x977   :  { %v5004_v17 = vpop.f32.mrb[42].mxu1 }
 0x978   :  { %v5023_v29 = vadd.f32 %v5004_v17, %v4871_v60  ;;  %v5006_v30 = vpop.f32.mrb[43].mxu1 }
 0x97b   :  { %v5009_v56 = vpop.f32.mrb[44].mxu1 }
 0x97c   :  { %v5024_v59 = vadd.f32 %v5009_v56, %v4872_v2  ;;  %v5011_v21 = vpop.f32.mrb[45].mxu1 }
 0x97f   :  { %v5014_v18 = vpop.f32.mrb[46].mxu1 }
 0x980   :  { %v5025_v22 = vadd.f32 %v5014_v18, %v4873_v13  ;;  %v5016_v42 = vpop.f32.mrb[47].mxu1 }
 0x983   :  { %v5019_v35 = vpop.f32.mrb[48].mxu1 }
 0x984   :  { %v5026_v8 = vadd.f32 %v5019_v35, %v4874_v58  ;;  %v5021_v39 = vpop.f32.mrb[49].mxu1 }
 0x9a7   :  { %v5129_v48 = vpop.f32.mrb[50].mxu1 }
 0x9a8   :  { %v5148_v52 = vadd.f32 %v5129_v48, %v5023_v29  ;;  %v5131_v20 = vpop.f32.mrb[51].mxu1 }
 0x9aa   :  { %v5159_v51 = vadd.f32 %v6131_v50, %v5148_v52 }
 0x9ab   :  { %v5134_v45 = vpop.f32.mrb[52].mxu1 }
 0x9ac   :  { %v5163_v53 = vsub.f32 0.0, %v5159_v51  ;;  %v5149_v11 = vadd.f32 %v5134_v45, %v5024_v59  ;;  %v5136_v24 = vpop.f32.mrb[53].mxu1 }
 0x9ae   :  { %v5167_v19 = vmul.f32 1.442695, %v5163_v53  ;;  %v5160_v31 = vadd.f32 %v6131_v50, %v5149_v11 }
 0x9af   :  { %v5139_v25 = vpop.f32.mrb[54].mxu1 }
 0x9b0   :  { %7679 = vpow2.f32 %v5167_v19  ;;  %v5164_v36 = vsub.f32 0.0, %v5160_v31  ;;  %v5150_v54 = vadd.f32 %v5139_v25, %v5025_v22  ;;  %v5141_v28 = vpop.f32.mrb[55].mxu1 }
 0x9b2   :  { %v5169_v9 = vmul.f32 1.442695, %v5164_v36  ;;  %v5161_v33 = vadd.f32 %v6131_v50, %v5150_v54 }
 0x9b3   :  { %v5144_v57 = vpop.f32.mrb[56].mxu1 }
 0x9b4   :  { %7681 = vpow2.f32 %v5169_v9  ;;  %v5165_v15 = vsub.f32 0.0, %v5161_v33  ;;  %v5151_v7 = vadd.f32 %v5144_v57, %v5026_v8  ;;  %v5146_v6 = vpop.f32.mrb[57].mxu1 }
 0x9b6   :  { %v5171_v3 = vmul.f32 1.442695, %v5165_v15  ;;  %v5162_v38 = vadd.f32 %v6131_v50, %v5151_v7 }
 0x9b8   :  { %7683 = vpow2.f32 %v5171_v3  ;;  %v5166_v46 = vsub.f32 0.0, %v5162_v38 }
 0x9ba   :  { %v7680_v49 = vpop.eup %7679  ;;  %v5173_v40 = vmul.f32 1.442695, %v5166_v46 }
 0x9bb   :  { %v5175_v61 = vadd.f32 1.0, %v7680_v49 }
 0x9bc   :  { %7685 = vpow2.f32 %v5173_v40 }
 0x9bd   :  { %7687 = vrcp.f32 %v5175_v61 }
 0x9be   :  { %v7682_v12 = vpop.eup %7681 }
 0x9bf   :  { %v5176_v27 = vadd.f32 1.0, %v7682_v12 }
 0x9c1   :  { %7689 = vrcp.f32 %v5176_v27 }
 0x9c2   :  { %v7684_v63 = vpop.eup %7683 }
 0x9c3   :  { %v5177_v4 = vadd.f32 1.0, %v7684_v63 }
 0x9c5   :  { %7691 = vrcp.f32 %v5177_v4 }
 0x9c6   :  { %v7686_v5 = vpop.eup %7685 }
 0x9c7   :  { %v7688_v55 = vpop.eup %7687  ;;  %v5178_v62 = vadd.f32 1.0, %v7686_v5 }
 0x9c8   :  { %5187 = vst.msk [vmem:[#allocation5] sm:$0xff] %vm93_vm0, %v7688_v55 }
 0x9c9   :  { %7693 = vrcp.f32 %v5178_v62 }
 0x9cb   :  { %v7690_v23 = vpop.eup %7689 }
 0x9cc   :  { %5188 = vst.msk [vmem:[#allocation5 + $0x8] sm:$0xff] %vm93_vm0, %v7690_v23 }
 0x9cf   :  { %v7692_v41 = vpop.eup %7691 }
 0x9d0   :  { %5189 = vst.msk [vmem:[#allocation5 + $0x10] sm:$0xff] %vm93_vm0, %v7692_v41 }
 0x9d3   :  { %v7694_v16 = vpop.eup %7693 }
 0x9d4   :  { %5190 = vst.msk [vmem:[#allocation5 + $0x18] sm:$0xff] %vm93_vm0, %v7694_v16 }
 0x9d5   :  { %7715 = shalt.err (!%p7712_p4)
}
 0x9d6   :  { %s7716_s26 = scalar_lea.hbm %s11795_s14, 512 }
 0x9d7   :  { %p7717_p5 = scmp.ne.s32.totalorder %s11795_s14, %s7716_s26  ;;  %p7720_p6 = scmp.lt.u32.totalorder %s7716_s26, %s11795_s14 }
 0x9d9   :  { %p7722_p7 = pnand %p7720_p6, %p7717_p5 }
 0x9db   :  { %7725 = shalt.err (!%p7722_p7)
}
 0x9dc   :  { %s7733_s28 = smov 128   ;;  %s7734_s15 = smov 8  }
 0x9dd   :  { %5202 = dma.vmem_to_hbm [thread:$0]  %s5197_s10, 512, %s11795_s14, [#allocation6], %s7733_s28, %s7733_s28, %s7734_s15  }
 0x9de   :  { %7726 = dma.done.wait [#allocation6], 512  }
 0x9df   :  { %7727 = vsyncadd [#allocation6], 4294966784 }
 0x9e0   :  { %5210 = vsyncpa [#allocation6], 1 }

</bundles_post_ra>
